<compile_context>
chip_gen: v5e
topology: v5e:2x2
jax: 0.10.0
libtpu: 0.0.40
codegen_flags: <defaults>
</compile_context>

<pallas_src>
import jax
import jax.numpy as jnp
from jax.experimental import pallas as pl
from jax.experimental.pallas import tpu as pltpu


_OFFSETS = tuple((dy, dx) for dy in (-1, 0, 1) for dx in (-1, 0, 1))


def _make_double_conv_kernel(c_in, c_mid, c_out, img_w, use_mxu1, use_mxu2):
    """Builds the fused (conv3x3 -> folded BN -> ReLU) x 2 kernel body.

    In-kernel layout: channels on the sublane axis, all pixels (of all images
    in the block) flattened onto the lane axis.
    """

    def conv3x3(inp, wmat, masks, cin, cout, lanes, use_mxu):
        # inp: (cin, lanes) f32, wmat: (cout, 9*cin) f32, masks: (9, lanes) f32
        acc = jnp.zeros((cout, lanes), jnp.float32)
        for k, (dy, dx) in enumerate(_OFFSETS):
            d = dy * img_w + dx
            # shifted[p] = inp[p + d]; wrap-around / cross-image reads are
            # exactly the positions zeroed by the per-tap edge mask.
            sh = inp if d == 0 else pltpu.roll(inp, shift=(-d) % lanes, axis=1)
            if d != 0:
                sh = sh * masks[k:k + 1, :]
            if use_mxu:
                acc = acc + jnp.dot(wmat[:, k * cin:(k + 1) * cin], sh,
                                    preferred_element_type=jnp.float32)
            else:
                # Tiny-C contraction on the VPU: (cout,1) x (1,lanes) FMAs.
                for ci in range(cin):
                    col = wmat[:, k * cin + ci:k * cin + ci + 1]   # (cout, 1)
                    acc = acc + col * sh[ci:ci + 1, :]
        return acc

    def kernel(x_ref, m_ref, w1_ref, s1_ref, b1_ref, w2_ref, s2_ref, b2_ref,
               o_ref):
        lanes = x_ref.shape[-1]
        x = x_ref[...].astype(jnp.float32)        # (c_in, lanes)
        masks = m_ref[...]                        # (9, lanes) validity masks
        w1 = w1_ref[...].astype(jnp.float32)      # (c_mid, 9*c_in)
        w2 = w2_ref[...].astype(jnp.float32)      # (c_out, 9*c_mid)

        mid = conv3x3(x, w1, masks, c_in, c_mid, lanes, use_mxu1)
        mid = jnp.maximum(mid * s1_ref[...] + b1_ref[...], 0.0)   # BN1 + ReLU

        out = conv3x3(mid, w2, masks, c_mid, c_out, lanes, use_mxu2)
        out = jnp.maximum(out * s2_ref[...] + b2_ref[...], 0.0)   # BN2 + ReLU
        o_ref[...] = out.astype(o_ref.dtype)      # single lane-dense store

    return kernel


@jax.jit
def double_conv_forward(x, w1, gamma1, beta1, mean1, var1,
                        w2, gamma2, beta2, mean2, var2, eps=1e-5):
    """Forward pass of DoubleConv (eval-mode BatchNorm), NCHW in / NCHW out."""
    n, c_in, h, w = x.shape
    c_mid = w1.shape[0]
    c_out = w2.shape[0]
    hw = h * w

    # Fold eval-mode BatchNorm into per-channel scale + bias, shaped (C, 1) so
    # one broadcast FMA applies it to the whole (C, lanes) activation.
    sc1 = gamma1 / jnp.sqrt(var1 + eps)
    sc2 = gamma2 / jnp.sqrt(var2 + eps)
    s1 = sc1.astype(jnp.float32).reshape(c_mid, 1)
    b1 = (beta1 - mean1 * sc1).astype(jnp.float32).reshape(c_mid, 1)
    s2 = sc2.astype(jnp.float32).reshape(c_out, 1)
    b2 = (beta2 - mean2 * sc2).astype(jnp.float32).reshape(c_out, 1)

    # Conv weights as (C_out, 9*C_in); column index = (ky*3 + kx)*C_in + ci.
    w1v = jnp.transpose(w1, (0, 2, 3, 1)).reshape(c_mid, 9 * c_in)
    w1v = w1v.astype(jnp.float32)
    w2v = jnp.transpose(w2, (0, 2, 3, 1)).reshape(c_out, 9 * c_mid)
    w2v = w2v.astype(jnp.float32)

    # Fold several images into one grid step so per-step work amortizes the
    # ~0.35us pipeline overhead while keeping the live block a few MiB.
    per_lane_bytes = 4 * (c_in + 2 * c_mid + 2 * c_out + 9 + 8)
    lane_budget = max(hw, (3 * 1024 * 1024) // per_lane_bytes)
    nb = max(1, min(n, lane_budget // hw))
    g = -(-n // nb)
    n_pad = g * nb

    x_f = x.astype(jnp.float32)
    if n_pad != n:
        x_f = jnp.pad(x_f, ((0, n_pad - n), (0, 0), (0, 0), (0, 0)))

    lanes = nb * hw
    lanes_pad = -(-lanes // 128) * 128          # lane-dense: multiple of 128
    # (g, nb, C, H*W) -> (g, C, nb*H*W): channels on sublanes, pixels on lanes.
    x_r = x_f.reshape(g, nb, c_in, hw).transpose(0, 2, 1, 3)
    x_r = x_r.reshape(g, c_in, lanes)
    if lanes_pad != lanes:
        x_r = jnp.pad(x_r, ((0, 0), (0, 0), (0, lanes_pad - lanes)))

    # Per-tap validity masks for the zero-padded 3x3 conv: mask[k, p] == 1 iff
    # pixel p's read at offset (dy, dx) stays inside its own image.
    pos = jnp.arange(lanes_pad, dtype=jnp.int32)
    wi = pos % w
    hi = (pos // w) % h
    real = pos < lanes
    rows = []
    for dy in (-1, 0, 1):
        for dx in (-1, 0, 1):
            ok = ((hi + dy >= 0) & (hi + dy < h) &
                  (wi + dx >= 0) & (wi + dx < w) & real)
            rows.append(ok)
    mask_arr = jnp.stack(rows, axis=0).astype(jnp.float32)      # (9, lanes_pad)

    use_mxu1 = (c_in * c_mid) >= 256     # tiny channel counts stay on the VPU
    use_mxu2 = (c_mid * c_out) >= 256

    kernel = _make_double_conv_kernel(c_in, c_mid, c_out, w, use_mxu1, use_mxu2)

    flops = 2 * n * hw * 9 * (c_in * c_mid + c_mid * c_out)
    bytes_accessed = 4 * (g * (c_in + c_out) * lanes_pad + 9 * lanes_pad
                          + 9 * (c_in * c_mid + c_mid * c_out)
                          + 2 * (c_mid + c_out))

    out_r = pl.pallas_call(
        kernel,
        out_shape=jax.ShapeDtypeStruct((g, c_out, lanes_pad), x.dtype),
        grid=(g,),
        in_specs=[
            pl.BlockSpec((None, c_in, lanes_pad), lambda i: (i, 0, 0)),   # x
            pl.BlockSpec((9, lanes_pad), lambda i: (0, 0)),               # masks
            pl.BlockSpec((c_mid, 9 * c_in), lambda i: (0, 0)),            # w1
            pl.BlockSpec((c_mid, 1), lambda i: (0, 0)),                   # s1
            pl.BlockSpec((c_mid, 1), lambda i: (0, 0)),                   # b1
            pl.BlockSpec((c_out, 9 * c_mid), lambda i: (0, 0)),           # w2
            pl.BlockSpec((c_out, 1), lambda i: (0, 0)),                   # s2
            pl.BlockSpec((c_out, 1), lambda i: (0, 0)),                   # b2
        ],
        out_specs=pl.BlockSpec((None, c_out, lanes_pad), lambda i: (i, 0, 0)),
        compiler_params=pltpu.CompilerParams(
            dimension_semantics=("parallel",),
            vmem_limit_bytes=32 * 1024 * 1024,
        ),
        cost_estimate=pl.CostEstimate(
            flops=flops, transcendentals=0, bytes_accessed=bytes_accessed),
    )(x_r, mask_arr, w1v, s1, b1, w2v, s2, b2)

    out = (out_r[:, :, :lanes]
           .reshape(g, c_out, nb, hw)
           .transpose(0, 2, 1, 3)
           .reshape(n_pad, c_out, h, w)[:n])
    return out


def _reference(x, w1, g1, be1, m1, v1, w2, g2, be2, m2, v2, eps=1e-5):
    def conv_bn_relu(xx, wt, g, b, mean, var):
        y = jax.lax.conv_general_dilated(
            xx, wt, window_strides=(1, 1), padding=((1, 1), (1, 1)),
            dimension_numbers=("NCHW", "OIHW", "NCHW"))
        scale = g / jnp.sqrt(var + eps)
        bias = b - mean * scale
        y = y * scale[None, :, None, None] + bias[None, :, None, None]
        return jnp.maximum(y, 0.0)

    return conv_bn_relu(conv_bn_relu(x, w1, g1, be1, m1, v1),
                        w2, g2, be2, m2, v2)


if __name__ == "__main__":
    key = jax.random.PRNGKey(0)
    ks = jax.random.split(key, 12)

    N, C_IN, C_MID, C_OUT, H, W = 2, 4, 4, 4, 16, 16
    x = jax.random.normal(ks[0], (N, C_IN, H, W), dtype=jnp.float32)

    def conv_init(k, co, ci):
        fan_in = ci * 9
        bound = 1.0 / jnp.sqrt(jnp.float32(fan_in))
        return jax.random.uniform(k, (co, ci, 3, 3), jnp.float32, -bound, bound)

    w1 = conv_init(ks[1], C_MID, C_IN)
    w2 = conv_init(ks[2], C_OUT, C_MID)

    gamma1 = jax.random.uniform(ks[3], (C_MID,), jnp.float32, 0.5, 1.5)
    beta1 = 0.1 * jax.random.normal(ks[4], (C_MID,), dtype=jnp.float32)
    mean1 = 0.1 * jax.random.normal(ks[5], (C_MID,), dtype=jnp.float32)
    var1 = jax.random.uniform(ks[6], (C_MID,), jnp.float32, 0.5, 1.5)

    gamma2 = jax.random.uniform(ks[7], (C_OUT,), jnp.float32, 0.5, 1.5)
    beta2 = 0.1 * jax.random.normal(ks[8], (C_OUT,), dtype=jnp.float32)
    mean2 = 0.1 * jax.random.normal(ks[9], (C_OUT,), dtype=jnp.float32)
    var2 = jax.random.uniform(ks[10], (C_OUT,), jnp.float32, 0.5, 1.5)

    out = double_conv_forward(x, w1, gamma1, beta1, mean1, var1,
                              w2, gamma2, beta2, mean2, var2)
    jax.block_until_ready(out)

    ref = _reference(x, w1, gamma1, beta1, mean1, var1,
                     w2, gamma2, beta2, mean2, var2)
    assert out.shape == (N, C_OUT, H, W)
    assert jnp.allclose(out, ref, atol=1e-4, rtol=1e-4), (
        float(jnp.max(jnp.abs(out - ref))))

    print("KERNEL_OK")
</pallas_src>

<mosaic_0001>
module attributes {stable_mosaic.version = 11 : i64} {
  func.func @kernel(%arg0: i32, %arg1: memref<1x4x512xf32, #tpu.memory_space<vmem>>, %arg2: memref<9x512xf32, #tpu.memory_space<vmem>>, %arg3: memref<4x36xf32, #tpu.memory_space<vmem>>, %arg4: memref<4x1xf32, #tpu.memory_space<vmem>>, %arg5: memref<4x1xf32, #tpu.memory_space<vmem>>, %arg6: memref<4x36xf32, #tpu.memory_space<vmem>>, %arg7: memref<4x1xf32, #tpu.memory_space<vmem>>, %arg8: memref<4x1xf32, #tpu.memory_space<vmem>>, %arg9: memref<1x4x512xf32, #tpu.memory_space<vmem>>) attributes {dimension_semantics = [#tpu.dimension_semantics<parallel>], iteration_bounds = array<i64: 1>, scalar_prefetch = 0 : i64, scratch_operands = 0 : i64, tpu.core_type = #tpu.core_type<tc>, window_params = [{transform_indices = @transform_0, window_bounds = array<i64: 1, 4, 512>}, {pipeline_mode = #tpu.pipeline_mode<synchronous>, transform_indices = @transform_1, window_bounds = array<i64: 9, 512>}, {pipeline_mode = #tpu.pipeline_mode<synchronous>, transform_indices = @transform_2, window_bounds = array<i64: 4, 36>}, {pipeline_mode = #tpu.pipeline_mode<synchronous>, transform_indices = @transform_3, window_bounds = array<i64: 4, 1>}, {pipeline_mode = #tpu.pipeline_mode<synchronous>, transform_indices = @transform_4, window_bounds = array<i64: 4, 1>}, {pipeline_mode = #tpu.pipeline_mode<synchronous>, transform_indices = @transform_5, window_bounds = array<i64: 4, 36>}, {pipeline_mode = #tpu.pipeline_mode<synchronous>, transform_indices = @transform_6, window_bounds = array<i64: 4, 1>}, {pipeline_mode = #tpu.pipeline_mode<synchronous>, transform_indices = @transform_7, window_bounds = array<i64: 4, 1>}, {transform_indices = @transform_8, window_bounds = array<i64: 1, 4, 512>}]} {
    %c0 = arith.constant 0 : index
    %c0_0 = arith.constant 0 : index
    %c0_1 = arith.constant 0 : index
    %0 = vector.load %arg1[%c0, %c0_0, %c0_1] : memref<1x4x512xf32, #tpu.memory_space<vmem>>, vector<1x4x512xf32>
    %1 = vector.shape_cast %0 : vector<1x4x512xf32> to vector<4x512xf32>
    %c0_2 = arith.constant 0 : index
    %c0_3 = arith.constant 0 : index
    %2 = vector.load %arg2[%c0_2, %c0_3] : memref<9x512xf32, #tpu.memory_space<vmem>>, vector<9x512xf32>
    %c0_4 = arith.constant 0 : index
    %c0_5 = arith.constant 0 : index
    %3 = vector.load %arg3[%c0_4, %c0_5] : memref<4x36xf32, #tpu.memory_space<vmem>>, vector<4x36xf32>
    %c0_6 = arith.constant 0 : index
    %c0_7 = arith.constant 0 : index
    %4 = vector.load %arg6[%c0_6, %c0_7] : memref<4x36xf32, #tpu.memory_space<vmem>>, vector<4x36xf32>
    %cst = arith.constant 0.000000e+00 : f32
    %5 = vector.broadcast %cst : f32 to vector<4x512xf32>
    %c17_i32 = arith.constant 17 : i32
    %6 = tpu.dynamic_rotate %1 by %c17_i32 dim 1 : vector<4x512xf32>, i32 -> vector<4x512xf32>
    %7 = vector.extract_strided_slice %2 {offsets = [0, 0], sizes = [1, 512], strides = [1, 1]} : vector<9x512xf32> to vector<1x512xf32>
    %8 = vector.broadcast %7 : vector<1x512xf32> to vector<4x512xf32>
    %9 = arith.mulf %6, %8 : vector<4x512xf32>
    %10 = vector.extract_strided_slice %3 {offsets = [0, 0], sizes = [4, 1], strides = [1, 1]} : vector<4x36xf32> to vector<4x1xf32>
    %11 = vector.extract_strided_slice %9 {offsets = [0, 0], sizes = [1, 512], strides = [1, 1]} : vector<4x512xf32> to vector<1x512xf32>
    %12 = vector.broadcast %10 : vector<4x1xf32> to vector<4x512xf32>
    %13 = vector.broadcast %11 : vector<1x512xf32> to vector<4x512xf32>
    %14 = arith.mulf %12, %13 : vector<4x512xf32>
    %15 = arith.addf %5, %14 : vector<4x512xf32>
    %16 = vector.extract_strided_slice %3 {offsets = [0, 1], sizes = [4, 1], strides = [1, 1]} : vector<4x36xf32> to vector<4x1xf32>
    %17 = vector.extract_strided_slice %9 {offsets = [1, 0], sizes = [1, 512], strides = [1, 1]} : vector<4x512xf32> to vector<1x512xf32>
    %18 = vector.broadcast %16 : vector<4x1xf32> to vector<4x512xf32>
    %19 = vector.broadcast %17 : vector<1x512xf32> to vector<4x512xf32>
    %20 = arith.mulf %18, %19 : vector<4x512xf32>
    %21 = arith.addf %15, %20 : vector<4x512xf32>
    %22 = vector.extract_strided_slice %3 {offsets = [0, 2], sizes = [4, 1], strides = [1, 1]} : vector<4x36xf32> to vector<4x1xf32>
    %23 = vector.extract_strided_slice %9 {offsets = [2, 0], sizes = [1, 512], strides = [1, 1]} : vector<4x512xf32> to vector<1x512xf32>
    %24 = vector.broadcast %22 : vector<4x1xf32> to vector<4x512xf32>
    %25 = vector.broadcast %23 : vector<1x512xf32> to vector<4x512xf32>
    %26 = arith.mulf %24, %25 : vector<4x512xf32>
    %27 = arith.addf %21, %26 : vector<4x512xf32>
    %28 = vector.extract_strided_slice %3 {offsets = [0, 3], sizes = [4, 1], strides = [1, 1]} : vector<4x36xf32> to vector<4x1xf32>
    %29 = vector.extract_strided_slice %9 {offsets = [3, 0], sizes = [1, 512], strides = [1, 1]} : vector<4x512xf32> to vector<1x512xf32>
    %30 = vector.broadcast %28 : vector<4x1xf32> to vector<4x512xf32>
    %31 = vector.broadcast %29 : vector<1x512xf32> to vector<4x512xf32>
    %32 = arith.mulf %30, %31 : vector<4x512xf32>
    %33 = arith.addf %27, %32 : vector<4x512xf32>
    %c16_i32 = arith.constant 16 : i32
    %34 = tpu.dynamic_rotate %1 by %c16_i32 dim 1 : vector<4x512xf32>, i32 -> vector<4x512xf32>
    %35 = vector.extract_strided_slice %2 {offsets = [1, 0], sizes = [1, 512], strides = [1, 1]} : vector<9x512xf32> to vector<1x512xf32>
    %36 = vector.broadcast %35 : vector<1x512xf32> to vector<4x512xf32>
    %37 = arith.mulf %34, %36 : vector<4x512xf32>
    %38 = vector.extract_strided_slice %3 {offsets = [0, 4], sizes = [4, 1], strides = [1, 1]} : vector<4x36xf32> to vector<4x1xf32>
    %39 = vector.extract_strided_slice %37 {offsets = [0, 0], sizes = [1, 512], strides = [1, 1]} : vector<4x512xf32> to vector<1x512xf32>
    %40 = vector.broadcast %38 : vector<4x1xf32> to vector<4x512xf32>
    %41 = vector.broadcast %39 : vector<1x512xf32> to vector<4x512xf32>
    %42 = arith.mulf %40, %41 : vector<4x512xf32>
    %43 = arith.addf %33, %42 : vector<4x512xf32>
    %44 = vector.extract_strided_slice %3 {offsets = [0, 5], sizes = [4, 1], strides = [1, 1]} : vector<4x36xf32> to vector<4x1xf32>
    %45 = vector.extract_strided_slice %37 {offsets = [1, 0], sizes = [1, 512], strides = [1, 1]} : vector<4x512xf32> to vector<1x512xf32>
    %46 = vector.broadcast %44 : vector<4x1xf32> to vector<4x512xf32>
    %47 = vector.broadcast %45 : vector<1x512xf32> to vector<4x512xf32>
    %48 = arith.mulf %46, %47 : vector<4x512xf32>
    %49 = arith.addf %43, %48 : vector<4x512xf32>
    %50 = vector.extract_strided_slice %3 {offsets = [0, 6], sizes = [4, 1], strides = [1, 1]} : vector<4x36xf32> to vector<4x1xf32>
    %51 = vector.extract_strided_slice %37 {offsets = [2, 0], sizes = [1, 512], strides = [1, 1]} : vector<4x512xf32> to vector<1x512xf32>
    %52 = vector.broadcast %50 : vector<4x1xf32> to vector<4x512xf32>
    %53 = vector.broadcast %51 : vector<1x512xf32> to vector<4x512xf32>
    %54 = arith.mulf %52, %53 : vector<4x512xf32>
    %55 = arith.addf %49, %54 : vector<4x512xf32>
    %56 = vector.extract_strided_slice %3 {offsets = [0, 7], sizes = [4, 1], strides = [1, 1]} : vector<4x36xf32> to vector<4x1xf32>
    %57 = vector.extract_strided_slice %37 {offsets = [3, 0], sizes = [1, 512], strides = [1, 1]} : vector<4x512xf32> to vector<1x512xf32>
    %58 = vector.broadcast %56 : vector<4x1xf32> to vector<4x512xf32>
    %59 = vector.broadcast %57 : vector<1x512xf32> to vector<4x512xf32>
    %60 = arith.mulf %58, %59 : vector<4x512xf32>
    %61 = arith.addf %55, %60 : vector<4x512xf32>
    %c15_i32 = arith.constant 15 : i32
    %62 = tpu.dynamic_rotate %1 by %c15_i32 dim 1 : vector<4x512xf32>, i32 -> vector<4x512xf32>
    %63 = vector.extract_strided_slice %2 {offsets = [2, 0], sizes = [1, 512], strides = [1, 1]} : vector<9x512xf32> to vector<1x512xf32>
    %64 = vector.broadcast %63 : vector<1x512xf32> to vector<4x512xf32>
    %65 = arith.mulf %62, %64 : vector<4x512xf32>
    %66 = vector.extract_strided_slice %3 {offsets = [0, 8], sizes = [4, 1], strides = [1, 1]} : vector<4x36xf32> to vector<4x1xf32>
    %67 = vector.extract_strided_slice %65 {offsets = [0, 0], sizes = [1, 512], strides = [1, 1]} : vector<4x512xf32> to vector<1x512xf32>
    %68 = vector.broadcast %66 : vector<4x1xf32> to vector<4x512xf32>
    %69 = vector.broadcast %67 : vector<1x512xf32> to vector<4x512xf32>
    %70 = arith.mulf %68, %69 : vector<4x512xf32>
    %71 = arith.addf %61, %70 : vector<4x512xf32>
    %72 = vector.extract_strided_slice %3 {offsets = [0, 9], sizes = [4, 1], strides = [1, 1]} : vector<4x36xf32> to vector<4x1xf32>
    %73 = vector.extract_strided_slice %65 {offsets = [1, 0], sizes = [1, 512], strides = [1, 1]} : vector<4x512xf32> to vector<1x512xf32>
    %74 = vector.broadcast %72 : vector<4x1xf32> to vector<4x512xf32>
    %75 = vector.broadcast %73 : vector<1x512xf32> to vector<4x512xf32>
    %76 = arith.mulf %74, %75 : vector<4x512xf32>
    %77 = arith.addf %71, %76 : vector<4x512xf32>
    %78 = vector.extract_strided_slice %3 {offsets = [0, 10], sizes = [4, 1], strides = [1, 1]} : vector<4x36xf32> to vector<4x1xf32>
    %79 = vector.extract_strided_slice %65 {offsets = [2, 0], sizes = [1, 512], strides = [1, 1]} : vector<4x512xf32> to vector<1x512xf32>
    %80 = vector.broadcast %78 : vector<4x1xf32> to vector<4x512xf32>
    %81 = vector.broadcast %79 : vector<1x512xf32> to vector<4x512xf32>
    %82 = arith.mulf %80, %81 : vector<4x512xf32>
    %83 = arith.addf %77, %82 : vector<4x512xf32>
    %84 = vector.extract_strided_slice %3 {offsets = [0, 11], sizes = [4, 1], strides = [1, 1]} : vector<4x36xf32> to vector<4x1xf32>
    %85 = vector.extract_strided_slice %65 {offsets = [3, 0], sizes = [1, 512], strides = [1, 1]} : vector<4x512xf32> to vector<1x512xf32>
    %86 = vector.broadcast %84 : vector<4x1xf32> to vector<4x512xf32>
    %87 = vector.broadcast %85 : vector<1x512xf32> to vector<4x512xf32>
    %88 = arith.mulf %86, %87 : vector<4x512xf32>
    %89 = arith.addf %83, %88 : vector<4x512xf32>
    %c1_i32 = arith.constant 1 : i32
    %90 = tpu.dynamic_rotate %1 by %c1_i32 dim 1 : vector<4x512xf32>, i32 -> vector<4x512xf32>
    %91 = vector.extract_strided_slice %2 {offsets = [3, 0], sizes = [1, 512], strides = [1, 1]} : vector<9x512xf32> to vector<1x512xf32>
    %92 = vector.broadcast %91 : vector<1x512xf32> to vector<4x512xf32>
    %93 = arith.mulf %90, %92 : vector<4x512xf32>
    %94 = vector.extract_strided_slice %3 {offsets = [0, 12], sizes = [4, 1], strides = [1, 1]} : vector<4x36xf32> to vector<4x1xf32>
    %95 = vector.extract_strided_slice %93 {offsets = [0, 0], sizes = [1, 512], strides = [1, 1]} : vector<4x512xf32> to vector<1x512xf32>
    %96 = vector.broadcast %94 : vector<4x1xf32> to vector<4x512xf32>
    %97 = vector.broadcast %95 : vector<1x512xf32> to vector<4x512xf32>
    %98 = arith.mulf %96, %97 : vector<4x512xf32>
    %99 = arith.addf %89, %98 : vector<4x512xf32>
    %100 = vector.extract_strided_slice %3 {offsets = [0, 13], sizes = [4, 1], strides = [1, 1]} : vector<4x36xf32> to vector<4x1xf32>
    %101 = vector.extract_strided_slice %93 {offsets = [1, 0], sizes = [1, 512], strides = [1, 1]} : vector<4x512xf32> to vector<1x512xf32>
    %102 = vector.broadcast %100 : vector<4x1xf32> to vector<4x512xf32>
    %103 = vector.broadcast %101 : vector<1x512xf32> to vector<4x512xf32>
    %104 = arith.mulf %102, %103 : vector<4x512xf32>
    %105 = arith.addf %99, %104 : vector<4x512xf32>
    %106 = vector.extract_strided_slice %3 {offsets = [0, 14], sizes = [4, 1], strides = [1, 1]} : vector<4x36xf32> to vector<4x1xf32>
    %107 = vector.extract_strided_slice %93 {offsets = [2, 0], sizes = [1, 512], strides = [1, 1]} : vector<4x512xf32> to vector<1x512xf32>
    %108 = vector.broadcast %106 : vector<4x1xf32> to vector<4x512xf32>
    %109 = vector.broadcast %107 : vector<1x512xf32> to vector<4x512xf32>
    %110 = arith.mulf %108, %109 : vector<4x512xf32>
    %111 = arith.addf %105, %110 : vector<4x512xf32>
    %112 = vector.extract_strided_slice %3 {offsets = [0, 15], sizes = [4, 1], strides = [1, 1]} : vector<4x36xf32> to vector<4x1xf32>
    %113 = vector.extract_strided_slice %93 {offsets = [3, 0], sizes = [1, 512], strides = [1, 1]} : vector<4x512xf32> to vector<1x512xf32>
    %114 = vector.broadcast %112 : vector<4x1xf32> to vector<4x512xf32>
    %115 = vector.broadcast %113 : vector<1x512xf32> to vector<4x512xf32>
    %116 = arith.mulf %114, %115 : vector<4x512xf32>
    %117 = arith.addf %111, %116 : vector<4x512xf32>
    %118 = vector.extract_strided_slice %3 {offsets = [0, 16], sizes = [4, 1], strides = [1, 1]} : vector<4x36xf32> to vector<4x1xf32>
    %119 = vector.extract_strided_slice %1 {offsets = [0, 0], sizes = [1, 512], strides = [1, 1]} : vector<4x512xf32> to vector<1x512xf32>
    %120 = vector.broadcast %118 : vector<4x1xf32> to vector<4x512xf32>
    %121 = vector.broadcast %119 : vector<1x512xf32> to vector<4x512xf32>
    %122 = arith.mulf %120, %121 : vector<4x512xf32>
    %123 = arith.addf %117, %122 : vector<4x512xf32>
    %124 = vector.extract_strided_slice %3 {offsets = [0, 17], sizes = [4, 1], strides = [1, 1]} : vector<4x36xf32> to vector<4x1xf32>
    %125 = vector.extract_strided_slice %1 {offsets = [1, 0], sizes = [1, 512], strides = [1, 1]} : vector<4x512xf32> to vector<1x512xf32>
    %126 = vector.broadcast %124 : vector<4x1xf32> to vector<4x512xf32>
    %127 = vector.broadcast %125 : vector<1x512xf32> to vector<4x512xf32>
    %128 = arith.mulf %126, %127 : vector<4x512xf32>
    %129 = arith.addf %123, %128 : vector<4x512xf32>
    %130 = vector.extract_strided_slice %3 {offsets = [0, 18], sizes = [4, 1], strides = [1, 1]} : vector<4x36xf32> to vector<4x1xf32>
    %131 = vector.extract_strided_slice %1 {offsets = [2, 0], sizes = [1, 512], strides = [1, 1]} : vector<4x512xf32> to vector<1x512xf32>
    %132 = vector.broadcast %130 : vector<4x1xf32> to vector<4x512xf32>
    %133 = vector.broadcast %131 : vector<1x512xf32> to vector<4x512xf32>
    %134 = arith.mulf %132, %133 : vector<4x512xf32>
    %135 = arith.addf %129, %134 : vector<4x512xf32>
    %136 = vector.extract_strided_slice %3 {offsets = [0, 19], sizes = [4, 1], strides = [1, 1]} : vector<4x36xf32> to vector<4x1xf32>
    %137 = vector.extract_strided_slice %1 {offsets = [3, 0], sizes = [1, 512], strides = [1, 1]} : vector<4x512xf32> to vector<1x512xf32>
    %138 = vector.broadcast %136 : vector<4x1xf32> to vector<4x512xf32>
    %139 = vector.broadcast %137 : vector<1x512xf32> to vector<4x512xf32>
    %140 = arith.mulf %138, %139 : vector<4x512xf32>
    %141 = arith.addf %135, %140 : vector<4x512xf32>
    %c511_i32 = arith.constant 511 : i32
    %142 = tpu.dynamic_rotate %1 by %c511_i32 dim 1 : vector<4x512xf32>, i32 -> vector<4x512xf32>
    %143 = vector.extract_strided_slice %2 {offsets = [5, 0], sizes = [1, 512], strides = [1, 1]} : vector<9x512xf32> to vector<1x512xf32>
    %144 = vector.broadcast %143 : vector<1x512xf32> to vector<4x512xf32>
    %145 = arith.mulf %142, %144 : vector<4x512xf32>
    %146 = vector.extract_strided_slice %3 {offsets = [0, 20], sizes = [4, 1], strides = [1, 1]} : vector<4x36xf32> to vector<4x1xf32>
    %147 = vector.extract_strided_slice %145 {offsets = [0, 0], sizes = [1, 512], strides = [1, 1]} : vector<4x512xf32> to vector<1x512xf32>
    %148 = vector.broadcast %146 : vector<4x1xf32> to vector<4x512xf32>
    %149 = vector.broadcast %147 : vector<1x512xf32> to vector<4x512xf32>
    %150 = arith.mulf %148, %149 : vector<4x512xf32>
    %151 = arith.addf %141, %150 : vector<4x512xf32>
    %152 = vector.extract_strided_slice %3 {offsets = [0, 21], sizes = [4, 1], strides = [1, 1]} : vector<4x36xf32> to vector<4x1xf32>
    %153 = vector.extract_strided_slice %145 {offsets = [1, 0], sizes = [1, 512], strides = [1, 1]} : vector<4x512xf32> to vector<1x512xf32>
    %154 = vector.broadcast %152 : vector<4x1xf32> to vector<4x512xf32>
    %155 = vector.broadcast %153 : vector<1x512xf32> to vector<4x512xf32>
    %156 = arith.mulf %154, %155 : vector<4x512xf32>
    %157 = arith.addf %151, %156 : vector<4x512xf32>
    %158 = vector.extract_strided_slice %3 {offsets = [0, 22], sizes = [4, 1], strides = [1, 1]} : vector<4x36xf32> to vector<4x1xf32>
    %159 = vector.extract_strided_slice %145 {offsets = [2, 0], sizes = [1, 512], strides = [1, 1]} : vector<4x512xf32> to vector<1x512xf32>
    %160 = vector.broadcast %158 : vector<4x1xf32> to vector<4x512xf32>
    %161 = vector.broadcast %159 : vector<1x512xf32> to vector<4x512xf32>
    %162 = arith.mulf %160, %161 : vector<4x512xf32>
    %163 = arith.addf %157, %162 : vector<4x512xf32>
    %164 = vector.extract_strided_slice %3 {offsets = [0, 23], sizes = [4, 1], strides = [1, 1]} : vector<4x36xf32> to vector<4x1xf32>
    %165 = vector.extract_strided_slice %145 {offsets = [3, 0], sizes = [1, 512], strides = [1, 1]} : vector<4x512xf32> to vector<1x512xf32>
    %166 = vector.broadcast %164 : vector<4x1xf32> to vector<4x512xf32>
    %167 = vector.broadcast %165 : vector<1x512xf32> to vector<4x512xf32>
    %168 = arith.mulf %166, %167 : vector<4x512xf32>
    %169 = arith.addf %163, %168 : vector<4x512xf32>
    %c497_i32 = arith.constant 497 : i32
    %170 = tpu.dynamic_rotate %1 by %c497_i32 dim 1 : vector<4x512xf32>, i32 -> vector<4x512xf32>
    %171 = vector.extract_strided_slice %2 {offsets = [6, 0], sizes = [1, 512], strides = [1, 1]} : vector<9x512xf32> to vector<1x512xf32>
    %172 = vector.broadcast %171 : vector<1x512xf32> to vector<4x512xf32>
    %173 = arith.mulf %170, %172 : vector<4x512xf32>
    %174 = vector.extract_strided_slice %3 {offsets = [0, 24], sizes = [4, 1], strides = [1, 1]} : vector<4x36xf32> to vector<4x1xf32>
    %175 = vector.extract_strided_slice %173 {offsets = [0, 0], sizes = [1, 512], strides = [1, 1]} : vector<4x512xf32> to vector<1x512xf32>
    %176 = vector.broadcast %174 : vector<4x1xf32> to vector<4x512xf32>
    %177 = vector.broadcast %175 : vector<1x512xf32> to vector<4x512xf32>
    %178 = arith.mulf %176, %177 : vector<4x512xf32>
    %179 = arith.addf %169, %178 : vector<4x512xf32>
    %180 = vector.extract_strided_slice %3 {offsets = [0, 25], sizes = [4, 1], strides = [1, 1]} : vector<4x36xf32> to vector<4x1xf32>
    %181 = vector.extract_strided_slice %173 {offsets = [1, 0], sizes = [1, 512], strides = [1, 1]} : vector<4x512xf32> to vector<1x512xf32>
    %182 = vector.broadcast %180 : vector<4x1xf32> to vector<4x512xf32>
    %183 = vector.broadcast %181 : vector<1x512xf32> to vector<4x512xf32>
    %184 = arith.mulf %182, %183 : vector<4x512xf32>
    %185 = arith.addf %179, %184 : vector<4x512xf32>
    %186 = vector.extract_strided_slice %3 {offsets = [0, 26], sizes = [4, 1], strides = [1, 1]} : vector<4x36xf32> to vector<4x1xf32>
    %187 = vector.extract_strided_slice %173 {offsets = [2, 0], sizes = [1, 512], strides = [1, 1]} : vector<4x512xf32> to vector<1x512xf32>
    %188 = vector.broadcast %186 : vector<4x1xf32> to vector<4x512xf32>
    %189 = vector.broadcast %187 : vector<1x512xf32> to vector<4x512xf32>
    %190 = arith.mulf %188, %189 : vector<4x512xf32>
    %191 = arith.addf %185, %190 : vector<4x512xf32>
    %192 = vector.extract_strided_slice %3 {offsets = [0, 27], sizes = [4, 1], strides = [1, 1]} : vector<4x36xf32> to vector<4x1xf32>
    %193 = vector.extract_strided_slice %173 {offsets = [3, 0], sizes = [1, 512], strides = [1, 1]} : vector<4x512xf32> to vector<1x512xf32>
    %194 = vector.broadcast %192 : vector<4x1xf32> to vector<4x512xf32>
    %195 = vector.broadcast %193 : vector<1x512xf32> to vector<4x512xf32>
    %196 = arith.mulf %194, %195 : vector<4x512xf32>
    %197 = arith.addf %191, %196 : vector<4x512xf32>
    %c496_i32 = arith.constant 496 : i32
    %198 = tpu.dynamic_rotate %1 by %c496_i32 dim 1 : vector<4x512xf32>, i32 -> vector<4x512xf32>
    %199 = vector.extract_strided_slice %2 {offsets = [7, 0], sizes = [1, 512], strides = [1, 1]} : vector<9x512xf32> to vector<1x512xf32>
    %200 = vector.broadcast %199 : vector<1x512xf32> to vector<4x512xf32>
    %201 = arith.mulf %198, %200 : vector<4x512xf32>
    %202 = vector.extract_strided_slice %3 {offsets = [0, 28], sizes = [4, 1], strides = [1, 1]} : vector<4x36xf32> to vector<4x1xf32>
    %203 = vector.extract_strided_slice %201 {offsets = [0, 0], sizes = [1, 512], strides = [1, 1]} : vector<4x512xf32> to vector<1x512xf32>
    %204 = vector.broadcast %202 : vector<4x1xf32> to vector<4x512xf32>
    %205 = vector.broadcast %203 : vector<1x512xf32> to vector<4x512xf32>
    %206 = arith.mulf %204, %205 : vector<4x512xf32>
    %207 = arith.addf %197, %206 : vector<4x512xf32>
    %208 = vector.extract_strided_slice %3 {offsets = [0, 29], sizes = [4, 1], strides = [1, 1]} : vector<4x36xf32> to vector<4x1xf32>
    %209 = vector.extract_strided_slice %201 {offsets = [1, 0], sizes = [1, 512], strides = [1, 1]} : vector<4x512xf32> to vector<1x512xf32>
    %210 = vector.broadcast %208 : vector<4x1xf32> to vector<4x512xf32>
    %211 = vector.broadcast %209 : vector<1x512xf32> to vector<4x512xf32>
    %212 = arith.mulf %210, %211 : vector<4x512xf32>
    %213 = arith.addf %207, %212 : vector<4x512xf32>
    %214 = vector.extract_strided_slice %3 {offsets = [0, 30], sizes = [4, 1], strides = [1, 1]} : vector<4x36xf32> to vector<4x1xf32>
    %215 = vector.extract_strided_slice %201 {offsets = [2, 0], sizes = [1, 512], strides = [1, 1]} : vector<4x512xf32> to vector<1x512xf32>
    %216 = vector.broadcast %214 : vector<4x1xf32> to vector<4x512xf32>
    %217 = vector.broadcast %215 : vector<1x512xf32> to vector<4x512xf32>
    %218 = arith.mulf %216, %217 : vector<4x512xf32>
    %219 = arith.addf %213, %218 : vector<4x512xf32>
    %220 = vector.extract_strided_slice %3 {offsets = [0, 31], sizes = [4, 1], strides = [1, 1]} : vector<4x36xf32> to vector<4x1xf32>
    %221 = vector.extract_strided_slice %201 {offsets = [3, 0], sizes = [1, 512], strides = [1, 1]} : vector<4x512xf32> to vector<1x512xf32>
    %222 = vector.broadcast %220 : vector<4x1xf32> to vector<4x512xf32>
    %223 = vector.broadcast %221 : vector<1x512xf32> to vector<4x512xf32>
    %224 = arith.mulf %222, %223 : vector<4x512xf32>
    %225 = arith.addf %219, %224 : vector<4x512xf32>
    %c495_i32 = arith.constant 495 : i32
    %226 = tpu.dynamic_rotate %1 by %c495_i32 dim 1 : vector<4x512xf32>, i32 -> vector<4x512xf32>
    %227 = vector.extract_strided_slice %2 {offsets = [8, 0], sizes = [1, 512], strides = [1, 1]} : vector<9x512xf32> to vector<1x512xf32>
    %228 = vector.broadcast %227 : vector<1x512xf32> to vector<4x512xf32>
    %229 = arith.mulf %226, %228 : vector<4x512xf32>
    %230 = vector.extract_strided_slice %3 {offsets = [0, 32], sizes = [4, 1], strides = [1, 1]} : vector<4x36xf32> to vector<4x1xf32>
    %231 = vector.extract_strided_slice %229 {offsets = [0, 0], sizes = [1, 512], strides = [1, 1]} : vector<4x512xf32> to vector<1x512xf32>
    %232 = vector.broadcast %230 : vector<4x1xf32> to vector<4x512xf32>
    %233 = vector.broadcast %231 : vector<1x512xf32> to vector<4x512xf32>
    %234 = arith.mulf %232, %233 : vector<4x512xf32>
    %235 = arith.addf %225, %234 : vector<4x512xf32>
    %236 = vector.extract_strided_slice %3 {offsets = [0, 33], sizes = [4, 1], strides = [1, 1]} : vector<4x36xf32> to vector<4x1xf32>
    %237 = vector.extract_strided_slice %229 {offsets = [1, 0], sizes = [1, 512], strides = [1, 1]} : vector<4x512xf32> to vector<1x512xf32>
    %238 = vector.broadcast %236 : vector<4x1xf32> to vector<4x512xf32>
    %239 = vector.broadcast %237 : vector<1x512xf32> to vector<4x512xf32>
    %240 = arith.mulf %238, %239 : vector<4x512xf32>
    %241 = arith.addf %235, %240 : vector<4x512xf32>
    %242 = vector.extract_strided_slice %3 {offsets = [0, 34], sizes = [4, 1], strides = [1, 1]} : vector<4x36xf32> to vector<4x1xf32>
    %243 = vector.extract_strided_slice %229 {offsets = [2, 0], sizes = [1, 512], strides = [1, 1]} : vector<4x512xf32> to vector<1x512xf32>
    %244 = vector.broadcast %242 : vector<4x1xf32> to vector<4x512xf32>
    %245 = vector.broadcast %243 : vector<1x512xf32> to vector<4x512xf32>
    %246 = arith.mulf %244, %245 : vector<4x512xf32>
    %247 = arith.addf %241, %246 : vector<4x512xf32>
    %248 = vector.extract_strided_slice %3 {offsets = [0, 35], sizes = [4, 1], strides = [1, 1]} : vector<4x36xf32> to vector<4x1xf32>
    %249 = vector.extract_strided_slice %229 {offsets = [3, 0], sizes = [1, 512], strides = [1, 1]} : vector<4x512xf32> to vector<1x512xf32>
    %250 = vector.broadcast %248 : vector<4x1xf32> to vector<4x512xf32>
    %251 = vector.broadcast %249 : vector<1x512xf32> to vector<4x512xf32>
    %252 = arith.mulf %250, %251 : vector<4x512xf32>
    %253 = arith.addf %247, %252 : vector<4x512xf32>
    %c0_8 = arith.constant 0 : index
    %c0_9 = arith.constant 0 : index
    %254 = vector.load %arg4[%c0_8, %c0_9] : memref<4x1xf32, #tpu.memory_space<vmem>>, vector<4x1xf32>
    %255 = vector.broadcast %254 : vector<4x1xf32> to vector<4x512xf32>
    %256 = arith.mulf %253, %255 : vector<4x512xf32>
    %c0_10 = arith.constant 0 : index
    %c0_11 = arith.constant 0 : index
    %257 = vector.load %arg5[%c0_10, %c0_11] : memref<4x1xf32, #tpu.memory_space<vmem>>, vector<4x1xf32>
    %258 = vector.broadcast %257 : vector<4x1xf32> to vector<4x512xf32>
    %259 = arith.addf %256, %258 : vector<4x512xf32>
    %cst_12 = arith.constant 0.000000e+00 : f32
    %260 = vector.broadcast %cst_12 : f32 to vector<4x512xf32>
    %261 = arith.maximumf %259, %260 : vector<4x512xf32>
    %cst_13 = arith.constant 0.000000e+00 : f32
    %262 = vector.broadcast %cst_13 : f32 to vector<4x512xf32>
    %c17_i32_14 = arith.constant 17 : i32
    %263 = tpu.dynamic_rotate %261 by %c17_i32_14 dim 1 : vector<4x512xf32>, i32 -> vector<4x512xf32>
    %264 = vector.extract_strided_slice %2 {offsets = [0, 0], sizes = [1, 512], strides = [1, 1]} : vector<9x512xf32> to vector<1x512xf32>
    %265 = vector.broadcast %264 : vector<1x512xf32> to vector<4x512xf32>
    %266 = arith.mulf %263, %265 : vector<4x512xf32>
    %267 = vector.extract_strided_slice %4 {offsets = [0, 0], sizes = [4, 1], strides = [1, 1]} : vector<4x36xf32> to vector<4x1xf32>
    %268 = vector.extract_strided_slice %266 {offsets = [0, 0], sizes = [1, 512], strides = [1, 1]} : vector<4x512xf32> to vector<1x512xf32>
    %269 = vector.broadcast %267 : vector<4x1xf32> to vector<4x512xf32>
    %270 = vector.broadcast %268 : vector<1x512xf32> to vector<4x512xf32>
    %271 = arith.mulf %269, %270 : vector<4x512xf32>
    %272 = arith.addf %262, %271 : vector<4x512xf32>
    %273 = vector.extract_strided_slice %4 {offsets = [0, 1], sizes = [4, 1], strides = [1, 1]} : vector<4x36xf32> to vector<4x1xf32>
    %274 = vector.extract_strided_slice %266 {offsets = [1, 0], sizes = [1, 512], strides = [1, 1]} : vector<4x512xf32> to vector<1x512xf32>
    %275 = vector.broadcast %273 : vector<4x1xf32> to vector<4x512xf32>
    %276 = vector.broadcast %274 : vector<1x512xf32> to vector<4x512xf32>
    %277 = arith.mulf %275, %276 : vector<4x512xf32>
    %278 = arith.addf %272, %277 : vector<4x512xf32>
    %279 = vector.extract_strided_slice %4 {offsets = [0, 2], sizes = [4, 1], strides = [1, 1]} : vector<4x36xf32> to vector<4x1xf32>
    %280 = vector.extract_strided_slice %266 {offsets = [2, 0], sizes = [1, 512], strides = [1, 1]} : vector<4x512xf32> to vector<1x512xf32>
    %281 = vector.broadcast %279 : vector<4x1xf32> to vector<4x512xf32>
    %282 = vector.broadcast %280 : vector<1x512xf32> to vector<4x512xf32>
    %283 = arith.mulf %281, %282 : vector<4x512xf32>
    %284 = arith.addf %278, %283 : vector<4x512xf32>
    %285 = vector.extract_strided_slice %4 {offsets = [0, 3], sizes = [4, 1], strides = [1, 1]} : vector<4x36xf32> to vector<4x1xf32>
    %286 = vector.extract_strided_slice %266 {offsets = [3, 0], sizes = [1, 512], strides = [1, 1]} : vector<4x512xf32> to vector<1x512xf32>
    %287 = vector.broadcast %285 : vector<4x1xf32> to vector<4x512xf32>
    %288 = vector.broadcast %286 : vector<1x512xf32> to vector<4x512xf32>
    %289 = arith.mulf %287, %288 : vector<4x512xf32>
    %290 = arith.addf %284, %289 : vector<4x512xf32>
    %c16_i32_15 = arith.constant 16 : i32
    %291 = tpu.dynamic_rotate %261 by %c16_i32_15 dim 1 : vector<4x512xf32>, i32 -> vector<4x512xf32>
    %292 = vector.extract_strided_slice %2 {offsets = [1, 0], sizes = [1, 512], strides = [1, 1]} : vector<9x512xf32> to vector<1x512xf32>
    %293 = vector.broadcast %292 : vector<1x512xf32> to vector<4x512xf32>
    %294 = arith.mulf %291, %293 : vector<4x512xf32>
    %295 = vector.extract_strided_slice %4 {offsets = [0, 4], sizes = [4, 1], strides = [1, 1]} : vector<4x36xf32> to vector<4x1xf32>
    %296 = vector.extract_strided_slice %294 {offsets = [0, 0], sizes = [1, 512], strides = [1, 1]} : vector<4x512xf32> to vector<1x512xf32>
    %297 = vector.broadcast %295 : vector<4x1xf32> to vector<4x512xf32>
    %298 = vector.broadcast %296 : vector<1x512xf32> to vector<4x512xf32>
    %299 = arith.mulf %297, %298 : vector<4x512xf32>
    %300 = arith.addf %290, %299 : vector<4x512xf32>
    %301 = vector.extract_strided_slice %4 {offsets = [0, 5], sizes = [4, 1], strides = [1, 1]} : vector<4x36xf32> to vector<4x1xf32>
    %302 = vector.extract_strided_slice %294 {offsets = [1, 0], sizes = [1, 512], strides = [1, 1]} : vector<4x512xf32> to vector<1x512xf32>
    %303 = vector.broadcast %301 : vector<4x1xf32> to vector<4x512xf32>
    %304 = vector.broadcast %302 : vector<1x512xf32> to vector<4x512xf32>
    %305 = arith.mulf %303, %304 : vector<4x512xf32>
    %306 = arith.addf %300, %305 : vector<4x512xf32>
    %307 = vector.extract_strided_slice %4 {offsets = [0, 6], sizes = [4, 1], strides = [1, 1]} : vector<4x36xf32> to vector<4x1xf32>
    %308 = vector.extract_strided_slice %294 {offsets = [2, 0], sizes = [1, 512], strides = [1, 1]} : vector<4x512xf32> to vector<1x512xf32>
    %309 = vector.broadcast %307 : vector<4x1xf32> to vector<4x512xf32>
    %310 = vector.broadcast %308 : vector<1x512xf32> to vector<4x512xf32>
    %311 = arith.mulf %309, %310 : vector<4x512xf32>
    %312 = arith.addf %306, %311 : vector<4x512xf32>
    %313 = vector.extract_strided_slice %4 {offsets = [0, 7], sizes = [4, 1], strides = [1, 1]} : vector<4x36xf32> to vector<4x1xf32>
    %314 = vector.extract_strided_slice %294 {offsets = [3, 0], sizes = [1, 512], strides = [1, 1]} : vector<4x512xf32> to vector<1x512xf32>
    %315 = vector.broadcast %313 : vector<4x1xf32> to vector<4x512xf32>
    %316 = vector.broadcast %314 : vector<1x512xf32> to vector<4x512xf32>
    %317 = arith.mulf %315, %316 : vector<4x512xf32>
    %318 = arith.addf %312, %317 : vector<4x512xf32>
    %c15_i32_16 = arith.constant 15 : i32
    %319 = tpu.dynamic_rotate %261 by %c15_i32_16 dim 1 : vector<4x512xf32>, i32 -> vector<4x512xf32>
    %320 = vector.extract_strided_slice %2 {offsets = [2, 0], sizes = [1, 512], strides = [1, 1]} : vector<9x512xf32> to vector<1x512xf32>
    %321 = vector.broadcast %320 : vector<1x512xf32> to vector<4x512xf32>
    %322 = arith.mulf %319, %321 : vector<4x512xf32>
    %323 = vector.extract_strided_slice %4 {offsets = [0, 8], sizes = [4, 1], strides = [1, 1]} : vector<4x36xf32> to vector<4x1xf32>
    %324 = vector.extract_strided_slice %322 {offsets = [0, 0], sizes = [1, 512], strides = [1, 1]} : vector<4x512xf32> to vector<1x512xf32>
    %325 = vector.broadcast %323 : vector<4x1xf32> to vector<4x512xf32>
    %326 = vector.broadcast %324 : vector<1x512xf32> to vector<4x512xf32>
    %327 = arith.mulf %325, %326 : vector<4x512xf32>
    %328 = arith.addf %318, %327 : vector<4x512xf32>
    %329 = vector.extract_strided_slice %4 {offsets = [0, 9], sizes = [4, 1], strides = [1, 1]} : vector<4x36xf32> to vector<4x1xf32>
    %330 = vector.extract_strided_slice %322 {offsets = [1, 0], sizes = [1, 512], strides = [1, 1]} : vector<4x512xf32> to vector<1x512xf32>
    %331 = vector.broadcast %329 : vector<4x1xf32> to vector<4x512xf32>
    %332 = vector.broadcast %330 : vector<1x512xf32> to vector<4x512xf32>
    %333 = arith.mulf %331, %332 : vector<4x512xf32>
    %334 = arith.addf %328, %333 : vector<4x512xf32>
    %335 = vector.extract_strided_slice %4 {offsets = [0, 10], sizes = [4, 1], strides = [1, 1]} : vector<4x36xf32> to vector<4x1xf32>
    %336 = vector.extract_strided_slice %322 {offsets = [2, 0], sizes = [1, 512], strides = [1, 1]} : vector<4x512xf32> to vector<1x512xf32>
    %337 = vector.broadcast %335 : vector<4x1xf32> to vector<4x512xf32>
    %338 = vector.broadcast %336 : vector<1x512xf32> to vector<4x512xf32>
    %339 = arith.mulf %337, %338 : vector<4x512xf32>
    %340 = arith.addf %334, %339 : vector<4x512xf32>
    %341 = vector.extract_strided_slice %4 {offsets = [0, 11], sizes = [4, 1], strides = [1, 1]} : vector<4x36xf32> to vector<4x1xf32>
    %342 = vector.extract_strided_slice %322 {offsets = [3, 0], sizes = [1, 512], strides = [1, 1]} : vector<4x512xf32> to vector<1x512xf32>
    %343 = vector.broadcast %341 : vector<4x1xf32> to vector<4x512xf32>
    %344 = vector.broadcast %342 : vector<1x512xf32> to vector<4x512xf32>
    %345 = arith.mulf %343, %344 : vector<4x512xf32>
    %346 = arith.addf %340, %345 : vector<4x512xf32>
    %c1_i32_17 = arith.constant 1 : i32
    %347 = tpu.dynamic_rotate %261 by %c1_i32_17 dim 1 : vector<4x512xf32>, i32 -> vector<4x512xf32>
    %348 = vector.extract_strided_slice %2 {offsets = [3, 0], sizes = [1, 512], strides = [1, 1]} : vector<9x512xf32> to vector<1x512xf32>
    %349 = vector.broadcast %348 : vector<1x512xf32> to vector<4x512xf32>
    %350 = arith.mulf %347, %349 : vector<4x512xf32>
    %351 = vector.extract_strided_slice %4 {offsets = [0, 12], sizes = [4, 1], strides = [1, 1]} : vector<4x36xf32> to vector<4x1xf32>
    %352 = vector.extract_strided_slice %350 {offsets = [0, 0], sizes = [1, 512], strides = [1, 1]} : vector<4x512xf32> to vector<1x512xf32>
    %353 = vector.broadcast %351 : vector<4x1xf32> to vector<4x512xf32>
    %354 = vector.broadcast %352 : vector<1x512xf32> to vector<4x512xf32>
    %355 = arith.mulf %353, %354 : vector<4x512xf32>
    %356 = arith.addf %346, %355 : vector<4x512xf32>
    %357 = vector.extract_strided_slice %4 {offsets = [0, 13], sizes = [4, 1], strides = [1, 1]} : vector<4x36xf32> to vector<4x1xf32>
    %358 = vector.extract_strided_slice %350 {offsets = [1, 0], sizes = [1, 512], strides = [1, 1]} : vector<4x512xf32> to vector<1x512xf32>
    %359 = vector.broadcast %357 : vector<4x1xf32> to vector<4x512xf32>
    %360 = vector.broadcast %358 : vector<1x512xf32> to vector<4x512xf32>
    %361 = arith.mulf %359, %360 : vector<4x512xf32>
    %362 = arith.addf %356, %361 : vector<4x512xf32>
    %363 = vector.extract_strided_slice %4 {offsets = [0, 14], sizes = [4, 1], strides = [1, 1]} : vector<4x36xf32> to vector<4x1xf32>
    %364 = vector.extract_strided_slice %350 {offsets = [2, 0], sizes = [1, 512], strides = [1, 1]} : vector<4x512xf32> to vector<1x512xf32>
    %365 = vector.broadcast %363 : vector<4x1xf32> to vector<4x512xf32>
    %366 = vector.broadcast %364 : vector<1x512xf32> to vector<4x512xf32>
    %367 = arith.mulf %365, %366 : vector<4x512xf32>
    %368 = arith.addf %362, %367 : vector<4x512xf32>
    %369 = vector.extract_strided_slice %4 {offsets = [0, 15], sizes = [4, 1], strides = [1, 1]} : vector<4x36xf32> to vector<4x1xf32>
    %370 = vector.extract_strided_slice %350 {offsets = [3, 0], sizes = [1, 512], strides = [1, 1]} : vector<4x512xf32> to vector<1x512xf32>
    %371 = vector.broadcast %369 : vector<4x1xf32> to vector<4x512xf32>
    %372 = vector.broadcast %370 : vector<1x512xf32> to vector<4x512xf32>
    %373 = arith.mulf %371, %372 : vector<4x512xf32>
    %374 = arith.addf %368, %373 : vector<4x512xf32>
    %375 = vector.extract_strided_slice %4 {offsets = [0, 16], sizes = [4, 1], strides = [1, 1]} : vector<4x36xf32> to vector<4x1xf32>
    %376 = vector.extract_strided_slice %261 {offsets = [0, 0], sizes = [1, 512], strides = [1, 1]} : vector<4x512xf32> to vector<1x512xf32>
    %377 = vector.broadcast %375 : vector<4x1xf32> to vector<4x512xf32>
    %378 = vector.broadcast %376 : vector<1x512xf32> to vector<4x512xf32>
    %379 = arith.mulf %377, %378 : vector<4x512xf32>
    %380 = arith.addf %374, %379 : vector<4x512xf32>
    %381 = vector.extract_strided_slice %4 {offsets = [0, 17], sizes = [4, 1], strides = [1, 1]} : vector<4x36xf32> to vector<4x1xf32>
    %382 = vector.extract_strided_slice %261 {offsets = [1, 0], sizes = [1, 512], strides = [1, 1]} : vector<4x512xf32> to vector<1x512xf32>
    %383 = vector.broadcast %381 : vector<4x1xf32> to vector<4x512xf32>
    %384 = vector.broadcast %382 : vector<1x512xf32> to vector<4x512xf32>
    %385 = arith.mulf %383, %384 : vector<4x512xf32>
    %386 = arith.addf %380, %385 : vector<4x512xf32>
    %387 = vector.extract_strided_slice %4 {offsets = [0, 18], sizes = [4, 1], strides = [1, 1]} : vector<4x36xf32> to vector<4x1xf32>
    %388 = vector.extract_strided_slice %261 {offsets = [2, 0], sizes = [1, 512], strides = [1, 1]} : vector<4x512xf32> to vector<1x512xf32>
    %389 = vector.broadcast %387 : vector<4x1xf32> to vector<4x512xf32>
    %390 = vector.broadcast %388 : vector<1x512xf32> to vector<4x512xf32>
    %391 = arith.mulf %389, %390 : vector<4x512xf32>
    %392 = arith.addf %386, %391 : vector<4x512xf32>
    %393 = vector.extract_strided_slice %4 {offsets = [0, 19], sizes = [4, 1], strides = [1, 1]} : vector<4x36xf32> to vector<4x1xf32>
    %394 = vector.extract_strided_slice %261 {offsets = [3, 0], sizes = [1, 512], strides = [1, 1]} : vector<4x512xf32> to vector<1x512xf32>
    %395 = vector.broadcast %393 : vector<4x1xf32> to vector<4x512xf32>
    %396 = vector.broadcast %394 : vector<1x512xf32> to vector<4x512xf32>
    %397 = arith.mulf %395, %396 : vector<4x512xf32>
    %398 = arith.addf %392, %397 : vector<4x512xf32>
    %c511_i32_18 = arith.constant 511 : i32
    %399 = tpu.dynamic_rotate %261 by %c511_i32_18 dim 1 : vector<4x512xf32>, i32 -> vector<4x512xf32>
    %400 = vector.extract_strided_slice %2 {offsets = [5, 0], sizes = [1, 512], strides = [1, 1]} : vector<9x512xf32> to vector<1x512xf32>
    %401 = vector.broadcast %400 : vector<1x512xf32> to vector<4x512xf32>
    %402 = arith.mulf %399, %401 : vector<4x512xf32>
    %403 = vector.extract_strided_slice %4 {offsets = [0, 20], sizes = [4, 1], strides = [1, 1]} : vector<4x36xf32> to vector<4x1xf32>
    %404 = vector.extract_strided_slice %402 {offsets = [0, 0], sizes = [1, 512], strides = [1, 1]} : vector<4x512xf32> to vector<1x512xf32>
    %405 = vector.broadcast %403 : vector<4x1xf32> to vector<4x512xf32>
    %406 = vector.broadcast %404 : vector<1x512xf32> to vector<4x512xf32>
    %407 = arith.mulf %405, %406 : vector<4x512xf32>
    %408 = arith.addf %398, %407 : vector<4x512xf32>
    %409 = vector.extract_strided_slice %4 {offsets = [0, 21], sizes = [4, 1], strides = [1, 1]} : vector<4x36xf32> to vector<4x1xf32>
    %410 = vector.extract_strided_slice %402 {offsets = [1, 0], sizes = [1, 512], strides = [1, 1]} : vector<4x512xf32> to vector<1x512xf32>
    %411 = vector.broadcast %409 : vector<4x1xf32> to vector<4x512xf32>
    %412 = vector.broadcast %410 : vector<1x512xf32> to vector<4x512xf32>
    %413 = arith.mulf %411, %412 : vector<4x512xf32>
    %414 = arith.addf %408, %413 : vector<4x512xf32>
    %415 = vector.extract_strided_slice %4 {offsets = [0, 22], sizes = [4, 1], strides = [1, 1]} : vector<4x36xf32> to vector<4x1xf32>
    %416 = vector.extract_strided_slice %402 {offsets = [2, 0], sizes = [1, 512], strides = [1, 1]} : vector<4x512xf32> to vector<1x512xf32>
    %417 = vector.broadcast %415 : vector<4x1xf32> to vector<4x512xf32>
    %418 = vector.broadcast %416 : vector<1x512xf32> to vector<4x512xf32>
    %419 = arith.mulf %417, %418 : vector<4x512xf32>
    %420 = arith.addf %414, %419 : vector<4x512xf32>
    %421 = vector.extract_strided_slice %4 {offsets = [0, 23], sizes = [4, 1], strides = [1, 1]} : vector<4x36xf32> to vector<4x1xf32>
    %422 = vector.extract_strided_slice %402 {offsets = [3, 0], sizes = [1, 512], strides = [1, 1]} : vector<4x512xf32> to vector<1x512xf32>
    %423 = vector.broadcast %421 : vector<4x1xf32> to vector<4x512xf32>
    %424 = vector.broadcast %422 : vector<1x512xf32> to vector<4x512xf32>
    %425 = arith.mulf %423, %424 : vector<4x512xf32>
    %426 = arith.addf %420, %425 : vector<4x512xf32>
    %c497_i32_19 = arith.constant 497 : i32
    %427 = tpu.dynamic_rotate %261 by %c497_i32_19 dim 1 : vector<4x512xf32>, i32 -> vector<4x512xf32>
    %428 = vector.extract_strided_slice %2 {offsets = [6, 0], sizes = [1, 512], strides = [1, 1]} : vector<9x512xf32> to vector<1x512xf32>
    %429 = vector.broadcast %428 : vector<1x512xf32> to vector<4x512xf32>
    %430 = arith.mulf %427, %429 : vector<4x512xf32>
    %431 = vector.extract_strided_slice %4 {offsets = [0, 24], sizes = [4, 1], strides = [1, 1]} : vector<4x36xf32> to vector<4x1xf32>
    %432 = vector.extract_strided_slice %430 {offsets = [0, 0], sizes = [1, 512], strides = [1, 1]} : vector<4x512xf32> to vector<1x512xf32>
    %433 = vector.broadcast %431 : vector<4x1xf32> to vector<4x512xf32>
    %434 = vector.broadcast %432 : vector<1x512xf32> to vector<4x512xf32>
    %435 = arith.mulf %433, %434 : vector<4x512xf32>
    %436 = arith.addf %426, %435 : vector<4x512xf32>
    %437 = vector.extract_strided_slice %4 {offsets = [0, 25], sizes = [4, 1], strides = [1, 1]} : vector<4x36xf32> to vector<4x1xf32>
    %438 = vector.extract_strided_slice %430 {offsets = [1, 0], sizes = [1, 512], strides = [1, 1]} : vector<4x512xf32> to vector<1x512xf32>
    %439 = vector.broadcast %437 : vector<4x1xf32> to vector<4x512xf32>
    %440 = vector.broadcast %438 : vector<1x512xf32> to vector<4x512xf32>
    %441 = arith.mulf %439, %440 : vector<4x512xf32>
    %442 = arith.addf %436, %441 : vector<4x512xf32>
    %443 = vector.extract_strided_slice %4 {offsets = [0, 26], sizes = [4, 1], strides = [1, 1]} : vector<4x36xf32> to vector<4x1xf32>
    %444 = vector.extract_strided_slice %430 {offsets = [2, 0], sizes = [1, 512], strides = [1, 1]} : vector<4x512xf32> to vector<1x512xf32>
    %445 = vector.broadcast %443 : vector<4x1xf32> to vector<4x512xf32>
    %446 = vector.broadcast %444 : vector<1x512xf32> to vector<4x512xf32>
    %447 = arith.mulf %445, %446 : vector<4x512xf32>
    %448 = arith.addf %442, %447 : vector<4x512xf32>
    %449 = vector.extract_strided_slice %4 {offsets = [0, 27], sizes = [4, 1], strides = [1, 1]} : vector<4x36xf32> to vector<4x1xf32>
    %450 = vector.extract_strided_slice %430 {offsets = [3, 0], sizes = [1, 512], strides = [1, 1]} : vector<4x512xf32> to vector<1x512xf32>
    %451 = vector.broadcast %449 : vector<4x1xf32> to vector<4x512xf32>
    %452 = vector.broadcast %450 : vector<1x512xf32> to vector<4x512xf32>
    %453 = arith.mulf %451, %452 : vector<4x512xf32>
    %454 = arith.addf %448, %453 : vector<4x512xf32>
    %c496_i32_20 = arith.constant 496 : i32
    %455 = tpu.dynamic_rotate %261 by %c496_i32_20 dim 1 : vector<4x512xf32>, i32 -> vector<4x512xf32>
    %456 = vector.extract_strided_slice %2 {offsets = [7, 0], sizes = [1, 512], strides = [1, 1]} : vector<9x512xf32> to vector<1x512xf32>
    %457 = vector.broadcast %456 : vector<1x512xf32> to vector<4x512xf32>
    %458 = arith.mulf %455, %457 : vector<4x512xf32>
    %459 = vector.extract_strided_slice %4 {offsets = [0, 28], sizes = [4, 1], strides = [1, 1]} : vector<4x36xf32> to vector<4x1xf32>
    %460 = vector.extract_strided_slice %458 {offsets = [0, 0], sizes = [1, 512], strides = [1, 1]} : vector<4x512xf32> to vector<1x512xf32>
    %461 = vector.broadcast %459 : vector<4x1xf32> to vector<4x512xf32>
    %462 = vector.broadcast %460 : vector<1x512xf32> to vector<4x512xf32>
    %463 = arith.mulf %461, %462 : vector<4x512xf32>
    %464 = arith.addf %454, %463 : vector<4x512xf32>
    %465 = vector.extract_strided_slice %4 {offsets = [0, 29], sizes = [4, 1], strides = [1, 1]} : vector<4x36xf32> to vector<4x1xf32>
    %466 = vector.extract_strided_slice %458 {offsets = [1, 0], sizes = [1, 512], strides = [1, 1]} : vector<4x512xf32> to vector<1x512xf32>
    %467 = vector.broadcast %465 : vector<4x1xf32> to vector<4x512xf32>
    %468 = vector.broadcast %466 : vector<1x512xf32> to vector<4x512xf32>
    %469 = arith.mulf %467, %468 : vector<4x512xf32>
    %470 = arith.addf %464, %469 : vector<4x512xf32>
    %471 = vector.extract_strided_slice %4 {offsets = [0, 30], sizes = [4, 1], strides = [1, 1]} : vector<4x36xf32> to vector<4x1xf32>
    %472 = vector.extract_strided_slice %458 {offsets = [2, 0], sizes = [1, 512], strides = [1, 1]} : vector<4x512xf32> to vector<1x512xf32>
    %473 = vector.broadcast %471 : vector<4x1xf32> to vector<4x512xf32>
    %474 = vector.broadcast %472 : vector<1x512xf32> to vector<4x512xf32>
    %475 = arith.mulf %473, %474 : vector<4x512xf32>
    %476 = arith.addf %470, %475 : vector<4x512xf32>
    %477 = vector.extract_strided_slice %4 {offsets = [0, 31], sizes = [4, 1], strides = [1, 1]} : vector<4x36xf32> to vector<4x1xf32>
    %478 = vector.extract_strided_slice %458 {offsets = [3, 0], sizes = [1, 512], strides = [1, 1]} : vector<4x512xf32> to vector<1x512xf32>
    %479 = vector.broadcast %477 : vector<4x1xf32> to vector<4x512xf32>
    %480 = vector.broadcast %478 : vector<1x512xf32> to vector<4x512xf32>
    %481 = arith.mulf %479, %480 : vector<4x512xf32>
    %482 = arith.addf %476, %481 : vector<4x512xf32>
    %c495_i32_21 = arith.constant 495 : i32
    %483 = tpu.dynamic_rotate %261 by %c495_i32_21 dim 1 : vector<4x512xf32>, i32 -> vector<4x512xf32>
    %484 = vector.extract_strided_slice %2 {offsets = [8, 0], sizes = [1, 512], strides = [1, 1]} : vector<9x512xf32> to vector<1x512xf32>
    %485 = vector.broadcast %484 : vector<1x512xf32> to vector<4x512xf32>
    %486 = arith.mulf %483, %485 : vector<4x512xf32>
    %487 = vector.extract_strided_slice %4 {offsets = [0, 32], sizes = [4, 1], strides = [1, 1]} : vector<4x36xf32> to vector<4x1xf32>
    %488 = vector.extract_strided_slice %486 {offsets = [0, 0], sizes = [1, 512], strides = [1, 1]} : vector<4x512xf32> to vector<1x512xf32>
    %489 = vector.broadcast %487 : vector<4x1xf32> to vector<4x512xf32>
    %490 = vector.broadcast %488 : vector<1x512xf32> to vector<4x512xf32>
    %491 = arith.mulf %489, %490 : vector<4x512xf32>
    %492 = arith.addf %482, %491 : vector<4x512xf32>
    %493 = vector.extract_strided_slice %4 {offsets = [0, 33], sizes = [4, 1], strides = [1, 1]} : vector<4x36xf32> to vector<4x1xf32>
    %494 = vector.extract_strided_slice %486 {offsets = [1, 0], sizes = [1, 512], strides = [1, 1]} : vector<4x512xf32> to vector<1x512xf32>
    %495 = vector.broadcast %493 : vector<4x1xf32> to vector<4x512xf32>
    %496 = vector.broadcast %494 : vector<1x512xf32> to vector<4x512xf32>
    %497 = arith.mulf %495, %496 : vector<4x512xf32>
    %498 = arith.addf %492, %497 : vector<4x512xf32>
    %499 = vector.extract_strided_slice %4 {offsets = [0, 34], sizes = [4, 1], strides = [1, 1]} : vector<4x36xf32> to vector<4x1xf32>
    %500 = vector.extract_strided_slice %486 {offsets = [2, 0], sizes = [1, 512], strides = [1, 1]} : vector<4x512xf32> to vector<1x512xf32>
    %501 = vector.broadcast %499 : vector<4x1xf32> to vector<4x512xf32>
    %502 = vector.broadcast %500 : vector<1x512xf32> to vector<4x512xf32>
    %503 = arith.mulf %501, %502 : vector<4x512xf32>
    %504 = arith.addf %498, %503 : vector<4x512xf32>
    %505 = vector.extract_strided_slice %4 {offsets = [0, 35], sizes = [4, 1], strides = [1, 1]} : vector<4x36xf32> to vector<4x1xf32>
    %506 = vector.extract_strided_slice %486 {offsets = [3, 0], sizes = [1, 512], strides = [1, 1]} : vector<4x512xf32> to vector<1x512xf32>
    %507 = vector.broadcast %505 : vector<4x1xf32> to vector<4x512xf32>
    %508 = vector.broadcast %506 : vector<1x512xf32> to vector<4x512xf32>
    %509 = arith.mulf %507, %508 : vector<4x512xf32>
    %510 = arith.addf %504, %509 : vector<4x512xf32>
    %c0_22 = arith.constant 0 : index
    %c0_23 = arith.constant 0 : index
    %511 = vector.load %arg7[%c0_22, %c0_23] : memref<4x1xf32, #tpu.memory_space<vmem>>, vector<4x1xf32>
    %512 = vector.broadcast %511 : vector<4x1xf32> to vector<4x512xf32>
    %513 = arith.mulf %510, %512 : vector<4x512xf32>
    %c0_24 = arith.constant 0 : index
    %c0_25 = arith.constant 0 : index
    %514 = vector.load %arg8[%c0_24, %c0_25] : memref<4x1xf32, #tpu.memory_space<vmem>>, vector<4x1xf32>
    %515 = vector.broadcast %514 : vector<4x1xf32> to vector<4x512xf32>
    %516 = arith.addf %513, %515 : vector<4x512xf32>
    %cst_26 = arith.constant 0.000000e+00 : f32
    %517 = vector.broadcast %cst_26 : f32 to vector<4x512xf32>
    %518 = arith.maximumf %516, %517 : vector<4x512xf32>
    %c0_27 = arith.constant 0 : index
    %c0_28 = arith.constant 0 : index
    %c0_29 = arith.constant 0 : index
    %519 = vector.load %arg9[%c0_27, %c0_28, %c0_29] : memref<1x4x512xf32, #tpu.memory_space<vmem>>, vector<1x4x512xf32>
    %520 = vector.shape_cast %519 : vector<1x4x512xf32> to vector<4x512xf32>
    %521 = vector.shape_cast %518 : vector<4x512xf32> to vector<1x4x512xf32>
    tpu.vector_store %arg9[%c0_27, %c0_28, %c0_29], %521 {strides = array<i32>} : memref<1x4x512xf32, #tpu.memory_space<vmem>>, vector<1x4x512xf32>,
    return
  }
  func.func @transform_0(%arg0: i32) -> (i32, i32, i32) {
    %c0_i32 = arith.constant 0 : i32
    %c0_i32_0 = arith.constant 0 : i32
    %c0_i32_1 = arith.constant 0 : i32
    return %arg0, %c0_i32, %c0_i32_0 : i32, i32, i32
  }
  func.func @transform_1(%arg0: i32) -> (i32, i32) {
    %c0_i32 = arith.constant 0 : i32
    %c0_i32_0 = arith.constant 0 : i32
    %c0_i32_1 = arith.constant 0 : i32
    return %c0_i32, %c0_i32_0 : i32, i32
  }
  func.func @transform_2(%arg0: i32) -> (i32, i32) {
    %c0_i32 = arith.constant 0 : i32
    %c0_i32_0 = arith.constant 0 : i32
    %c0_i32_1 = arith.constant 0 : i32
    return %c0_i32, %c0_i32_0 : i32, i32
  }
  func.func @transform_3(%arg0: i32) -> (i32, i32) {
    %c0_i32 = arith.constant 0 : i32
    %c0_i32_0 = arith.constant 0 : i32
    %c0_i32_1 = arith.constant 0 : i32
    return %c0_i32, %c0_i32_0 : i32, i32
  }
  func.func @transform_4(%arg0: i32) -> (i32, i32) {
    %c0_i32 = arith.constant 0 : i32
    %c0_i32_0 = arith.constant 0 : i32
    %c0_i32_1 = arith.constant 0 : i32
    return %c0_i32, %c0_i32_0 : i32, i32
  }
  func.func @transform_5(%arg0: i32) -> (i32, i32) {
    %c0_i32 = arith.constant 0 : i32
    %c0_i32_0 = arith.constant 0 : i32
    %c0_i32_1 = arith.constant 0 : i32
    return %c0_i32, %c0_i32_0 : i32, i32
  }
  func.func @transform_6(%arg0: i32) -> (i32, i32) {
    %c0_i32 = arith.constant 0 : i32
    %c0_i32_0 = arith.constant 0 : i32
    %c0_i32_1 = arith.constant 0 : i32
    return %c0_i32, %c0_i32_0 : i32, i32
  }
  func.func @transform_7(%arg0: i32) -> (i32, i32) {
    %c0_i32 = arith.constant 0 : i32
    %c0_i32_0 = arith.constant 0 : i32
    %c0_i32_1 = arith.constant 0 : i32
    return %c0_i32, %c0_i32_0 : i32, i32
  }
  func.func @transform_8(%arg0: i32) -> (i32, i32, i32) {
    %c0_i32 = arith.constant 0 : i32
    %c0_i32_0 = arith.constant 0 : i32
    %c0_i32_1 = arith.constant 0 : i32
    return %arg0, %c0_i32, %c0_i32_0 : i32, i32, i32
  }
}

</mosaic_0001>

<bundles_post_ra>
// kernel: double_conv_forward.1
= control target key start
LH: loop header
LB: loop body
LE: loop exit
PB: predicated region body
PF: predicated region fallthrough
CT: control target
= control target key end

     0   :  { %v1813_v2 = vmov 0   ;;  %v1814_v4 = vmov 3   ;;  %v1815_v5 = vmov 2   ;;  %v1817_v9 = vmov 1   ;;  %s1818_s11 = smov 16   ;;  %s1822_s12 = smov 15   ;;  %s3221_s0 = inlined_call_operand.vmem [shape: f32[1,4,512], index: 0, kind: input, shape index: {}]   ;;  %s3222_s2 = inlined_call_operand.vmem [shape: f32[4,36], index: 2, kind: input, shape index: {}]   ;;  %s3223_s1 = inlined_call_operand.vmem [shape: f32[9,512], index: 1, kind: input, shape index: {}]   ;;  %s3224_s4 = inlined_call_operand.vmem [shape: f32[4,1], index: 4, kind: input, shape index: {}]   ;;  %s3225_s5 = inlined_call_operand.vmem [shape: f32[4,36], index: 5, kind: input, shape index: {}]   ;;  %s3226_s3 = inlined_call_operand.vmem [shape: f32[4,1], index: 3, kind: input, shape index: {}]   ;;  %s3227_s6 = inlined_call_operand.vmem [shape: f32[4,1], index: 6, kind: input, shape index: {}]   ;;  %s3228_s7 = inlined_call_operand.vmem [shape: f32[4,1], index: 7, kind: input, shape index: {}]   ;;  %s3229_s8 = inlined_call_operand.vmem [shape: f32[1,4,512], index: 8, kind: output, shape index: {}]  }
   0x1   :  { %v1905_v0 = vld [vmem:[%s3221_s0 + $0x8] sm:$0xff]  ;;  %v1910_v1 = vld [vmem:[%s3221_s0] sm:$0xff]  ;;  %1724 = vset.pattern.permute.xlu2 %v1813_v2  ;;  %1727 = vset.pattern.permute.xlu1 %v1814_v4  ;;  %s1816_s0 = smov 17   ;;  %v1819_v15 = vmov 5   ;;  %v1820_v18 = vmov 4   ;;  %v1821_v21 = vmov 6   ;;  %v62_v52 = vlaneseq }
   0x2   :  { %v1916_v3 = vld [vmem:[%s3222_s2] sm:$0xf]  ;;  %45 = vst [vmem:[#allocation1 + $0x10] ss:$2 sm:$0xff] %v1905_v0  ;;  %1726 = vset.pattern.permute.xlu0 %v1815_v5  ;;  %v3266_v22 = vmov 9   ;;  %v1824_v23 = vmov 7  }
   0x3   :  { %79 = vperm.xlu2 %1724, %v1916_v3   ;;  %43 = vst [vmem:[#allocation1] ss:$2 sm:$0xff] %v1910_v1  ;;  %v3268_v24 = vmov 10   ;;  %v1826_v27 = vmov 8   ;;  %s1827_s13 = smov 1   ;;  %v3258_v30 = vmov 14  }
   0x4   :  { %v3255_v31 = vmov 13   ;;  %v3257_v32 = vmov 11   ;;  %v3239_v33 = vmov 19   ;;  %v1832_v34 = vmov 12   ;;  %s1837_s14 = smov 113   ;;  %s1839_s15 = smov 127  }
   0x5   :  { %v3241_v35 = vmov 16   ;;  %v3237_v37 = vmov 20   ;;  %v3240_v40 = vmov 15   ;;  %v3238_v41 = vmov 18   ;;  %v2012_v57 = vld [vmem:[%s3223_s1] sm:$0xff]  ;;  %v2017_v58 = vld [vmem:[%s3223_s1 + $0x8] sm:$0xff] }
   0x6   :  { %v1838_v46 = vmov 17   ;;  %v3230_v48 = vmov 24   ;;  %v3234_v49 = vmov 22   ;;  %v1842_v51 = vmov 21   ;;  %v2022_v59 = vld [vmem:[%s3223_s1 + $0x10] sm:$0xff]  ;;  %v2029_v62 = vld [vmem:[%s3223_s1 + $0x18] sm:$0xff] }
   0x7   :  { %v2004_v55 = vand.u32 127, %v62_v52  ;;  %s1843_s24 = smov 112   ;;  %s1848_s25 = smov 111   ;;  %vm1669_vm8 = vcmask 1043456  }
   0x9   :  { %v48_v6 = vld.sshfl [vmem:[#allocation1 + $0x10] sm:$0xff pattern:$0x75316420]  ;;  %v49_v7 = vld.sshfl [vmem:[#allocation1 + $0x18] sm:$0xff pattern:$0x75316420] }
   0xa   :  { %58 = vrot.lane.b32.xlu1 %v48_v6, %s1816_s0  ;;  %v46_v8 = vld.sshfl [vmem:[#allocation1] sm:$0xff pattern:$0x75316420]  ;;  %144 = vst [vmem:[#allocation1 + $0x10] ss:$2 sm:$0xff] %v1905_v0  ;;  %vm64_vm0 = vcmp.lt.s32.totalorder %v2004_v55, 17 }
   0xb   :  { %1725 = vset.pattern.permute.xlu2 %v1817_v9  ;;  %54 = vrot.lane.b32.xlu0 %v46_v8, %s1816_s0  ;;  %v47_v10 = vld.sshfl [vmem:[#allocation1 + $0x8] sm:$0xff pattern:$0x75316420]  ;;  %v3236_v6 = vperm.slane %v2012_v57, 0  ;;  %v3232_v8 = vperm.slane %v2022_v59, 0  ;;  %vm161_vm1 = vcmp.lt.s32.totalorder %v2004_v55, 16 }
   0xc   :  { %95 = vperm.xlu2 %1725, %v1916_v3   ;;  %142 = vst [vmem:[#allocation1] ss:$2 sm:$0xff] %v1910_v1  ;;  %vm257_vm2 = vcmp.lt.s32.totalorder %v2004_v55, 15  ;;  %vm353_vm3 = vcmp.lt.s32.totalorder %v2004_v55, 1  ;;  %vm545_vm4 = vcmp.lt.s32.totalorder %v2004_v55, 127  ;;  %vm641_vm5 = vcmp.lt.s32.totalorder %v2004_v55, 113 }
   0xd   :  { %vm737_vm6 = vcmp.lt.s32.totalorder %v2004_v55, 112  ;;  %vm833_vm7 = vcmp.lt.s32.totalorder %v2004_v55, 111 }
  0x11   :  { %v148_v11 = vld.sshfl [vmem:[#allocation1 + $0x18] sm:$0xff pattern:$0x75316420]  ;;  %v147_v12 = vld.sshfl [vmem:[#allocation1 + $0x10] sm:$0xff pattern:$0x75316420] }
  0x12   :  { %60 = vrot.lane.b32.xlu1 %v49_v7, %s1816_s0  ;;  %240 = vst [vmem:[#allocation1 + $0x10] ss:$2 sm:$0xff] %v1905_v0  ;;  %v3235_v7 = vperm.slane %v2017_v58, 0 }
  0x13   :  { %56 = vrot.lane.b32.xlu0 %v47_v10, %s1816_s0  ;;  %v146_v13 = vld.sshfl [vmem:[#allocation1 + $0x8] sm:$0xff pattern:$0x75316420]  ;;  %v145_v14 = vld.sshfl [vmem:[#allocation1] sm:$0xff pattern:$0x75316420] }
  0x14   :  { %153 = vrot.lane.b32.xlu2 %v145_v14, %s1818_s11  ;;  %238 = vst [vmem:[#allocation1] ss:$2 sm:$0xff] %v1910_v1  ;;  %v3231_v10 = vperm.slane %v2029_v62, 0 }
  0x15   :  { %1729 = vset.pattern.permute.xlu2 %v1819_v15 }
  0x19   :  { %v244_v19 = vld.sshfl [vmem:[#allocation1 + $0x18] sm:$0xff pattern:$0x75316420]  ;;  %v243_v20 = vld.sshfl [vmem:[#allocation1 + $0x10] sm:$0xff pattern:$0x75316420] }
  0x1a   :  { %127 = vperm.xlu1 %1727, %v1916_v3   ;;  %336 = vst [vmem:[#allocation1 + $0x10] ss:$2 sm:$0xff] %v1905_v0 }
  0x1b   :  { %111 = vperm.xlu0 %1726, %v1916_v3   ;;  %v242_v16 = vld.sshfl [vmem:[#allocation1 + $0x8] sm:$0xff pattern:$0x75316420]  ;;  %v241_v17 = vld.sshfl [vmem:[#allocation1] sm:$0xff pattern:$0x75316420] }
  0x1c   :  { %157 = vrot.lane.b32.xlu2 %v147_v12, %s1818_s11  ;;  %334 = vst [vmem:[#allocation1] ss:$2 sm:$0xff] %v1910_v1 }
  0x21   :  { %v340_v28 = vld.sshfl [vmem:[#allocation1 + $0x18] sm:$0xff pattern:$0x75316420]  ;;  %v339_v29 = vld.sshfl [vmem:[#allocation1 + $0x10] sm:$0xff pattern:$0x75316420] }
  0x22   :  { %155 = vrot.lane.b32.xlu1 %v146_v13, %s1818_s11  ;;  %528 = vst [vmem:[#allocation1 + $0x10] ss:$2 sm:$0xff] %v1905_v0 }
  0x23   :  { %159 = vrot.lane.b32.xlu0 %v148_v11, %s1818_s11  ;;  %1728 = vset.pattern.permute.xlu1 %v1820_v18  ;;  %v338_v25 = vld.sshfl [vmem:[#allocation1 + $0x8] sm:$0xff pattern:$0x75316420]  ;;  %v337_v26 = vld.sshfl [vmem:[#allocation1] sm:$0xff pattern:$0x75316420] }
  0x24   :  { %1730 = vset.pattern.permute.xlu0 %v1821_v21  ;;  %191 = vperm.xlu2 %1729, %v1916_v3   ;;  %526 = vst [vmem:[#allocation1] ss:$2 sm:$0xff] %v1910_v1 }
  0x29   :  { %v531_v43 = vld.sshfl [vmem:[#allocation1 + $0x10] sm:$0xff pattern:$0x75316420]  ;;  %v532_v45 = vld.sshfl [vmem:[#allocation1 + $0x18] sm:$0xff pattern:$0x75316420] }
  0x2a   :  { %175 = vperm.xlu1 %1728, %v1916_v3   ;;  %624 = vst [vmem:[#allocation1 + $0x10] ss:$2 sm:$0xff] %v1905_v0 }
  0x2b   :  { %207 = vperm.xlu0 %1730, %v1916_v3   ;;  %v529_v38 = vld.sshfl [vmem:[#allocation1] sm:$0xff pattern:$0x75316420]  ;;  %v530_v39 = vld.sshfl [vmem:[#allocation1 + $0x8] sm:$0xff pattern:$0x75316420] }
  0x2c   :  { %249 = vrot.lane.b32.xlu2 %v241_v17, %s1822_s12  ;;  %622 = vst [vmem:[#allocation1] ss:$2 sm:$0xff] %v1910_v1 }
  0x2d   :  { %1733 = vset.pattern.permute.xlu2 %v3266_v22 }
  0x31   :  { %v2024_v60 = vld.sshfl [vmem:[#allocation1 + $0x10] sm:$0xff pattern:$0x75316420]  ;;  %v628_v63 = vld.sshfl [vmem:[#allocation1 + $0x18] sm:$0xff pattern:$0x75316420] }
  0x32   :  { %1731 = vset.pattern.permute.xlu1 %v1824_v23  ;;  %720 = vst [vmem:[#allocation1 + $0x10] ss:$2 sm:$0xff] %v1905_v0 }
  0x33   :  { %223 = vperm.xlu1 %1731, %v1916_v3   ;;  %255 = vrot.lane.b32.xlu0 %v244_v19, %s1822_s12  ;;  %v626_v44 = vld.sshfl [vmem:[#allocation1 + $0x8] sm:$0xff pattern:$0x75316420]  ;;  %v625_v61 = vld.sshfl [vmem:[#allocation1] sm:$0xff pattern:$0x75316420] }
  0x34   :  { %1734 = vset.pattern.permute.xlu0 %v3268_v24  ;;  %253 = vrot.lane.b32.xlu2 %v243_v20, %s1822_s12  ;;  %718 = vst [vmem:[#allocation1] ss:$2 sm:$0xff] %v1910_v1 }
  0x3b   :  { %251 = vrot.lane.b32.xlu1 %v242_v16, %s1822_s12  ;;  %303 = vperm.xlu0 %1734, %v1916_v3  }
  0x3c   :  { %1732 = vset.pattern.permute.xlu1 %v1826_v27  ;;  %287 = vperm.xlu2 %1733, %v1916_v3  }
  0x43   :  { %271 = vperm.xlu1 %1732, %v1916_v3   ;;  %351 = vrot.lane.b32.xlu0 %v340_v28, %s1827_s13 }
  0x44   :  { %1738 = vset.pattern.permute.xlu0 %v3258_v30  ;;  %345 = vrot.lane.b32.xlu2 %v337_v26, %s1827_s13 }
  0x45   :  { %1737 = vset.pattern.permute.xlu2 %v3255_v31 }
  0x4b   :  { %1735 = vset.pattern.permute.xlu1 %v3257_v32  ;;  %399 = vperm.xlu0 %1738, %v1916_v3  }
  0x4c   :  { %319 = vperm.xlu1 %1735, %v1916_v3   ;;  %349 = vrot.lane.b32.xlu2 %v339_v29, %s1827_s13 }
  0x53   :  { %1743 = vset.pattern.permute.xlu0 %v3239_v33 }
  0x54   :  { %347 = vrot.lane.b32.xlu1 %v338_v25, %s1827_s13  ;;  %383 = vperm.xlu2 %1737, %v1916_v3  }
  0x55   :  { %1736 = vset.pattern.permute.xlu1 %v1832_v34  ;;  %503 = vperm.xlu0 %1743, %v1916_v3  }
  0x5c   :  { %367 = vperm.xlu1 %1736, %v1916_v3   ;;  %1740 = vset.pattern.permute.xlu2 %v3241_v35  ;;  %v3244_v35 = vperm.slane %v2022_v59, 1 }
  0x5d   :  { %v1976_v36 = vpop.permute.xlu2 %79  ;;  %431 = vperm.xlu2 %1740, %v1916_v3   ;;  %1744 = vset.pattern.permute.xlu0 %v3237_v37 }
  0x5e   :  { %559 = vperm.xlu0 %1744, %v1916_v3  }
  0x64   :  { %1739 = vset.pattern.permute.xlu1 %v3240_v40 }
  0x65   :  { %415 = vperm.xlu1 %1739, %v1916_v3   ;;  %1742 = vset.pattern.permute.xlu2 %v3238_v41  ;;  %v3242_v41 = vmov 28  }
  0x66   :  { %v1985_v42 = vpop.permute.xlu2 %95  ;;  %479 = vperm.xlu2 %1742, %v1916_v3   ;;  %635 = vrot.lane.b32.xlu0 %v626_v44, %s1837_s14 }
  0x67   :  { %1748 = vset.pattern.permute.xlu0 %v3230_v48  ;;  %v3247_v48 = vperm.slane %v2012_v57, 1 }
  0x6d   :  { %1741 = vset.pattern.permute.xlu1 %v1838_v46 }
  0x6e   :  { %455 = vperm.xlu1 %1741, %v1916_v3   ;;  %539 = vrot.lane.b32.xlu2 %v530_v39, %s1839_s15  ;;  %v1993_v47 = vpop.permute.xlu2 %153 }
  0x6f   :  { %1746 = vset.pattern.permute.xlu2 %v3234_v49  ;;  %655 = vperm.xlu0 %1748, %v1916_v3  }
  0x76   :  { %537 = vrot.lane.b32.xlu1 %v529_v38, %s1839_s15  ;;  %543 = vrot.lane.b32.xlu2 %v532_v45, %s1839_s15  ;;  %v2000_v50 = vpop.permute.xlu2 %157  ;;  %v722_v45 = vld.sshfl [vmem:[#allocation1 + $0x8] sm:$0xff pattern:$0x75316420] }
  0x77   :  { %1745 = vset.pattern.permute.xlu1 %v1842_v51  ;;  %731 = vrot.lane.b32.xlu0 %v722_v45, %s1843_s24 }
  0x78   :  { %1752 = vset.pattern.permute.xlu0 %v3242_v41 }
  0x7c   :  { %v59_v53 = vpop.permute.xlu1 %58 }
  0x7d   :  { %v55_v54 = vpop.permute.xlu0 %54 }
  0x7e   :  { %541 = vrot.lane.b32.xlu1 %v531_v43, %s1839_s15  ;;  %591 = vperm.xlu2 %1746, %v1916_v3   ;;  %v2007_v56 = vpop.permute.xlu2 %191 }
  0x7f   :  { %751 = vperm.xlu0 %1752, %v1916_v3  }
  0x84   :  { %v61_v11 = vpop.permute.xlu1 %60 }
  0x85   :  { %v65_v12 = vsel %vm64_vm0, %v59_v53, %v61_v11  ;;  %v68_v13 = vsel %vm64_vm0, %v61_v11, %v55_v54  ;;  %v57_v14 = vpop.permute.xlu0 %56 }
  0x86   :  { %v2044_v16 = vmul.f32 %v3236_v6, %v68_v13  ;;  %v66_v17 = vsel %vm64_vm0, %v57_v14, %v59_v53  ;;  %v67_v19 = vsel %vm64_vm0, %v55_v54, %v57_v14  ;;  %575 = vperm.xlu1 %1745, %v1916_v3   ;;  %v2051_v20 = vpop.permute.xlu2 %249  ;;  %633 = vrot.lane.b32.xlu2 %v625_v61, %s1837_s14 }
  0x87   :  { %v2055_v25 = vmul.f32 %v3235_v7, %v67_v19  ;;  %v2059_v26 = vmul.f32 %v3232_v8, %v66_v17  ;;  %v2064_v28 = vmul.f32 %v3231_v10, %v65_v12  ;;  %v3233_v19 = vmov 23  }
  0x88   :  { %v82_v29 = vperm.slane %v2044_v16, 0  ;;  %v98_v38 = vperm.slane %v2044_v16, 1  ;;  %v3243_v10 = vperm.slane %v2029_v62, 1 }
  0x89   :  { %v83_v39 = vperm.slane %v2055_v25, 0  ;;  %v99_v43 = vperm.slane %v2055_v25, 1  ;;  %v84_v44 = vperm.slane %v2059_v26, 0  ;;  %v85_v52 = vperm.slane %v2064_v28, 0 }
  0x8a   :  { %v101_v53 = vperm.slane %v2064_v28, 1  ;;  %v100_v54 = vperm.slane %v2059_v26, 1  ;;  %v86_v11 = vmul.f32 %v82_v29, %v1976_v36  ;;  %v102_v13 = vmul.f32 %v98_v38, %v1985_v42 }
  0x8b   :  { %v87_v12 = vmul.f32 %v83_v39, %v1976_v36  ;;  %v103_v14 = vmul.f32 %v99_v43, %v1985_v42  ;;  %v88_v29 = vmul.f32 %v84_v44, %v1976_v36  ;;  %v114_v39 = vperm.slane %v2044_v16, 2 }
  0x8c   :  { %v2074_v61 = vpop.permute.xlu1 %127  ;;  %v115_v38 = vperm.slane %v2055_v25, 2  ;;  %v3246_v43 = vperm.slane %v2017_v58, 1  ;;  %v89_v45 = vmul.f32 %v85_v52, %v1976_v36  ;;  %v105_v49 = vmul.f32 %v101_v53, %v1985_v42 }
  0x8d   :  { %v112_v17 = vpop.permute.xlu0 %111  ;;  %v106_v7 = vadd.f32 %v102_v13, %v86_v11  ;;  %v107_v6 = vadd.f32 %v103_v14, %v87_v12  ;;  %v116_v33 = vperm.slane %v2059_v26, 2  ;;  %v117_v40 = vperm.slane %v2064_v28, 2 }
  0x8e   :  { %1747 = vset.pattern.permute.xlu1 %v3233_v19  ;;  %v2085_v8 = vpop.permute.xlu2 %253  ;;  %639 = vrot.lane.b32.xlu2 %v628_v63, %s1837_s14  ;;  %v104_v19 = vmul.f32 %v100_v54, %v1985_v42  ;;  %v118_v37 = vmul.f32 %v114_v39, %v112_v17  ;;  %v119_v44 = vmul.f32 %v115_v38, %v112_v17  ;;  %v133_v63 = vperm.slane %v2064_v28, 3 }
  0x8f   :  { %607 = vperm.xlu1 %1747, %v1916_v3   ;;  %v130_v36 = vperm.slane %v2044_v16, 3  ;;  %v131_v52 = vperm.slane %v2055_v25, 3  ;;  %v3245_v42 = vmov 26   ;;  %v109_v54 = vadd.f32 %v105_v49, %v89_v45 }
  0x90   :  { %1750 = vset.pattern.permute.xlu2 %v3245_v42  ;;  %v108_v53 = vadd.f32 %v104_v19, %v88_v29  ;;  %v120_v11 = vmul.f32 %v116_v33, %v112_v17  ;;  %v121_v12 = vmul.f32 %v117_v40, %v112_v17  ;;  %v122_v14 = vadd.f32 %v118_v37, %v106_v7 }
  0x91   :  { %v123_v39 = vadd.f32 %v119_v44, %v107_v6  ;;  %v132_v7 = vperm.slane %v2059_v26, 3  ;;  %v134_v25 = vmul.f32 %v130_v36, %v2074_v61  ;;  %v135_v17 = vmul.f32 %v131_v52, %v2074_v61 }
  0x92   :  { %v124_v19 = vadd.f32 %v120_v11, %v108_v53  ;;  %v125_v29 = vadd.f32 %v121_v12, %v109_v54  ;;  %v3267_v45 = vmov 25   ;;  %v137_v44 = vmul.f32 %v133_v63, %v2074_v61  ;;  %v721_v54 = vld.sshfl [vmem:[#allocation1] sm:$0xff pattern:$0x75316420] }
  0x93   :  { %v136_v26 = vmul.f32 %v132_v7, %v2074_v61  ;;  %v139_v53 = vadd.f32 %v135_v17, %v123_v39  ;;  %814 = vst [vmem:[#allocation1] ss:$2 sm:$0xff] %v1910_v1 }
  0x94   :  { %v156_v13 = vpop.permute.xlu1 %155 }
  0x95   :  { %v160_v38 = vpop.permute.xlu0 %159  ;;  %v163_v28 = vsel %vm161_vm1, %v156_v13, %v2000_v50  ;;  %v164_v16 = vsel %vm161_vm1, %v1993_v47, %v156_v13  ;;  %v138_v13 = vadd.f32 %v134_v25, %v122_v14  ;;  %v140_v14 = vadd.f32 %v136_v26, %v124_v19 }
  0x96   :  { %v162_v49 = vsel %vm161_vm1, %v2000_v50, %v160_v38  ;;  %v165_v33 = vsel %vm161_vm1, %v160_v38, %v1993_v47  ;;  %v2119_v37 = vmul.f32 %v3246_v43, %v164_v16  ;;  %v2123_v40 = vmul.f32 %v3244_v35, %v163_v28  ;;  %v2125_v6 = vpop.permute.xlu2 %287  ;;  %687 = vperm.xlu2 %1750, %v1916_v3   ;;  %v724_v35 = vld.sshfl [vmem:[#allocation1 + $0x18] sm:$0xff pattern:$0x75316420] }
  0x97   :  { %v2131_v50 = vmul.f32 %v3247_v48, %v165_v33  ;;  %v2135_v47 = vmul.f32 %v3243_v10, %v162_v49  ;;  %637 = vrot.lane.b32.xlu1 %v2024_v60, %s1837_s14  ;;  %v141_v49 = vadd.f32 %v137_v44, %v125_v29  ;;  %v2155_v10 = vld.sshfl [vmem:[#allocation1 + $0x10] sm:$0xff pattern:$0x75316420] }
  0x98   :  { %1749 = vset.pattern.permute.xlu1 %v3267_v45  ;;  %v195_v60 = vperm.slane %v2119_v37, 1  ;;  %v196_v52 = vperm.slane %v2123_v40, 1  ;;  %v179_v12 = vperm.slane %v2119_v37, 0  ;;  %v180_v28 = vperm.slane %v2123_v40, 0  ;;  %816 = vst [vmem:[#allocation1 + $0x10] ss:$2 sm:$0xff] %v1905_v0 }
  0x99   :  { %v197_v36 = vperm.slane %v2135_v47, 1  ;;  %v194_v38 = vperm.slane %v2131_v50, 1  ;;  %v178_v11 = vperm.slane %v2131_v50, 0  ;;  %v181_v16 = vperm.slane %v2135_v47, 0 }
  0x9a   :  { %v213_v63 = vperm.slane %v2135_v47, 2  ;;  %v199_v43 = vmul.f32 %v195_v60, %v2007_v56  ;;  %v200_v48 = vmul.f32 %v196_v52, %v2007_v56 }
  0x9b   :  { %v201_v61 = vmul.f32 %v197_v36, %v2007_v56  ;;  %v198_v42 = vmul.f32 %v194_v38, %v2007_v56  ;;  %v212_v38 = vperm.slane %v2123_v40, 2 }
  0x9c   :  { %v176_v33 = vpop.permute.xlu1 %175 }
  0x9d   :  { %v208_v7 = vpop.permute.xlu0 %207  ;;  %v182_v39 = vmul.f32 %v178_v11, %v176_v33  ;;  %v183_v25 = vmul.f32 %v179_v12, %v176_v33  ;;  %v184_v17 = vmul.f32 %v180_v28, %v176_v33  ;;  %v185_v41 = vmul.f32 %v181_v16, %v176_v33 }
  0x9e   :  { %v2162_v44 = vpop.permute.xlu2 %345  ;;  %v210_v11 = vperm.slane %v2131_v50, 2  ;;  %v211_v12 = vperm.slane %v2119_v37, 2  ;;  %v217_v28 = vmul.f32 %v213_v63, %v208_v7  ;;  %729 = vrot.lane.b32.xlu2 %v721_v54, %s1843_s24  ;;  %v3252_v16 = vperm.slane %v2012_v57, 2 }
  0x9f   :  { %v186_v36 = vadd.f32 %v182_v39, %v138_v13  ;;  %v187_v19 = vadd.f32 %v183_v25, %v139_v53  ;;  %v188_v29 = vadd.f32 %v184_v17, %v140_v14  ;;  %v189_v26 = vadd.f32 %v185_v41, %v141_v49  ;;  %671 = vperm.xlu1 %1749, %v1916_v3   ;;  %v818_v14 = vld.sshfl [vmem:[#allocation1 + $0x8] sm:$0xff pattern:$0x75316420] }
  0xa0   :  { %v214_v53 = vmul.f32 %v210_v11, %v208_v7  ;;  %v226_v41 = vperm.slane %v2131_v50, 3  ;;  %v215_v49 = vmul.f32 %v211_v12, %v208_v7  ;;  %v216_v33 = vmul.f32 %v212_v38, %v208_v7  ;;  %827 = vrot.lane.b32.xlu0 %v818_v14, %s1848_s25 }
  0xa1   :  { %v202_v56 = vadd.f32 %v198_v42, %v186_v36  ;;  %v203_v60 = vadd.f32 %v199_v43, %v187_v19  ;;  %v204_v52 = vadd.f32 %v200_v48, %v188_v29  ;;  %v205_v13 = vadd.f32 %v201_v61, %v189_v26 }
  0xa2   :  { %v227_v39 = vperm.slane %v2119_v37, 3  ;;  %v228_v63 = vperm.slane %v2123_v40, 3  ;;  %v229_v48 = vperm.slane %v2135_v47, 3  ;;  %v3249_v25 = vperm.slane %v2029_v62, 2 }
  0xa3   :  { %v218_v43 = vadd.f32 %v214_v53, %v202_v56  ;;  %v219_v54 = vadd.f32 %v215_v49, %v203_v60  ;;  %v220_v50 = vadd.f32 %v216_v33, %v204_v52  ;;  %v221_v61 = vadd.f32 %v217_v28, %v205_v13 }
  0xa4   :  { %v3248_v36 = vmov 32   ;;  %v3254_v7 = vmov 30   ;;  %v3251_v26 = vmov 27   ;;  %v3253_v53 = vperm.slane %v2017_v58, 2 }
  0xa5   :  { %v224_v42 = vpop.permute.xlu1 %223  ;;  %v256_v17 = vpop.permute.xlu0 %255  ;;  %1756 = vset.pattern.permute.xlu0 %v3248_v36  ;;  %1754 = vset.pattern.permute.xlu2 %v3254_v7 }
  0xa6   :  { %v230_v37 = vmul.f32 %v226_v41, %v224_v42  ;;  %v231_v40 = vmul.f32 %v227_v39, %v224_v42  ;;  %v232_v19 = vmul.f32 %v228_v63, %v224_v42  ;;  %v233_v29 = vmul.f32 %v229_v48, %v224_v42  ;;  %v2194_v13 = vpop.permute.xlu2 %349  ;;  %735 = vrot.lane.b32.xlu2 %v724_v35, %s1843_s24 }
  0xa7   :  { %1751 = vset.pattern.permute.xlu1 %v3251_v26  ;;  %v258_v47 = vsel %vm257_vm2, %v2085_v8, %v256_v17  ;;  %v261_v11 = vsel %vm257_vm2, %v256_v17, %v2051_v20  ;;  %v3250_v41 = vperm.slane %v2022_v59, 2 }
  0xa8   :  { %v234_v12 = vadd.f32 %v230_v37, %v218_v43  ;;  %v235_v38 = vadd.f32 %v231_v40, %v219_v54  ;;  %v236_v28 = vadd.f32 %v232_v19, %v220_v50  ;;  %v237_v56 = vadd.f32 %v233_v29, %v221_v61  ;;  %703 = vperm.xlu1 %1751, %v1916_v3  }
  0xa9   :  { %v2188_v60 = vmul.f32 %v3252_v16, %v261_v11  ;;  %v2192_v52 = vmul.f32 %v3249_v25, %v258_v47  ;;  %847 = vperm.xlu0 %1756, %v1916_v3   ;;  %v3256_v61 = vmov 29  }
  0xab   :  { %v290_v14 = vperm.slane %v2188_v60, 1  ;;  %v293_v49 = vperm.slane %v2192_v52, 1  ;;  %v306_v40 = vperm.slane %v2188_v60, 2  ;;  %v309_v19 = vperm.slane %v2192_v52, 2 }
  0xac   :  { %v274_v29 = vperm.slane %v2188_v60, 0 }
  0xad   :  { %v252_v33 = vpop.permute.xlu1 %251  ;;  %v294_v39 = vmul.f32 %v290_v14, %v2125_v6  ;;  %v297_v63 = vmul.f32 %v293_v49, %v2125_v6  ;;  %v304_v48 = vpop.permute.xlu0 %303 }
  0xae   :  { %v259_v43 = vsel %vm257_vm2, %v252_v33, %v2085_v8  ;;  %v260_v35 = vsel %vm257_vm2, %v2051_v20, %v252_v33  ;;  %783 = vperm.xlu2 %1754, %v1916_v3   ;;  %v277_v20 = vperm.slane %v2192_v52, 0  ;;  %v3263_v33 = vperm.slane %v2012_v57, 3 }
  0xaf   :  { %v2212_v42 = vmul.f32 %v3253_v53, %v260_v35  ;;  %v2216_v54 = vmul.f32 %v3250_v41, %v259_v43  ;;  %v3261_v43 = vperm.slane %v2029_v62, 3  ;;  %v817_v41 = vld.sshfl [vmem:[#allocation1] sm:$0xff pattern:$0x75316420]  ;;  %v310_v26 = vmul.f32 %v306_v40, %v304_v48 }
  0xb0   :  { %733 = vrot.lane.b32.xlu1 %v2155_v10, %s1843_s24  ;;  %v2229_v10 = vpop.permute.xlu2 %383  ;;  %v313_v16 = vmul.f32 %v309_v19, %v304_v48 }
  0xb1   :  { %v291_v50 = vperm.slane %v2212_v42, 1  ;;  %v292_v8 = vperm.slane %v2216_v54, 1  ;;  %1753 = vset.pattern.permute.xlu1 %v3256_v61  ;;  %1761 = vset.pattern.permute.xlu0 %v1813_v2  ;;  %v275_v47 = vperm.slane %v2212_v42, 0  ;;  %v276_v11 = vperm.slane %v2216_v54, 0 }
  0xb2   :  { %v307_v14 = vperm.slane %v2212_v42, 2 }
  0xb3   :  { %v295_v17 = vmul.f32 %v291_v50, %v2125_v6  ;;  %v296_v37 = vmul.f32 %v292_v8, %v2125_v6  ;;  %v308_v6 = vperm.slane %v2216_v54, 2 }
  0xb5   :  { %v272_v49 = vpop.permute.xlu1 %271  ;;  %v352_v25 = vpop.permute.xlu0 %351 }
  0xb6   :  { %v278_v35 = vmul.f32 %v274_v29, %v272_v49  ;;  %v279_v50 = vmul.f32 %v275_v47, %v272_v49  ;;  %v280_v8 = vmul.f32 %v276_v11, %v272_v49  ;;  %v281_v36 = vmul.f32 %v277_v20, %v272_v49  ;;  %825 = vrot.lane.b32.xlu2 %v817_v41, %s1848_s25 }
  0xb7   :  { %v354_v53 = vsel %vm353_vm3, %v2194_v13, %v352_v25  ;;  %v357_v7 = vsel %vm353_vm3, %v352_v25, %v2162_v44  ;;  %v311_v29 = vmul.f32 %v307_v14, %v304_v48  ;;  %v312_v20 = vmul.f32 %v308_v6, %v304_v48  ;;  %v820_v14 = vld.sshfl [vmem:[#allocation1 + $0x18] sm:$0xff pattern:$0x75316420] }
  0xb8   :  { %v282_v31 = vadd.f32 %v278_v35, %v234_v12  ;;  %v283_v61 = vadd.f32 %v279_v50, %v235_v38  ;;  %v284_v32 = vadd.f32 %v280_v8, %v236_v28  ;;  %v285_v30 = vadd.f32 %v281_v36, %v237_v56  ;;  %767 = vperm.xlu1 %1753, %v1916_v3   ;;  %v920_v36 = vld [vmem:[%s3224_s4] sm:$0xf] }
  0xb9   :  { %v2249_v40 = vmul.f32 %v3263_v33, %v357_v7  ;;  %v2253_v19 = vmul.f32 %v3261_v43, %v354_v53  ;;  %v322_v28 = vperm.slane %v2188_v60, 3  ;;  %v325_v56 = vperm.slane %v2192_v52, 3  ;;  %923 = vperm.xlu0 %1761, %v920_v36   ;;  %v2271_v52 = vpop.permute.xlu2 %431  ;;  %v2279_v35 = vld [vmem:[%s3225_s5] sm:$0xf] }
  0xba   :  { %v298_v47 = vadd.f32 %v294_v39, %v282_v31  ;;  %v299_v25 = vadd.f32 %v295_v17, %v283_v61  ;;  %v300_v12 = vadd.f32 %v296_v37, %v284_v32  ;;  %v301_v38 = vadd.f32 %v297_v63, %v285_v30 }
  0xbb   :  { %v386_v7 = vperm.slane %v2249_v40, 1  ;;  %v389_v48 = vperm.slane %v2253_v19, 1  ;;  %v323_v32 = vperm.slane %v2212_v42, 3  ;;  %v324_v30 = vperm.slane %v2216_v54, 3 }
  0xbc   :  { %v314_v53 = vadd.f32 %v310_v26, %v298_v47  ;;  %v315_v11 = vadd.f32 %v311_v29, %v299_v25  ;;  %v316_v41 = vadd.f32 %v312_v20, %v300_v12  ;;  %v317_v31 = vadd.f32 %v313_v16, %v301_v38  ;;  %v819_v47 = vld.sshfl [vmem:[#allocation1 + $0x10] sm:$0xff pattern:$0x75316420] }
  0xbd   :  { %v2266_v39 = vmul.f32 %v386_v7, %v2229_v10  ;;  %v2269_v60 = vmul.f32 %v389_v48, %v2229_v10  ;;  %v3265_v6 = vmov 31   ;;  %v3264_v50 = vperm.slane %v2017_v58, 3 }
  0xbe   :  { %v320_v63 = vpop.permute.xlu1 %319  ;;  %831 = vrot.lane.b32.xlu2 %v820_v14, %s1848_s25  ;;  %v3262_v8 = vperm.slane %v2022_v59, 3  ;;  %v3260_v29 = vmov 34   ;;  %v434_v7 = vperm.slane %v1910_v1, 0  ;;  %v3259_v48 = vmov 33  }
  0xbf   :  { %v326_v61 = vmul.f32 %v322_v28, %v320_v63  ;;  %v327_v17 = vmul.f32 %v323_v32, %v320_v63  ;;  %v328_v37 = vmul.f32 %v324_v30, %v320_v63  ;;  %v329_v26 = vmul.f32 %v325_v56, %v320_v63  ;;  %1758 = vset.pattern.permute.xlu2 %v3260_v29 }
  0xc0   :  { %1755 = vset.pattern.permute.xlu1 %v3265_v6  ;;  %v370_v63 = vperm.slane %v2249_v40, 0 }
  0xc1   :  { %v330_v16 = vadd.f32 %v326_v61, %v314_v53  ;;  %v331_v42 = vadd.f32 %v327_v17, %v315_v11  ;;  %v332_v54 = vadd.f32 %v328_v37, %v316_v41  ;;  %v333_v49 = vadd.f32 %v329_v26, %v317_v31  ;;  %799 = vperm.xlu1 %1755, %v1916_v3   ;;  %v2291_v38 = vpop.permute.xlu2 %479 }
  0xc2   :  { %952 = vperm.xlu0 %1761, %v2279_v35   ;;  %v436_v53 = vperm.slane %v1905_v0, 0  ;;  %v373_v11 = vperm.slane %v2253_v19, 0  ;;  %v405_v41 = vperm.slane %v2253_v19, 2  ;;  %v437_v31 = vperm.slane %v1905_v0, 4 }
  0xc3   :  { %v402_v37 = vperm.slane %v2249_v40, 2 }
  0xc4   :  { %v444_v29 = vperm.slane %v436_v53, 0  ;;  %v445_v43 = vperm.slane %v437_v31, 0 }
  0xc6   :  { %v348_v20 = vpop.permute.xlu1 %347  ;;  %879 = vperm.xlu2 %1758, %v1916_v3  }
  0xc7   :  { %v355_v25 = vsel %vm353_vm3, %v348_v20, %v2194_v13  ;;  %v356_v12 = vsel %vm353_vm3, %v2162_v44, %v348_v20  ;;  %v435_v44 = vperm.slane %v1910_v1, 4  ;;  %v442_v20 = vperm.slane %v434_v7, 0 }
  0xc8   :  { %v2295_v36 = vmul.f32 %v3264_v50, %v356_v12  ;;  %v2299_v28 = vmul.f32 %v3262_v8, %v355_v25  ;;  %v400_v25 = vpop.permute.xlu0 %399 }
  0xc9   :  { %829 = vrot.lane.b32.xlu1 %v819_v47, %s1848_s25  ;;  %v2323_v22 = vpop.permute.xlu2 %539  ;;  %v406_v45 = vmul.f32 %v402_v37, %v400_v25 }
  0xca   :  { %v387_v56 = vperm.slane %v2295_v36, 1  ;;  %v388_v13 = vperm.slane %v2299_v28, 1  ;;  %1757 = vset.pattern.permute.xlu1 %v3259_v48  ;;  %1764 = vset.pattern.permute.xlu0 %v1814_v4  ;;  %v371_v61 = vperm.slane %v2295_v36, 0  ;;  %v372_v17 = vperm.slane %v2299_v28, 0 }
  0xcb   :  { %1000 = vperm.xlu0 %1764, %v2279_v35   ;;  %v403_v26 = vperm.slane %v2295_v36, 2  ;;  %v404_v14 = vperm.slane %v2299_v28, 2  ;;  %v443_v48 = vperm.slane %v435_v44, 0 }
  0xcc   :  { %v391_v32 = vmul.f32 %v387_v56, %v2229_v10  ;;  %v392_v30 = vmul.f32 %v388_v13, %v2229_v10  ;;  %v409_v13 = vmul.f32 %v405_v41, %v400_v25  ;;  %v910_v41 = vld [vmem:[%s3226_s3] sm:$0xf] }
  0xcd   :  { %v407_v7 = vmul.f32 %v403_v26, %v400_v25  ;;  %v408_v24 = vmul.f32 %v404_v14, %v400_v25 }
  0xce   :  { %v368_v47 = vpop.permute.xlu1 %367  ;;  %1760 = vset.pattern.permute.xlu2 %v1813_v2 }
  0xcf   :  { %v374_v10 = vmul.f32 %v370_v63, %v368_v47  ;;  %v375_v12 = vmul.f32 %v371_v61, %v368_v47  ;;  %v376_v4 = vmul.f32 %v372_v17, %v368_v47  ;;  %v377_v56 = vmul.f32 %v373_v11, %v368_v47  ;;  %913 = vperm.xlu2 %1760, %v910_v41  }
  0xd0   :  { %v482_v63 = vperm.slane %v1910_v1, 2 }
  0xd1   :  { %v378_v8 = vadd.f32 %v374_v10, %v330_v16  ;;  %v379_v33 = vadd.f32 %v375_v12, %v331_v42  ;;  %v380_v50 = vadd.f32 %v376_v4, %v332_v54  ;;  %v381_v6 = vadd.f32 %v377_v56, %v333_v49  ;;  %863 = vperm.xlu1 %1757, %v1916_v3   ;;  %v2353_v4 = vpop.permute.xlu2 %543 }
  0xd2   :  { %v483_v42 = vperm.slane %v1910_v1, 6  ;;  %v484_v54 = vperm.slane %v1905_v0, 2  ;;  %v485_v3 = vperm.slane %v1905_v0, 6  ;;  %v418_v49 = vperm.slane %v2249_v40, 3 }
  0xd3   :  { %v394_v11 = vadd.f32 %v2266_v39, %v378_v8  ;;  %v395_v44 = vadd.f32 %v391_v32, %v379_v33  ;;  %v396_v53 = vadd.f32 %v392_v30, %v380_v50  ;;  %v397_v16 = vadd.f32 %v2269_v60, %v381_v6  ;;  %1765 = vset.pattern.permute.xlu0 %v1820_v18 }
  0xd4   :  { %v419_v33 = vperm.slane %v2295_v36, 3  ;;  %v420_v60 = vperm.slane %v2299_v28, 3  ;;  %v421_v6 = vperm.slane %v2253_v19, 3  ;;  %v446_v50 = vmul.f32 %v442_v20, %v2271_v52  ;;  %1032 = vperm.xlu0 %1765, %v2279_v35   ;;  %v1804_v20 = vld [vmem:[%s3222_s2] sm:$0xf] }
  0xd5   :  { %v410_v31 = vadd.f32 %v406_v45, %v394_v11  ;;  %v411_v61 = vadd.f32 %v407_v7, %v395_v44  ;;  %v412_v17 = vadd.f32 %v408_v24, %v396_v53  ;;  %v413_v39 = vadd.f32 %v409_v13, %v397_v16 }
  0xd6   :  { %v447_v40 = vmul.f32 %v443_v48, %v2271_v52  ;;  %v448_v8 = vmul.f32 %v444_v29, %v2271_v52  ;;  %v449_v45 = vmul.f32 %v445_v43, %v2271_v52  ;;  %v1856_v28 = vmov 35  }
  0xd7   :  { %v416_v32 = vpop.permute.xlu1 %415  ;;  %v458_v18 = vperm.slane %v1910_v1, 1  ;;  %v459_v19 = vperm.slane %v1910_v1, 5  ;;  %v460_v48 = vperm.slane %v1905_v0, 1  ;;  %v461_v29 = vperm.slane %v1905_v0, 5  ;;  %1763 = vset.pattern.permute.xlu2 %v1815_v5 }
  0xd8   :  { %v422_v24 = vmul.f32 %v418_v49, %v416_v32  ;;  %v423_v30 = vmul.f32 %v419_v33, %v416_v32  ;;  %v424_v36 = vmul.f32 %v420_v60, %v416_v32  ;;  %v425_v37 = vmul.f32 %v421_v6, %v416_v32  ;;  %v2361_v33 = vpop.permute.xlu0 %503 }
  0xd9   :  { %1759 = vset.pattern.permute.xlu1 %v1856_v28  ;;  %v490_v47 = vperm.slane %v482_v63, 2  ;;  %v491_v25 = vperm.slane %v483_v42, 2  ;;  %v492_v10 = vperm.slane %v484_v54, 2  ;;  %v493_v12 = vperm.slane %v485_v3, 2  ;;  %v2371_v32 = vpop.permute.xlu2 %591 }
  0xda   :  { %v426_v26 = vadd.f32 %v422_v24, %v410_v31  ;;  %v427_v43 = vadd.f32 %v423_v30, %v411_v61  ;;  %v428_v52 = vadd.f32 %v424_v36, %v412_v17  ;;  %v429_v14 = vadd.f32 %v425_v37, %v413_v39  ;;  %895 = vperm.xlu1 %1759, %v1804_v20  }
  0xdb   :  { %v466_v44 = vperm.slane %v458_v18, 1  ;;  %v467_v53 = vperm.slane %v459_v19, 1  ;;  %v468_v16 = vperm.slane %v460_v48, 1  ;;  %v469_v49 = vperm.slane %v461_v29, 1 }
  0xdc   :  { %v450_v56 = vadd.f32 %v446_v50, %v426_v26  ;;  %v451_v13 = vadd.f32 %v447_v40, %v427_v43  ;;  %v452_v7 = vadd.f32 %v448_v8, %v428_v52  ;;  %v453_v11 = vadd.f32 %v449_v45, %v429_v14  ;;  %1769 = vset.pattern.permute.xlu0 %v1826_v27 }
  0xdd   :  { %v494_v41 = vmul.f32 %v490_v47, %v2291_v38  ;;  %v495_v63 = vmul.f32 %v491_v25, %v2291_v38  ;;  %v496_v42 = vmul.f32 %v492_v10, %v2291_v38  ;;  %v497_v54 = vmul.f32 %v493_v12, %v2291_v38 }
  0xde   :  { %v509_v60 = vperm.slane %v1905_v0, 7  ;;  %v3273_v30 = vperm.slane %v2029_v62, 5 }
  0xe0   :  { %v456_v3 = vpop.permute.xlu1 %455  ;;  %v517_v24 = vperm.slane %v509_v60, 3  ;;  %v2381_v19 = vpop.permute.xlu0 %559  ;;  %v3276_v60 = vperm.slane %v2022_v59, 5 }
  0xe1   :  { %v470_v31 = vmul.f32 %v466_v44, %v456_v3  ;;  %v471_v61 = vmul.f32 %v467_v53, %v456_v3  ;;  %v472_v17 = vmul.f32 %v468_v16, %v456_v3  ;;  %v473_v39 = vmul.f32 %v469_v49, %v456_v3  ;;  %v634_v43 = vpop.permute.xlu2 %633 }
  0xe2   :  { %1762 = vset.pattern.permute.xlu1 %v1817_v9  ;;  %v521_v37 = vmul.f32 %v517_v24, %v2361_v33  ;;  %v3275_v3 = vperm.slane %v2012_v57, 5 }
  0xe3   :  { %v474_v5 = vadd.f32 %v470_v31, %v450_v56  ;;  %v475_v27 = vadd.f32 %v471_v61, %v451_v13  ;;  %v476_v6 = vadd.f32 %v472_v17, %v452_v7  ;;  %v477_v50 = vadd.f32 %v473_v39, %v453_v11 }
  0xe4   :  { %v507_v31 = vperm.slane %v1910_v1, 7  ;;  %v508_v61 = vperm.slane %v1905_v0, 3  ;;  %v551_v39 = vperm.slane %v2017_v58, 5 }
  0xe5   :  { %v2365_v40 = vadd.f32 %v494_v41, %v474_v5  ;;  %v2367_v8 = vadd.f32 %v495_v63, %v475_v27  ;;  %v2369_v38 = vadd.f32 %v496_v42, %v476_v6  ;;  %v501_v45 = vadd.f32 %v497_v54, %v477_v50 }
  0xe6   :  { %v506_v54 = vperm.slane %v1910_v1, 3  ;;  %v3270_v27 = vperm.slane %v2012_v57, 6  ;;  %v515_v24 = vperm.slane %v507_v31, 3 }
  0xe7   :  { %v525_v29 = vadd.f32 %v521_v37, %v501_v45  ;;  %v3269_v37 = vperm.slane %v2029_v62, 6 }
  0xe8   :  { %v538_v36 = vpop.permute.xlu1 %537  ;;  %v636_v63 = vpop.permute.xlu0 %635  ;;  %v514_v45 = vperm.slane %v506_v54, 3  ;;  %v3271_v54 = vperm.slane %v2022_v59, 6 }
  0xe9   :  { %v549_v9 = vsel %vm545_vm4, %v2353_v4, %v538_v36  ;;  %v2387_v12 = vpop.permute.xlu2 %639  ;;  %v548_v17 = vsel %vm545_vm4, %v538_v36, %v2323_v22  ;;  %v644_v1 = vsel %vm641_vm5, %v634_v43, %v636_v63  ;;  %v516_v36 = vperm.slane %v508_v61, 3 }
  0xea   :  { %v557_v18 = vmul.f32 %v3273_v30, %v549_v9  ;;  %v2422_v50 = vmul.f32 %v3275_v3, %v548_v17 }
  0xec   :  { %v565_v48 = vperm.slane %v557_v18, 0  ;;  %v597_v20 = vperm.slane %v557_v18, 2  ;;  %v581_v47 = vperm.slane %v557_v18, 1  ;;  %v613_v11 = vperm.slane %v557_v18, 3 }
  0xed   :  { %v645_v18 = vsel %vm641_vm5, %v2387_v12, %v634_v43 }
  0xee   :  { %v569_v26 = vmul.f32 %v565_v48, %v2381_v19  ;;  %v601_v56 = vmul.f32 %v597_v20, %v2371_v32  ;;  %v562_v48 = vperm.slane %v2422_v50, 0  ;;  %v520_v20 = vmul.f32 %v516_v36, %v2361_v33 }
  0xf0   :  { %v573_v52 = vadd.f32 %v569_v26, %v525_v29  ;;  %v542_v14 = vpop.permute.xlu1 %541  ;;  %v2441_v29 = vpop.permute.xlu0 %655  ;;  %v524_v17 = vadd.f32 %v520_v20, %v2369_v38 }
  0xf1   :  { %v2393_v16 = vpop.permute.xlu2 %687  ;;  %v547_v5 = vsel %vm545_vm4, %v2323_v22, %v542_v14  ;;  %v546_v0 = vsel %vm545_vm4, %v542_v14, %v2353_v4  ;;  %v2434_v4 = vmul.f32 %v3270_v27, %v644_v1  ;;  %v519_v14 = vmul.f32 %v515_v24, %v2361_v33 }
  0xf2   :  { %v2426_v22 = vmul.f32 %v551_v39, %v547_v5  ;;  %v2430_v9 = vmul.f32 %v3276_v60, %v546_v0  ;;  %v578_v1 = vperm.slane %v2422_v50, 1 }
  0xf3   :  { %v658_v43 = vperm.slane %v2434_v4, 0  ;;  %v523_v61 = vadd.f32 %v519_v14, %v2367_v8 }
  0xf4   :  { %v611_v27 = vperm.slane %v2426_v22, 3  ;;  %v612_v30 = vperm.slane %v2430_v9, 3 }
  0xf5   :  { %v2470_v24 = vmul.f32 %v658_v43, %v2441_v29 }
  0xf8   :  { %v2384_v25 = vpop.permute.xlu1 %575 }
  0xf9   :  { %v585_v10 = vmul.f32 %v581_v47, %v2384_v25  ;;  %v2397_v42 = vpop.permute.xlu2 %729  ;;  %v563_v47 = vperm.slane %v2426_v22, 0  ;;  %v582_v20 = vmul.f32 %v578_v1, %v2384_v25  ;;  %v3274_v1 = vperm.slane %v2012_v57, 7 }
  0xfb   :  { %v589_v13 = vadd.f32 %v585_v10, %v573_v52  ;;  %v518_v52 = vmul.f32 %v514_v45, %v2361_v33  ;;  %v564_v10 = vperm.slane %v2430_v9, 0  ;;  %v3272_v33 = vperm.slane %v2017_v58, 6 }
  0xfc   :  { %v567_v5 = vmul.f32 %v563_v47, %v2381_v19 }
  0xfd   :  { %v605_v7 = vadd.f32 %v601_v56, %v589_v13  ;;  %v2452_v56 = vmul.f32 %v3269_v37, %v645_v18  ;;  %v594_v13 = vperm.slane %v2422_v50, 2  ;;  %v522_v31 = vadd.f32 %v518_v52, %v2365_v40  ;;  %v732_v52 = vpop.permute.xlu0 %731 }
  0xfe   :  { %v568_v0 = vmul.f32 %v564_v10, %v2381_v19  ;;  %v579_v18 = vperm.slane %v2426_v22, 1  ;;  %v610_v40 = vperm.slane %v2422_v50, 3  ;;  %v571_v14 = vadd.f32 %v567_v5, %v523_v61 }
  0xff   :  { %v661_v45 = vperm.slane %v2452_v56, 0  ;;  %v598_v36 = vmul.f32 %v594_v13, %v2371_v32  ;;  %v674_v61 = vperm.slane %v2434_v4, 1  ;;  %v677_v5 = vperm.slane %v2452_v56, 1 }
 0x100   :  { %v583_v47 = vmul.f32 %v579_v18, %v2384_v25  ;;  %v572_v10 = vadd.f32 %v568_v0, %v524_v17  ;;  %v740_v17 = vsel %vm737_vm6, %v2397_v42, %v732_v52  ;;  %v706_v0 = vperm.slane %v2434_v4, 3 }
 0x101   :  { %v2390_v44 = vpop.permute.xlu1 %607  ;;  %v2443_v26 = vpop.permute.xlu2 %735  ;;  %v665_v43 = vmul.f32 %v661_v45, %v2441_v29 }
 0x102   :  { %v617_v53 = vmul.f32 %v613_v11, %v2390_v44  ;;  %v566_v11 = vmul.f32 %v562_v48, %v2381_v19  ;;  %v580_v48 = vperm.slane %v2430_v9, 1  ;;  %v693_v19 = vperm.slane %v2452_v56, 2 }
 0x103   :  { %v587_v18 = vadd.f32 %v583_v47, %v571_v14  ;;  %v615_v14 = vmul.f32 %v611_v27, %v2390_v44 }
 0x104   :  { %v2395_v49 = vadd.f32 %v617_v53, %v605_v7  ;;  %v690_v53 = vperm.slane %v2434_v4, 2  ;;  %v570_v38 = vadd.f32 %v566_v11, %v522_v31  ;;  %v595_v31 = vperm.slane %v2426_v22, 2 }
 0x106   :  { %v586_v45 = vadd.f32 %v582_v20, %v570_v38  ;;  %v614_v38 = vmul.f32 %v610_v40, %v2390_v44  ;;  %v616_v40 = vmul.f32 %v612_v30, %v2390_v44  ;;  %v2548_v30 = vld [vmem:[%s3223_s1 + $0x10] sm:$0xff] }
 0x107   :  { %v3278_v44 = vperm.slane %v2548_v30, 7 }
 0x109   :  { %v638_v41 = vpop.permute.xlu1 %637  ;;  %v2491_v11 = vpop.permute.xlu2 %783 }
 0x10a   :  { %v643_v8 = vsel %vm641_vm5, %v636_v63, %v638_v41  ;;  %v642_v50 = vsel %vm641_vm5, %v638_v41, %v2387_v12  ;;  %v584_v63 = vmul.f32 %v580_v48, %v2384_v25  ;;  %v596_v41 = vperm.slane %v2430_v9, 2 }
 0x10b   :  { %v2489_v13 = vmul.f32 %v3272_v33, %v643_v8  ;;  %v2500_v25 = vmul.f32 %v3271_v54, %v642_v50  ;;  %v2507_v8 = vmul.f32 %v690_v53, %v2393_v16  ;;  %v2510_v48 = vmul.f32 %v693_v19, %v2393_v16 }
 0x10c   :  { %v588_v37 = vadd.f32 %v584_v63, %v572_v10  ;;  %v709_v54 = vperm.slane %v2452_v56, 3  ;;  %v599_v33 = vmul.f32 %v595_v31, %v2371_v32  ;;  %v2520_v53 = vmul.f32 %v3274_v1, %v740_v17  ;;  %v2528_v56 = vld [vmem:[%s3223_s1 + $0x18] sm:$0xff]  ;;  %v2537_v63 = vpop.permute.xlu0 %751  ;;  %v2542_v31 = vld [vmem:[%s3223_s1 + $0x8] sm:$0xff] }
 0x10d   :  { %v659_v50 = vperm.slane %v2489_v13, 0  ;;  %v600_v19 = vmul.f32 %v596_v41, %v2371_v32  ;;  %v660_v22 = vperm.slane %v2500_v25, 0  ;;  %v3277_v20 = vperm.slane %v2528_v56, 7 }
 0x10e   :  { %v602_v9 = vadd.f32 %v598_v36, %v586_v45  ;;  %v603_v47 = vadd.f32 %v599_v33, %v587_v18  ;;  %v741_v32 = vsel %vm737_vm6, %v2443_v26, %v2397_v42  ;;  %v743_v36 = vperm.slane %v2542_v31, 7 }
 0x10f   :  { %v604_v10 = vadd.f32 %v600_v19, %v588_v37  ;;  %v663_v27 = vmul.f32 %v659_v50, %v2441_v29  ;;  %v754_v37 = vperm.slane %v2520_v53, 0  ;;  %v786_v33 = vperm.slane %v2520_v53, 2 }
 0x110   :  { %v618_v42 = vadd.f32 %v614_v38, %v602_v9  ;;  %v619_v45 = vadd.f32 %v615_v14, %v603_v47  ;;  %v664_v18 = vmul.f32 %v660_v22, %v2441_v29  ;;  %v675_v50 = vperm.slane %v2489_v13, 1 }
 0x111   :  { %v2413_v6 = vpop.permute.xlu1 %671  ;;  %v2561_v19 = vmul.f32 %v3277_v20, %v741_v32  ;;  %v826_v1 = vpop.permute.xlu2 %825  ;;  %v620_v38 = vadd.f32 %v616_v40, %v604_v10  ;;  %v676_v14 = vperm.slane %v2500_v25, 1  ;;  %v669_v40 = vadd.f32 %v665_v43, %v2395_v49 }
 0x112   :  { %v678_v9 = vmul.f32 %v674_v61, %v2413_v6  ;;  %v681_v3 = vmul.f32 %v677_v5, %v2413_v6  ;;  %v667_v60 = vadd.f32 %v663_v27, %v619_v45  ;;  %v679_v29 = vmul.f32 %v675_v50, %v2413_v6 }
 0x113   :  { %v666_v47 = vadd.f32 %v2470_v24, %v618_v42  ;;  %v691_v61 = vperm.slane %v2489_v13, 2  ;;  %v758_v5 = vmul.f32 %v754_v37, %v2537_v63  ;;  %v668_v32 = vadd.f32 %v664_v18, %v620_v38  ;;  %v1800_v38 = vld [vmem:[%s3223_s1 + $0x20] ss:$0 sm:$0xff] }
 0x114   :  { %v789_v45 = vperm.slane %v2561_v19, 2  ;;  %v692_v49 = vperm.slane %v2500_v25, 2  ;;  %v683_v24 = vadd.f32 %v679_v29, %v667_v60  ;;  %v707_v43 = vperm.slane %v2489_v13, 3 }
 0x115   :  { %v682_v27 = vadd.f32 %v678_v9, %v666_v47  ;;  %v695_v37 = vmul.f32 %v691_v61, %v2393_v16  ;;  %v708_v18 = vperm.slane %v2500_v25, 3  ;;  %v773_v20 = vperm.slane %v2561_v19, 1 }
 0x116   :  { %v696_v29 = vmul.f32 %v692_v49, %v2393_v16  ;;  %v1801_v16 = vld [vmem:[%s3223_s1 + $0x38] ss:$0 sm:$0xff] }
 0x117   :  { %v698_v25 = vadd.f32 %v2507_v8, %v682_v27  ;;  %v699_v47 = vadd.f32 %v695_v37, %v683_v24  ;;  %v802_v24 = vperm.slane %v2520_v53, 3  ;;  %v793_v37 = vmul.f32 %v789_v45, %v2491_v11 }
 0x11a   :  { %v2456_v7 = vpop.permute.xlu1 %703 }
 0x11b   :  { %v713_v50 = vmul.f32 %v709_v54, %v2456_v7  ;;  %v711_v13 = vmul.f32 %v707_v43, %v2456_v7 }
 0x122   :  { %v734_v12 = vpop.permute.xlu1 %733 }
 0x123   :  { %v739_v41 = vsel %vm737_vm6, %v732_v52, %v734_v12  ;;  %v738_v52 = vsel %vm737_vm6, %v734_v12, %v2443_v26  ;;  %v680_v26 = vmul.f32 %v676_v14, %v2413_v6  ;;  %v757_v12 = vperm.slane %v2561_v19, 0  ;;  %v828_v6 = vpop.permute.xlu0 %827 }
 0x124   :  { %v2572_v22 = vmul.f32 %v743_v36, %v739_v41  ;;  %v2582_v10 = vmul.f32 %v3278_v44, %v738_v52  ;;  %v685_v41 = vadd.f32 %v681_v3, %v669_v40  ;;  %v710_v3 = vmul.f32 %v706_v0, %v2456_v7 }
 0x125   :  { %v684_v60 = vadd.f32 %v680_v26, %v668_v32  ;;  %v836_v52 = vsel %vm833_vm7, %v826_v1, %v828_v6  ;;  %v761_v54 = vmul.f32 %v757_v12, %v2537_v63  ;;  %v770_v0 = vperm.slane %v2520_v53, 1  ;;  %v832_v32 = vpop.permute.xlu2 %831 }
 0x126   :  { %v755_v42 = vperm.slane %v2572_v22, 0  ;;  %v756_v9 = vperm.slane %v2582_v10, 0  ;;  %v701_v4 = vadd.f32 %v2510_v48, %v685_v41  ;;  %v712_v40 = vmul.f32 %v708_v18, %v2456_v7 }
 0x127   :  { %v714_v26 = vadd.f32 %v710_v3, %v698_v25  ;;  %v2612_v44 = vmul.f32 %v1800_v38, %v836_v52  ;;  %v700_v8 = vadd.f32 %v696_v29, %v684_v60  ;;  %v715_v48 = vadd.f32 %v711_v13, %v699_v47  ;;  %v1802_v3 = vld [vmem:[%s3223_s1 + $0x28] ss:$0 sm:$0xff] }
 0x128   :  { %v759_v61 = vmul.f32 %v755_v42, %v2537_v63  ;;  %v717_v43 = vadd.f32 %v713_v50, %v701_v4  ;;  %v760_v12 = vmul.f32 %v756_v9, %v2537_v63  ;;  %v771_v27 = vperm.slane %v2572_v22, 1 }
 0x129   :  { %v790_v7 = vmul.f32 %v786_v33, %v2491_v11  ;;  %v837_v49 = vsel %vm833_vm7, %v832_v32, %v826_v1  ;;  %v716_v42 = vadd.f32 %v712_v40, %v700_v8  ;;  %v1803_v33 = vld [vmem:[%s3223_s1 + $0x30] ss:$0 sm:$0xff]  ;;  %v762_v50 = vadd.f32 %v758_v5, %v714_v26 }
 0x12a   :  { %v2555_v17 = vpop.permute.xlu1 %767  ;;  %v763_v18 = vadd.f32 %v759_v61, %v715_v48  ;;  %v765_v38 = vadd.f32 %v761_v54, %v717_v43  ;;  %v772_v1 = vperm.slane %v2582_v10, 1  ;;  %v850_v53 = vperm.slane %v2612_v44, 0 }
 0x12b   :  { %v774_v41 = vmul.f32 %v770_v0, %v2555_v17  ;;  %v775_v63 = vmul.f32 %v771_v27, %v2555_v17  ;;  %v787_v60 = vperm.slane %v2572_v22, 2  ;;  %v764_v45 = vadd.f32 %v760_v12, %v716_v42  ;;  %v848_v52 = vpop.permute.xlu0 %847 }
 0x12c   :  { %v777_v13 = vmul.f32 %v773_v20, %v2555_v17  ;;  %v2636_v9 = vmul.f32 %v1801_v16, %v837_v49  ;;  %v776_v4 = vmul.f32 %v772_v1, %v2555_v17  ;;  %v803_v47 = vperm.slane %v2572_v22, 3 }
 0x12d   :  { %v778_v0 = vadd.f32 %v774_v41, %v762_v50  ;;  %v779_v29 = vadd.f32 %v775_v63, %v763_v18  ;;  %v788_v20 = vperm.slane %v2582_v10, 2  ;;  %v805_v26 = vperm.slane %v2561_v19, 3 }
 0x12e   :  { %v854_v17 = vmul.f32 %v850_v53, %v848_v52  ;;  %v781_v8 = vadd.f32 %v777_v13, %v765_v38  ;;  %v791_v48 = vmul.f32 %v787_v60, %v2491_v11  ;;  %v804_v22 = vperm.slane %v2582_v10, 3 }
 0x12f   :  { %v794_v27 = vadd.f32 %v790_v7, %v778_v0  ;;  %v853_v19 = vperm.slane %v2636_v9, 0  ;;  %v869_v53 = vperm.slane %v2636_v9, 1 }
 0x130   :  { %v795_v41 = vadd.f32 %v791_v48, %v779_v29 }
 0x131   :  { %v857_v13 = vmul.f32 %v853_v19, %v848_v52 }
 0x133   :  { %v2602_v14 = vpop.permute.xlu1 %799 }
 0x134   :  { %v806_v43 = vmul.f32 %v802_v24, %v2602_v14  ;;  %v809_v49 = vmul.f32 %v805_v26, %v2602_v14  ;;  %v792_v24 = vmul.f32 %v788_v20, %v2491_v11  ;;  %v808_v18 = vmul.f32 %v804_v22, %v2602_v14 }
 0x135   :  { %v901_v22 = vperm.slane %v2636_v9, 3 }
 0x136   :  { %v810_v63 = vadd.f32 %v806_v43, %v794_v27 }
 0x138   :  { %v858_v11 = vadd.f32 %v854_v17, %v810_v63 }
 0x13b   :  { %v830_v25 = vpop.permute.xlu1 %829 }
 0x13c   :  { %v834_v5 = vsel %vm833_vm7, %v830_v25, %v832_v32  ;;  %v835_v54 = vsel %vm833_vm7, %v828_v6, %v830_v25  ;;  %v807_v32 = vmul.f32 %v803_v47, %v2602_v14  ;;  %v780_v6 = vadd.f32 %v776_v4, %v764_v45 }
 0x13d   :  { %v843_v40 = vmul.f32 %v1802_v3, %v835_v54  ;;  %v2644_v61 = vmul.f32 %v1803_v33, %v834_v5  ;;  %v866_v3 = vperm.slane %v2612_v44, 1  ;;  %v797_v33 = vadd.f32 %v793_v37, %v781_v8  ;;  %v880_v5 = vpop.permute.xlu2 %879 }
 0x13e   :  { %v811_v50 = vadd.f32 %v807_v32, %v795_v41  ;;  %v796_v10 = vadd.f32 %v792_v24, %v780_v6  ;;  %v882_v14 = vperm.slane %v2612_v44, 2  ;;  %v885_v47 = vperm.slane %v2636_v9, 2 }
 0x13f   :  { %v851_v12 = vperm.slane %v843_v40, 0  ;;  %v852_v16 = vperm.slane %v2644_v61, 0  ;;  %v867_v38 = vperm.slane %v843_v40, 1  ;;  %v813_v45 = vadd.f32 %v809_v49, %v797_v33 }
 0x140   :  { %v812_v0 = vadd.f32 %v808_v18, %v796_v10  ;;  %v868_v54 = vperm.slane %v2644_v61, 1  ;;  %v883_v37 = vperm.slane %v843_v40, 2  ;;  %v886_v32 = vmul.f32 %v882_v14, %v880_v5 }
 0x141   :  { %v855_v42 = vmul.f32 %v851_v12, %v848_v52  ;;  %v856_v1 = vmul.f32 %v852_v16, %v848_v52  ;;  %v861_v8 = vadd.f32 %v857_v13, %v813_v45  ;;  %v884_v52 = vperm.slane %v2644_v61, 2 }
 0x142   :  { %v898_v12 = vperm.slane %v2612_v44, 3  ;;  %v887_v17 = vmul.f32 %v883_v37, %v880_v5  ;;  %v899_v27 = vperm.slane %v843_v40, 3  ;;  %v889_v16 = vmul.f32 %v885_v47, %v880_v5 }
 0x143   :  { %v864_v7 = vpop.permute.xlu1 %863  ;;  %v859_v25 = vadd.f32 %v855_v42, %v811_v50  ;;  %v860_v20 = vadd.f32 %v856_v1, %v812_v0  ;;  %v900_v19 = vperm.slane %v2644_v61, 3  ;;  %v888_v33 = vmul.f32 %v884_v52, %v880_v5 }
 0x144   :  { %v870_v60 = vmul.f32 %v866_v3, %v864_v7  ;;  %v871_v4 = vmul.f32 %v867_v38, %v864_v7  ;;  %v873_v29 = vmul.f32 %v869_v53, %v864_v7  ;;  %v872_v26 = vmul.f32 %v868_v54, %v864_v7 }
 0x145   :  { %v914_v7 = vpop.permute.xlu2 %913  ;;  %v3286_v47 = vmov 30  }
 0x146   :  { %v874_v43 = vadd.f32 %v870_v60, %v858_v11  ;;  %v875_v48 = vadd.f32 %v871_v4, %v859_v25  ;;  %v877_v6 = vadd.f32 %v873_v29, %v861_v8  ;;  %v876_v41 = vadd.f32 %v872_v26, %v860_v20  ;;  %v924_v60 = vpop.permute.xlu0 %923 }
 0x147   :  { %v3285_v29 = vmov 13   ;;  %v3287_v26 = vmov 16   ;;  %v3288_v8 = vmov 15  }
 0x148   :  { %v890_v42 = vadd.f32 %v886_v32, %v874_v43  ;;  %v891_v3 = vadd.f32 %v887_v17, %v875_v48  ;;  %v893_v38 = vadd.f32 %v889_v16, %v877_v6  ;;  %v892_v1 = vadd.f32 %v888_v33, %v876_v41  ;;  %v2775_v33 = vld [vmem:[%s3225_s5] sm:$0xf] }
 0x149   :  { %v3289_v48 = vmov 19   ;;  %v3290_v32 = vmov 18   ;;  %v3291_v6 = vmov 20   ;;  %v3292_v16 = vperm.slane %v2012_v57, 0 }
 0x14c   :  { %v896_v49 = vpop.permute.xlu1 %895 }
 0x14d   :  { %v902_v24 = vmul.f32 %v898_v12, %v896_v49  ;;  %v903_v18 = vmul.f32 %v899_v27, %v896_v49  ;;  %v905_v63 = vmul.f32 %v901_v22, %v896_v49  ;;  %v904_v50 = vmul.f32 %v900_v19, %v896_v49 }
 0x14e   :  { %v3294_v19 = vmov 22  }
 0x14f   :  { %v906_v44 = vadd.f32 %v902_v24, %v890_v42  ;;  %v907_v10 = vadd.f32 %v903_v18, %v891_v3  ;;  %v909_v40 = vadd.f32 %v905_v63, %v893_v38  ;;  %v908_v45 = vadd.f32 %v904_v50, %v892_v1 }
 0x151   :  { %v916_v53 = vmul.f32 %v914_v7, %v906_v44  ;;  %v917_v9 = vmul.f32 %v914_v7, %v907_v10  ;;  %v919_v61 = vmul.f32 %v914_v7, %v909_v40  ;;  %v918_v11 = vmul.f32 %v914_v7, %v908_v45 }
 0x152   :  { %v3295_v10 = vperm.slane %v2022_v59, 0  ;;  %v3296_v40 = vperm.slane %v2029_v62, 0 }
 0x153   :  { %v926_v13 = vadd.f32 %v924_v60, %v916_v53  ;;  %v927_v25 = vadd.f32 %v924_v60, %v917_v9  ;;  %v929_v14 = vadd.f32 %v924_v60, %v919_v61  ;;  %v928_v5 = vadd.f32 %v924_v60, %v918_v11 }
 0x155   :  { %v2666_v4 = vmax.f32 %v926_v13, 0.0  ;;  %v2668_v0 = vmax.f32 %v927_v25, 0.0  ;;  %v2676_v54 = vmax.f32 %v929_v14, 0.0  ;;  %v2678_v37 = vmax.f32 %v928_v5, 0.0 }
 0x157   :  { %1097 = vrot.lane.b32.xlu0 %v2668_v0, %s1822_s12  ;;  %936 = vrot.lane.b32.xlu2 %v2668_v0, %s1816_s0 }
 0x158   :  { %934 = vrot.lane.b32.xlu1 %v2666_v4, %s1816_s0 }
 0x15f   :  { %1112 = vperm.xlu0 %1769, %v2279_v35   ;;  %940 = vrot.lane.b32.xlu2 %v2676_v54, %s1816_s0 }
 0x160   :  { %938 = vrot.lane.b32.xlu1 %v2678_v37, %s1816_s0 }
 0x167   :  { %1177 = vrot.lane.b32.xlu0 %v2668_v0, %s1827_s13  ;;  %984 = vperm.xlu2 %1763, %v2279_v35  }
 0x168   :  { %968 = vperm.xlu1 %1762, %v2279_v35   ;;  %1773 = vset.pattern.permute.xlu0 %v1832_v34  ;;  %v3281_v34 = vmov 9  }
 0x16f   :  { %1192 = vperm.xlu0 %1773, %v2279_v35   ;;  %1017 = vrot.lane.b32.xlu2 %v2668_v0, %s1818_s11 }
 0x170   :  { %1015 = vrot.lane.b32.xlu1 %v2666_v4, %s1818_s11  ;;  %1767 = vset.pattern.permute.xlu2 %v1821_v21  ;;  %v3280_v21 = vmov 25  }
 0x171   :  { %1766 = vset.pattern.permute.xlu1 %v1819_v15  ;;  %v3279_v15 = vmov 10  }
 0x177   :  { %1778 = vset.pattern.permute.xlu0 %v1838_v46  ;;  %1021 = vrot.lane.b32.xlu2 %v2676_v54, %s1818_s11  ;;  %v3283_v46 = vmov 11  }
 0x178   :  { %1019 = vrot.lane.b32.xlu1 %v2678_v37, %s1818_s11  ;;  %1272 = vperm.xlu0 %1778, %v2279_v35  }
 0x17f   :  { %1064 = vperm.xlu2 %1767, %v2279_v35  }
 0x180   :  { %1048 = vperm.xlu1 %1766, %v2279_v35   ;;  %1323 = vrot.lane.b32.xlu0 %v2678_v37, %s1839_s15 }
 0x181   :  { %1782 = vset.pattern.permute.xlu0 %v1842_v51  ;;  %v3284_v51 = vmov 29  }
 0x187   :  { %1095 = vrot.lane.b32.xlu2 %v2666_v4, %s1822_s12 }
 0x188   :  { %1768 = vset.pattern.permute.xlu1 %v1824_v23  ;;  %1352 = vperm.xlu0 %1782, %v2279_v35   ;;  %v3282_v23 = vmov 14  }
 0x189   :  { %1080 = vperm.xlu1 %1768, %v2279_v35   ;;  %1771 = vset.pattern.permute.xlu2 %v3279_v15 }
 0x18f   :  { %1101 = vrot.lane.b32.xlu2 %v2676_v54, %s1822_s12 }
 0x190   :  { %1403 = vrot.lane.b32.xlu0 %v2678_v37, %s1837_s14 }
 0x191   :  { %1099 = vrot.lane.b32.xlu1 %v2678_v37, %s1822_s12  ;;  %1786 = vset.pattern.permute.xlu0 %v3280_v21 }
 0x192   :  { %1770 = vset.pattern.permute.xlu1 %v3281_v34 }
 0x197   :  { %1144 = vperm.xlu2 %1771, %v2279_v35  }
 0x198   :  { %1432 = vperm.xlu0 %1786, %v2279_v35  }
 0x199   :  { %1128 = vperm.xlu1 %1770, %v2279_v35  }
 0x19f   :  { %1175 = vrot.lane.b32.xlu2 %v2666_v4, %s1827_s13 }
 0x1a0   :  { %1483 = vrot.lane.b32.xlu0 %v2678_v37, %s1843_s24  ;;  %1775 = vset.pattern.permute.xlu2 %v3282_v23 }
 0x1a1   :  { %1772 = vset.pattern.permute.xlu1 %v3283_v46  ;;  %1790 = vset.pattern.permute.xlu0 %v3284_v51  ;;  %v3297_v46 = vmov 23  }
 0x1a2   :  { %1160 = vperm.xlu1 %1772, %v2279_v35  }
 0x1a7   :  { %1181 = vrot.lane.b32.xlu2 %v2676_v54, %s1827_s13 }
 0x1a8   :  { %1512 = vperm.xlu0 %1790, %v2279_v35  }
 0x1aa   :  { %1179 = vrot.lane.b32.xlu1 %v2678_v37, %s1827_s13 }
 0x1ab   :  { %1774 = vset.pattern.permute.xlu1 %v3285_v29 }
 0x1af   :  { %1224 = vperm.xlu2 %1775, %v2279_v35  }
 0x1b0   :  { %1791 = vset.pattern.permute.xlu0 %v3286_v47 }
 0x1b1   :  { %v937_v20 = vpop.permute.xlu2 %936  ;;  %1528 = vperm.xlu0 %1791, %v2279_v35  }
 0x1b2   :  { %1208 = vperm.xlu1 %1774, %v2279_v35  }
 0x1b7   :  { %1777 = vset.pattern.permute.xlu2 %v3287_v26 }
 0x1b8   :  { %1256 = vperm.xlu2 %1777, %v2279_v35  }
 0x1b9   :  { %v941_v43 = vpop.permute.xlu2 %940  ;;  %1796 = vset.pattern.permute.xlu0 %v1856_v28  ;;  %v953_v28 = vpop.permute.xlu0 %952 }
 0x1ba   :  { %1776 = vset.pattern.permute.xlu1 %v3288_v8  ;;  %1624 = vperm.xlu0 %1796, %v2279_v35  }
 0x1bb   :  { %1240 = vperm.xlu1 %1776, %v2279_v35  }
 0x1c0   :  { %1780 = vset.pattern.permute.xlu2 %v3289_v48 }
 0x1c1   :  { %v985_v52 = vpop.permute.xlu2 %984  ;;  %1304 = vperm.xlu2 %1780, %v2279_v35   ;;  %v1001_v50 = vpop.permute.xlu0 %1000 }
 0x1c2   :  { %1799 = vset.pattern.permute.xlu0 %v1813_v2 }
 0x1c3   :  { %1779 = vset.pattern.permute.xlu1 %v3290_v32 }
 0x1c4   :  { %1288 = vperm.xlu1 %1779, %v2279_v35   ;;  %v3293_v35 = vperm.slane %v2017_v58, 0 }
 0x1c9   :  { %v2754_v12 = vpop.permute.xlu2 %1017  ;;  %1321 = vrot.lane.b32.xlu2 %v2668_v0, %s1839_s15 }
 0x1ca   :  { %v935_v17 = vpop.permute.xlu1 %934  ;;  %1781 = vset.pattern.permute.xlu2 %v3291_v6 }
 0x1cb   :  { %v944_v27 = vsel %vm64_vm0, %v935_v17, %v937_v20  ;;  %v945_v22 = vsel %vm64_vm0, %v941_v43, %v935_v17 }
 0x1cc   :  { %v946_v41 = vmul.f32 %v945_v22, %v3292_v16  ;;  %v947_v49 = vmul.f32 %v944_v27, %v3293_v35  ;;  %1319 = vrot.lane.b32.xlu1 %v2666_v4, %s1839_s15 }
 0x1cd   :  { %1783 = vset.pattern.permute.xlu1 %v3294_v19 }
 0x1ce   :  { %v987_v42 = vperm.slane %v946_v41, 2  ;;  %v988_v24 = vperm.slane %v947_v49, 2  ;;  %v955_v9 = vperm.slane %v946_v41, 0  ;;  %v956_v60 = vperm.slane %v947_v49, 0 }
 0x1cf   :  { %v1003_v11 = vperm.slane %v946_v41, 3  ;;  %v1004_v14 = vperm.slane %v947_v49, 3  ;;  %v971_v5 = vperm.slane %v946_v41, 1  ;;  %v972_v15 = vperm.slane %v947_v49, 1 }
 0x1d0   :  { %v991_v18 = vmul.f32 %v987_v42, %v985_v52  ;;  %v992_v63 = vmul.f32 %v988_v24, %v985_v52  ;;  %v959_v51 = vmul.f32 %v955_v9, %v953_v28  ;;  %v960_v29 = vmul.f32 %v956_v60, %v953_v28 }
 0x1d1   :  { %v2770_v3 = vpop.permute.xlu2 %1021  ;;  %1336 = vperm.xlu2 %1781, %v2775_v33   ;;  %v1007_v19 = vmul.f32 %v1003_v11, %v1001_v50  ;;  %v1008_v42 = vmul.f32 %v1004_v14, %v1001_v50  ;;  %v3301_v14 = vmov 26  }
 0x1d2   :  { %v939_v7 = vpop.permute.xlu1 %938 }
 0x1d3   :  { %v942_v38 = vsel %vm64_vm0, %v939_v7, %v941_v43  ;;  %v943_v44 = vsel %vm64_vm0, %v937_v20, %v939_v7 }
 0x1d4   :  { %v948_v1 = vmul.f32 %v943_v44, %v3295_v10  ;;  %v949_v53 = vmul.f32 %v942_v38, %v3296_v40  ;;  %1325 = vrot.lane.b32.xlu1 %v2676_v54, %s1839_s15 }
 0x1d6   :  { %v957_v45 = vperm.slane %v948_v1, 0  ;;  %v958_v13 = vperm.slane %v949_v53, 0  ;;  %v989_v25 = vperm.slane %v948_v1, 2  ;;  %v990_v61 = vperm.slane %v949_v53, 2 }
 0x1d7   :  { %v973_v47 = vperm.slane %v948_v1, 1  ;;  %v974_v20 = vperm.slane %v949_v53, 1  ;;  %v1005_v26 = vperm.slane %v948_v1, 3  ;;  %v1006_v43 = vperm.slane %v949_v53, 3 }
 0x1d8   :  { %v993_v21 = vmul.f32 %v989_v25, %v985_v52  ;;  %v994_v34 = vmul.f32 %v990_v61, %v985_v52  ;;  %v961_v8 = vmul.f32 %v957_v45, %v953_v28  ;;  %v962_v48 = vmul.f32 %v958_v13, %v953_v28  ;;  %v1033_v52 = vpop.permute.xlu0 %1032 }
 0x1d9   :  { %v2788_v23 = vpop.permute.xlu2 %1064  ;;  %1784 = vset.pattern.permute.xlu2 %v3297_v46  ;;  %v1009_v24 = vmul.f32 %v1005_v26, %v1001_v50  ;;  %v1010_v7 = vmul.f32 %v1006_v43, %v1001_v50  ;;  %v3299_v50 = vperm.slane %v2012_v57, 1  ;;  %v3300_v61 = vperm.slane %v2017_v58, 1 }
 0x1da   :  { %v969_v32 = vpop.permute.xlu1 %968  ;;  %1384 = vperm.xlu2 %1784, %v2775_v33  }
 0x1db   :  { %v975_v17 = vmul.f32 %v971_v5, %v969_v32  ;;  %v976_v6 = vmul.f32 %v972_v15, %v969_v32  ;;  %v977_v27 = vmul.f32 %v973_v47, %v969_v32  ;;  %v978_v22 = vmul.f32 %v974_v20, %v969_v32 }
 0x1dc   :  { %1368 = vperm.xlu1 %1783, %v2775_v33  }
 0x1dd   :  { %v979_v16 = vadd.f32 %v975_v17, %v959_v51  ;;  %v980_v41 = vadd.f32 %v976_v6, %v960_v29  ;;  %v981_v35 = vadd.f32 %v977_v27, %v961_v8  ;;  %v982_v49 = vadd.f32 %v978_v22, %v962_v48 }
 0x1de   :  { %v3302_v6 = vperm.slane %v2017_v58, 2  ;;  %v3303_v22 = vperm.slane %v2012_v57, 2 }
 0x1df   :  { %v995_v38 = vadd.f32 %v991_v18, %v979_v16  ;;  %v996_v28 = vadd.f32 %v992_v63, %v980_v41  ;;  %v997_v44 = vadd.f32 %v993_v21, %v981_v35  ;;  %v998_v10 = vadd.f32 %v994_v34, %v982_v49 }
 0x1e0   :  { %v3298_v63 = vmov 24   ;;  %v2813_v5 = vpop.permute.xlu0 %1097  ;;  %v3304_v49 = vperm.slane %v2022_v59, 1 }
 0x1e1   :  { %v1096_v1 = vpop.permute.xlu2 %1095  ;;  %v1011_v40 = vadd.f32 %v1007_v19, %v995_v38  ;;  %v1012_v53 = vadd.f32 %v1008_v42, %v996_v28  ;;  %v1013_v9 = vadd.f32 %v1009_v24, %v997_v44  ;;  %v1014_v60 = vadd.f32 %v1010_v7, %v998_v10 }
 0x1e2   :  { %v1016_v45 = vpop.permute.xlu1 %1015  ;;  %1401 = vrot.lane.b32.xlu2 %v2668_v0, %s1837_s14  ;;  %v1105_v51 = vsel %vm257_vm2, %v1096_v1, %v2813_v5  ;;  %v3305_v42 = vperm.slane %v2029_v62, 1 }
 0x1e3   :  { %v1025_v13 = vsel %vm161_vm1, %v1016_v45, %v2754_v12  ;;  %v1026_v18 = vsel %vm161_vm1, %v2770_v3, %v1016_v45  ;;  %1785 = vset.pattern.permute.xlu2 %v3298_v63  ;;  %v2832_v27 = vmul.f32 %v1105_v51, %v3302_v6 }
 0x1e4   :  { %v2804_v25 = vmul.f32 %v1026_v18, %v3299_v50  ;;  %v2808_v11 = vmul.f32 %v1025_v13, %v3300_v61  ;;  %1399 = vrot.lane.b32.xlu1 %v2666_v4, %s1837_s14 }
 0x1e5   :  { %1787 = vset.pattern.permute.xlu1 %v3301_v14 }
 0x1e6   :  { %v1035_v15 = vperm.slane %v2804_v25, 0  ;;  %v1036_v21 = vperm.slane %v2808_v11, 0  ;;  %v1067_v34 = vperm.slane %v2804_v25, 2  ;;  %v1068_v46 = vperm.slane %v2808_v11, 2 }
 0x1e7   :  { %v1051_v13 = vperm.slane %v2804_v25, 1  ;;  %v1052_v18 = vperm.slane %v2808_v11, 1 }
 0x1e8   :  { %v1039_v29 = vmul.f32 %v1035_v15, %v1033_v52  ;;  %v1040_v47 = vmul.f32 %v1036_v21, %v1033_v52  ;;  %v1071_v20 = vmul.f32 %v1067_v34, %v2788_v23  ;;  %v1072_v26 = vmul.f32 %v1068_v46, %v2788_v23 }
 0x1e9   :  { %v2824_v43 = vpop.permute.xlu2 %1101  ;;  %v3306_v34 = vmov 27  }
 0x1ea   :  { %v1106_v8 = vsel %vm257_vm2, %v2824_v43, %v1096_v1  ;;  %v1020_v48 = vpop.permute.xlu1 %1019  ;;  %1416 = vperm.xlu2 %1785, %v2775_v33   ;;  %v1043_v32 = vadd.f32 %v1039_v29, %v1011_v40  ;;  %v1044_v17 = vadd.f32 %v1040_v47, %v1012_v53 }
 0x1eb   :  { %v2836_v16 = vmul.f32 %v1106_v8, %v3303_v22  ;;  %v1023_v41 = vsel %vm161_vm1, %v1020_v48, %v2770_v3  ;;  %v1024_v35 = vsel %vm161_vm1, %v2754_v12, %v1020_v48  ;;  %v1148_v3 = vperm.slane %v2832_v27, 2  ;;  %v1113_v22 = vpop.permute.xlu0 %1112 }
 0x1ec   :  { %v1029_v19 = vmul.f32 %v1024_v35, %v3304_v49  ;;  %v1030_v24 = vmul.f32 %v1023_v41, %v3305_v42  ;;  %1405 = vrot.lane.b32.xlu1 %v2676_v54, %s1837_s14  ;;  %v1116_v49 = vperm.slane %v2832_v27, 0 }
 0x1ed   :  { %v1147_v10 = vperm.slane %v2836_v16, 2  ;;  %v1115_v42 = vperm.slane %v2836_v16, 0 }
 0x1ee   :  { %v1037_v7 = vperm.slane %v1029_v19, 0  ;;  %v1038_v38 = vperm.slane %v1030_v24, 0  ;;  %v1069_v28 = vperm.slane %v1029_v19, 2  ;;  %v1070_v44 = vperm.slane %v1030_v24, 2 }
 0x1ef   :  { %v1053_v63 = vperm.slane %v1029_v19, 1  ;;  %v1054_v50 = vperm.slane %v1030_v24, 1 }
 0x1f0   :  { %v1041_v1 = vmul.f32 %v1037_v7, %v1033_v52  ;;  %v1042_v40 = vmul.f32 %v1038_v38, %v1033_v52  ;;  %v1073_v12 = vmul.f32 %v1069_v28, %v2788_v23  ;;  %v1074_v53 = vmul.f32 %v1070_v44, %v2788_v23 }
 0x1f1   :  { %v2854_v45 = vpop.permute.xlu2 %1144  ;;  %v1083_v38 = vperm.slane %v2804_v25, 3  ;;  %v1084_v28 = vperm.slane %v2808_v11, 3  ;;  %v1085_v44 = vperm.slane %v1029_v19, 3  ;;  %v3308_v25 = vmov 31  }
 0x1f2   :  { %v2859_v61 = vmul.f32 %v1147_v10, %v2854_v45  ;;  %v2862_v14 = vmul.f32 %v1148_v3, %v2854_v45  ;;  %v1045_v15 = vadd.f32 %v1041_v1, %v1013_v9  ;;  %v1046_v52 = vadd.f32 %v1042_v40, %v1014_v60  ;;  %v1049_v21 = vpop.permute.xlu1 %1048  ;;  %1788 = vset.pattern.permute.xlu2 %v3306_v34 }
 0x1f3   :  { %v1055_v23 = vmul.f32 %v1051_v13, %v1049_v21  ;;  %v1056_v46 = vmul.f32 %v1052_v18, %v1049_v21  ;;  %v1057_v51 = vmul.f32 %v1053_v63, %v1049_v21  ;;  %v1058_v29 = vmul.f32 %v1054_v50, %v1049_v21  ;;  %1464 = vperm.xlu2 %1788, %v2775_v33   ;;  %v2877_v13 = vpop.permute.xlu0 %1177 }
 0x1f4   :  { %1448 = vperm.xlu1 %1787, %v2775_v33   ;;  %v1086_v10 = vperm.slane %v1030_v24, 3  ;;  %v3307_v1 = vmov 28   ;;  %v1119_v40 = vmul.f32 %v1115_v42, %v1113_v22  ;;  %v3309_v34 = vperm.slane %v2017_v58, 3 }
 0x1f5   :  { %v1059_v47 = vadd.f32 %v1055_v23, %v1043_v32  ;;  %v1060_v8 = vadd.f32 %v1056_v46, %v1044_v17  ;;  %v1061_v48 = vadd.f32 %v1057_v51, %v1045_v15  ;;  %v1062_v6 = vadd.f32 %v1058_v29, %v1046_v52 }
 0x1f6   :  { %v3310_v46 = vperm.slane %v2012_v57, 3 }
 0x1f7   :  { %v1075_v41 = vadd.f32 %v1071_v20, %v1059_v47  ;;  %v1076_v35 = vadd.f32 %v1072_v26, %v1060_v8  ;;  %v1077_v9 = vadd.f32 %v1073_v12, %v1061_v48  ;;  %v1078_v60 = vadd.f32 %v1074_v53, %v1062_v6 }
 0x1f8   :  { %v1120_v12 = vmul.f32 %v1116_v49, %v1113_v22  ;;  %v3311_v8 = vperm.slane %v2022_v59, 2  ;;  %v3312_v6 = vperm.slane %v2029_v62, 2 }
 0x1f9   :  { %v1176_v7 = vpop.permute.xlu2 %1175 }
 0x1fa   :  { %v1185_v50 = vsel %vm353_vm3, %v1176_v7, %v2877_v13 }
 0x1fb   :  { %v1081_v32 = vpop.permute.xlu1 %1080  ;;  %1481 = vrot.lane.b32.xlu2 %v2668_v0, %s1843_s24  ;;  %v2890_v23 = vmul.f32 %v1185_v50, %v3309_v34 }
 0x1fc   :  { %v1087_v17 = vmul.f32 %v1083_v38, %v1081_v32  ;;  %v1088_v20 = vmul.f32 %v1084_v28, %v1081_v32  ;;  %v1089_v26 = vmul.f32 %v1085_v44, %v1081_v32  ;;  %v1090_v3 = vmul.f32 %v1086_v10, %v1081_v32  ;;  %1479 = vrot.lane.b32.xlu1 %v2666_v4, %s1843_s24 }
 0x1fd   :  { %1789 = vset.pattern.permute.xlu2 %v3307_v1  ;;  %1792 = vset.pattern.permute.xlu1 %v3308_v25 }
 0x1fe   :  { %v1091_v11 = vadd.f32 %v1087_v17, %v1075_v41  ;;  %v1092_v19 = vadd.f32 %v1088_v20, %v1076_v35  ;;  %v1093_v24 = vadd.f32 %v1089_v26, %v1077_v9  ;;  %v1094_v53 = vadd.f32 %v1090_v3, %v1078_v60 }
 0x200   :  { %v1123_v18 = vadd.f32 %v1119_v40, %v1091_v11  ;;  %v1124_v63 = vadd.f32 %v1120_v12, %v1092_v19 }
 0x201   :  { %v2882_v15 = vpop.permute.xlu2 %1181 }
 0x202   :  { %v1186_v52 = vsel %vm353_vm3, %v2882_v15, %v1176_v7  ;;  %v1131_v7 = vperm.slane %v2836_v16, 1 }
 0x203   :  { %v1100_v21 = vpop.permute.xlu1 %1099  ;;  %1496 = vperm.xlu2 %1789, %v2775_v33   ;;  %v2894_v51 = vmul.f32 %v1186_v52, %v3310_v46 }
 0x204   :  { %v1103_v29 = vsel %vm257_vm2, %v1100_v21, %v2824_v43  ;;  %v1104_v47 = vsel %vm257_vm2, %v2813_v5, %v1100_v21  ;;  %1485 = vrot.lane.b32.xlu1 %v2676_v54, %s1843_s24  ;;  %v1228_v43 = vperm.slane %v2890_v23, 2  ;;  %v1132_v5 = vperm.slane %v2832_v27, 1 }
 0x205   :  { %v1109_v48 = vmul.f32 %v1104_v47, %v3311_v8  ;;  %v1110_v41 = vmul.f32 %v1103_v29, %v3312_v6  ;;  %v1227_v42 = vperm.slane %v2894_v51, 2  ;;  %v1196_v47 = vperm.slane %v2890_v23, 0 }
 0x206   :  { %v1195_v8 = vperm.slane %v2894_v51, 0  ;;  %v1163_v6 = vperm.slane %v2836_v16, 3 }
 0x207   :  { %v1117_v35 = vperm.slane %v1109_v48, 0  ;;  %v1118_v9 = vperm.slane %v1110_v41, 0  ;;  %v1149_v60 = vperm.slane %v1109_v48, 2  ;;  %v1150_v49 = vperm.slane %v1110_v41, 2 }
 0x208   :  { %v1133_v26 = vperm.slane %v1109_v48, 1  ;;  %v1134_v3 = vperm.slane %v1110_v41, 1 }
 0x209   :  { %v2912_v38 = vpop.permute.xlu2 %1224  ;;  %v1121_v28 = vmul.f32 %v1117_v35, %v1113_v22  ;;  %v1122_v44 = vmul.f32 %v1118_v9, %v1113_v22  ;;  %v1153_v10 = vmul.f32 %v1149_v60, %v2854_v45  ;;  %v1154_v32 = vmul.f32 %v1150_v49, %v2854_v45 }
 0x20a   :  { %v2917_v17 = vmul.f32 %v1227_v42, %v2912_v38  ;;  %v2920_v20 = vmul.f32 %v1228_v43, %v2912_v38  ;;  %v3313_v45 = vmov 32   ;;  %v1166_v35 = vperm.slane %v1110_v41, 3 }
 0x20b   :  { %v1125_v1 = vadd.f32 %v1121_v28, %v1093_v24  ;;  %v1126_v40 = vadd.f32 %v1122_v44, %v1094_v53  ;;  %v1129_v12 = vpop.permute.xlu1 %1128  ;;  %1561 = vrot.lane.b32.xlu2 %v2668_v0, %s1848_s25 }
 0x20c   :  { %v1135_v25 = vmul.f32 %v1131_v7, %v1129_v12  ;;  %v1136_v22 = vmul.f32 %v1132_v5, %v1129_v12  ;;  %v1137_v11 = vmul.f32 %v1133_v26, %v1129_v12  ;;  %v1138_v19 = vmul.f32 %v1134_v3, %v1129_v12  ;;  %1559 = vrot.lane.b32.xlu1 %v2666_v4, %s1848_s25 }
 0x20d   :  { %1793 = vset.pattern.permute.xlu2 %v3313_v45  ;;  %v3314_v3 = vperm.slane %v2022_v59, 3 }
 0x20e   :  { %v1139_v50 = vadd.f32 %v1135_v25, %v1123_v18  ;;  %v1140_v52 = vadd.f32 %v1136_v22, %v1124_v63  ;;  %v1141_v21 = vadd.f32 %v1137_v11, %v1125_v1  ;;  %v1142_v34 = vadd.f32 %v1138_v19, %v1126_v40 }
 0x20f   :  { %v1164_v18 = vperm.slane %v2832_v27, 3  ;;  %v1165_v63 = vperm.slane %v1109_v48, 3  ;;  %v3315_v40 = vperm.slane %v2029_v62, 3 }
 0x210   :  { %v1155_v24 = vadd.f32 %v2859_v61, %v1139_v50  ;;  %v1156_v53 = vadd.f32 %v2862_v14, %v1140_v52  ;;  %v1157_v46 = vadd.f32 %v1153_v10, %v1141_v21  ;;  %v1158_v29 = vadd.f32 %v1154_v32, %v1142_v34  ;;  %v1193_v14 = vpop.permute.xlu0 %1192 }
 0x211   :  { %v1199_v7 = vmul.f32 %v1195_v8, %v1193_v14  ;;  %v1200_v5 = vmul.f32 %v1196_v47, %v1193_v14  ;;  %v1212_v34 = vperm.slane %v2890_v23, 1 }
 0x212   :  { %v2937_v43 = vpop.permute.xlu2 %1256 }
 0x213   :  { %1565 = vrot.lane.b32.xlu2 %v2676_v54, %s1848_s25 }
 0x214   :  { %1563 = vrot.lane.b32.xlu1 %v2678_v37, %s1848_s25  ;;  %v1161_v61 = vpop.permute.xlu1 %1160 }
 0x215   :  { %v1167_v9 = vmul.f32 %v1163_v6, %v1161_v61  ;;  %v1168_v60 = vmul.f32 %v1164_v18, %v1161_v61  ;;  %v1169_v49 = vmul.f32 %v1165_v63, %v1161_v61  ;;  %v1170_v42 = vmul.f32 %v1166_v35, %v1161_v61 }
 0x217   :  { %v1171_v28 = vadd.f32 %v1167_v9, %v1155_v24  ;;  %v1172_v44 = vadd.f32 %v1168_v60, %v1156_v53  ;;  %v1173_v16 = vadd.f32 %v1169_v49, %v1157_v46  ;;  %v1174_v10 = vadd.f32 %v1170_v42, %v1158_v29 }
 0x218   :  { %v3316_v53 = vmov 34   ;;  %v3317_v46 = vmov 33  }
 0x219   :  { %v1203_v27 = vadd.f32 %v1199_v7, %v1171_v28  ;;  %v1204_v48 = vadd.f32 %v1200_v5, %v1172_v44  ;;  %v1639_v44 = vld [vmem:[%s3227_s6] sm:$0xf] }
 0x21b   :  { %1576 = vperm.xlu2 %1793, %v2775_v33   ;;  %v2951_v25 = vpop.permute.xlu2 %1304 }
 0x21c   :  { %1544 = vperm.xlu1 %1792, %v2775_v33   ;;  %v1180_v41 = vpop.permute.xlu1 %1179 }
 0x21d   :  { %v1183_v32 = vsel %vm353_vm3, %v1180_v41, %v2882_v15  ;;  %v1184_v26 = vsel %vm353_vm3, %v2877_v13, %v1180_v41  ;;  %v1211_v13 = vperm.slane %v2894_v51, 1  ;;  %v1262_v41 = vperm.slane %v2676_v54, 0 }
 0x21e   :  { %v1189_v1 = vmul.f32 %v1184_v26, %v3314_v3  ;;  %v1190_v12 = vmul.f32 %v1183_v32, %v3315_v40  ;;  %v1259_v32 = vperm.slane %v2666_v4, 0 }
 0x220   :  { %v1197_v22 = vperm.slane %v1189_v1, 0  ;;  %v1198_v11 = vperm.slane %v1190_v12, 0  ;;  %v1229_v19 = vperm.slane %v1189_v1, 2  ;;  %v1230_v45 = vperm.slane %v1190_v12, 2 }
 0x221   :  { %v1213_v24 = vperm.slane %v1189_v1, 1  ;;  %v1214_v8 = vperm.slane %v1190_v12, 1  ;;  %v1263_v40 = vmul.f32 %v1259_v32, %v2937_v43 }
 0x222   :  { %v1201_v50 = vmul.f32 %v1197_v22, %v1193_v14  ;;  %v1202_v52 = vmul.f32 %v1198_v11, %v1193_v14  ;;  %v1233_v15 = vmul.f32 %v1229_v19, %v2912_v38  ;;  %v1234_v21 = vmul.f32 %v1230_v45, %v2912_v38 }
 0x223   :  { %1795 = vset.pattern.permute.xlu2 %v3316_v53  ;;  %v2963_v5 = vpop.permute.xlu2 %1321  ;;  %v1266_v11 = vmul.f32 %v1262_v41, %v2937_v43 }
 0x224   :  { %1794 = vset.pattern.permute.xlu1 %v3317_v46  ;;  %v1205_v29 = vadd.f32 %v1201_v50, %v1173_v16  ;;  %v1206_v47 = vadd.f32 %v1202_v52, %v1174_v10  ;;  %v1209_v6 = vpop.permute.xlu1 %1208  ;;  %1608 = vperm.xlu2 %1795, %v2775_v33   ;;  %v1243_v16 = vperm.slane %v2894_v51, 3  ;;  %v1245_v10 = vperm.slane %v1189_v1, 3 }
 0x225   :  { %v1215_v18 = vmul.f32 %v1211_v13, %v1209_v6  ;;  %v1216_v63 = vmul.f32 %v1212_v34, %v1209_v6  ;;  %v1217_v35 = vmul.f32 %v1213_v24, %v1209_v6  ;;  %1592 = vperm.xlu1 %1794, %v2775_v33   ;;  %v1218_v38 = vmul.f32 %v1214_v8, %v1209_v6 }
 0x226   :  { %v1244_v33 = vperm.slane %v2890_v23, 3  ;;  %v1275_v13 = vperm.slane %v2666_v4, 1  ;;  %v1276_v34 = vperm.slane %v2668_v0, 1  ;;  %v1310_v8 = vperm.slane %v2676_v54, 3 }
 0x227   :  { %v1219_v61 = vadd.f32 %v1215_v18, %v1203_v27  ;;  %v1220_v14 = vadd.f32 %v1216_v63, %v1204_v48  ;;  %v1221_v9 = vadd.f32 %v1217_v35, %v1205_v29  ;;  %v1222_v60 = vadd.f32 %v1218_v38, %v1206_v47 }
 0x228   :  { %v1246_v27 = vperm.slane %v1190_v12, 3  ;;  %v1261_v48 = vperm.slane %v2678_v37, 0  ;;  %v1308_v47 = vperm.slane %v2668_v0, 3  ;;  %v1307_v6 = vperm.slane %v2666_v4, 3 }
 0x229   :  { %v1235_v49 = vadd.f32 %v2917_v17, %v1219_v61  ;;  %v1236_v42 = vadd.f32 %v2920_v20, %v1220_v14  ;;  %v1237_v7 = vadd.f32 %v1233_v15, %v1221_v9  ;;  %v1238_v28 = vadd.f32 %v1234_v21, %v1222_v60  ;;  %v1649_v17 = vld [vmem:[%s3228_s7] sm:$0xf]  ;;  %v1273_v21 = vpop.permute.xlu0 %1272 }
 0x22a   :  { %v1260_v20 = vperm.slane %v2668_v0, 0  ;;  %v1265_v22 = vmul.f32 %v1261_v48, %v2937_v43  ;;  %v1278_v15 = vperm.slane %v2676_v54, 1  ;;  %v1279_v18 = vmul.f32 %v1275_v13, %v1273_v21 }
 0x22b   :  { %v1280_v63 = vmul.f32 %v1276_v34, %v1273_v21  ;;  %v2991_v61 = vpop.permute.xlu2 %1336  ;;  %v1292_v14 = vperm.slane %v2668_v0, 2  ;;  %v1293_v9 = vperm.slane %v2678_v37, 2  ;;  %v1294_v60 = vperm.slane %v2676_v54, 2 }
 0x22c   :  { %1798 = vset.pattern.permute.xlu2 %v1813_v2  ;;  %v1264_v12 = vmul.f32 %v1260_v20, %v2937_v43  ;;  %v1309_v43 = vperm.slane %v2678_v37, 3  ;;  %v1282_v38 = vmul.f32 %v1278_v15, %v1273_v21  ;;  %v1311_v20 = vmul.f32 %v1307_v6, %v2951_v25 }
 0x22d   :  { %1797 = vset.pattern.permute.xlu1 %v1813_v2  ;;  %v1241_v51 = vpop.permute.xlu1 %1240  ;;  %1652 = vperm.xlu2 %1798, %v1649_v17   ;;  %v1277_v2 = vperm.slane %v2678_v37, 1  ;;  %v1312_v48 = vmul.f32 %v1308_v47, %v2951_v25  ;;  %v1314_v37 = vmul.f32 %v1310_v8, %v2951_v25  ;;  %v3319_v47 = vperm.slane %v2012_v57, 5 }
 0x22e   :  { %v1247_v23 = vmul.f32 %v1243_v16, %v1241_v51  ;;  %v1248_v26 = vmul.f32 %v1244_v33, %v1241_v51  ;;  %v1249_v3 = vmul.f32 %v1245_v10, %v1241_v51  ;;  %v1250_v1 = vmul.f32 %v1246_v27, %v1241_v51  ;;  %1642 = vperm.xlu1 %1797, %v1639_v44  }
 0x22f   :  { %v1281_v35 = vmul.f32 %v1277_v2, %v1273_v21  ;;  %v1313_v0 = vmul.f32 %v1309_v43, %v2951_v25  ;;  %v3320_v8 = vperm.slane %v2029_v62, 5 }
 0x230   :  { %v1251_v19 = vadd.f32 %v1247_v23, %v1235_v49  ;;  %v1252_v45 = vadd.f32 %v1248_v26, %v1236_v42  ;;  %v1253_v50 = vadd.f32 %v1249_v3, %v1237_v7  ;;  %v1254_v52 = vadd.f32 %v1250_v1, %v1238_v28 }
 0x231   :  { %v1291_v49 = vperm.slane %v2666_v4, 2 }
 0x232   :  { %v1267_v24 = vadd.f32 %v1263_v40, %v1251_v19  ;;  %v1268_v53 = vadd.f32 %v1264_v12, %v1252_v45  ;;  %v1269_v46 = vadd.f32 %v1265_v22, %v1253_v50  ;;  %v1270_v29 = vadd.f32 %v1266_v11, %v1254_v52  ;;  %v1324_v11 = vpop.permute.xlu0 %1323 }
 0x233   :  { %v1328_v52 = vsel %vm545_vm4, %v2963_v5, %v1324_v11 }
 0x234   :  { %v1284_v42 = vadd.f32 %v1280_v63, %v1268_v53  ;;  %v1285_v7 = vadd.f32 %v1281_v35, %v1269_v46  ;;  %v1286_v28 = vadd.f32 %v1282_v38, %v1270_v29  ;;  %v1283_v16 = vadd.f32 %v1279_v18, %v1267_v24  ;;  %v3001_v1 = vpop.permute.xlu2 %1384 }
 0x235   :  { %v1332_v24 = vmul.f32 %v1328_v52, %v551_v39  ;;  %v3318_v53 = vperm.slane %v2022_v59, 5 }
 0x236   :  { %v1289_v44 = vpop.permute.xlu1 %1288 }
 0x237   :  { %v1295_v33 = vmul.f32 %v1291_v49, %v1289_v44  ;;  %v1296_v10 = vmul.f32 %v1292_v14, %v1289_v44  ;;  %v1297_v27 = vmul.f32 %v1293_v9, %v1289_v44  ;;  %v1298_v17 = vmul.f32 %v1294_v60, %v1289_v44 }
 0x238   :  { %v1356_v18 = vperm.slane %v1332_v24, 1  ;;  %v3321_v49 = vperm.slane %v2017_v58, 6  ;;  %v1388_v44 = vperm.slane %v1332_v24, 3 }
 0x239   :  { %v1299_v54 = vadd.f32 %v1295_v33, %v1283_v16  ;;  %v1300_v41 = vadd.f32 %v1296_v10, %v1284_v42  ;;  %v1301_v4 = vadd.f32 %v1297_v27, %v1285_v7  ;;  %v1302_v32 = vadd.f32 %v1298_v17, %v1286_v28 }
 0x23a   :  { %v1353_v25 = vpop.permute.xlu0 %1352  ;;  %v1372_v28 = vperm.slane %v1332_v24, 2 }
 0x23b   :  { %v1315_v51 = vadd.f32 %v1311_v20, %v1299_v54  ;;  %v1316_v23 = vadd.f32 %v1312_v48, %v1300_v41  ;;  %v1317_v26 = vadd.f32 %v1313_v0, %v1301_v4  ;;  %v1318_v3 = vadd.f32 %v1314_v37, %v1302_v32 }
 0x23c   :  { %v1402_v22 = vpop.permute.xlu2 %1401  ;;  %v1360_v33 = vmul.f32 %v1356_v18, %v1353_v25  ;;  %v1392_v48 = vmul.f32 %v1388_v44, %v3001_v1 }
 0x23e   :  { %v1320_v40 = vpop.permute.xlu1 %1319 }
 0x23f   :  { %v1329_v21 = vsel %vm545_vm4, %v1320_v40, %v2963_v5  ;;  %v1340_v5 = vperm.slane %v1332_v24, 0 }
 0x240   :  { %v3027_v43 = vmul.f32 %v1329_v21, %v3319_v47 }
 0x241   :  { %v1344_v35 = vmul.f32 %v1340_v5, %v2991_v61 }
 0x242   :  { %v1404_v29 = vpop.permute.xlu0 %1403  ;;  %v1339_v38 = vperm.slane %v3027_v43, 0  ;;  %v1355_v27 = vperm.slane %v3027_v43, 1 }
 0x243   :  { %v1408_v63 = vsel %vm641_vm5, %v1402_v22, %v1404_v29  ;;  %v1348_v7 = vadd.f32 %v1344_v35, %v1316_v23  ;;  %v1371_v23 = vperm.slane %v3027_v43, 2 }
 0x244   :  { %v3005_v45 = vpop.permute.xlu2 %1416  ;;  %v3045_v42 = vmul.f32 %v1408_v63, %v3321_v49  ;;  %v1343_v10 = vmul.f32 %v1339_v38, %v2991_v61 }
 0x245   :  { %v1364_v41 = vadd.f32 %v1360_v33, %v1348_v7 }
 0x246   :  { %v1326_v12 = vpop.permute.xlu1 %1325  ;;  %v1436_v37 = vperm.slane %v3045_v42, 1  ;;  %v1347_v52 = vadd.f32 %v1343_v10, %v1315_v51  ;;  %v3324_v51 = vperm.slane %v2029_v62, 6  ;;  %v1420_v5 = vperm.slane %v3045_v42, 0 }
 0x247   :  { %v1327_v15 = vsel %vm545_vm4, %v1324_v11, %v1326_v12  ;;  %v1330_v13 = vsel %vm545_vm4, %v1326_v12, %v1320_v40  ;;  %v1359_v11 = vmul.f32 %v1355_v27, %v1353_v25  ;;  %v1452_v10 = vperm.slane %v3045_v42, 2 }
 0x248   :  { %v3023_v46 = vmul.f32 %v1327_v15, %v3318_v53  ;;  %v3031_v6 = vmul.f32 %v1330_v13, %v3320_v8  ;;  %v3322_v53 = vperm.slane %v2022_v59, 6  ;;  %v3323_v8 = vperm.slane %v2012_v57, 6 }
 0x24a   :  { %v1341_v39 = vperm.slane %v3023_v46, 0  ;;  %v1342_v14 = vperm.slane %v3031_v6, 0  ;;  %v1357_v58 = vperm.slane %v3023_v46, 1  ;;  %v3054_v0 = vpop.permute.xlu0 %1432  ;;  %v1358_v54 = vperm.slane %v3031_v6, 1 }
 0x24b   :  { %v1373_v13 = vperm.slane %v3023_v46, 2  ;;  %v1374_v24 = vperm.slane %v3031_v6, 2  ;;  %v1390_v62 = vperm.slane %v3031_v6, 3  ;;  %v1440_v6 = vmul.f32 %v1436_v37, %v3054_v0 }
 0x24c   :  { %v1345_v16 = vmul.f32 %v1341_v39, %v2991_v61  ;;  %v1346_v17 = vmul.f32 %v1342_v14, %v2991_v61  ;;  %v1361_v21 = vmul.f32 %v1357_v58, %v1353_v25  ;;  %v1362_v47 = vmul.f32 %v1358_v54, %v1353_v25 }
 0x24d   :  { %v3010_v2 = vpop.permute.xlu2 %1464  ;;  %v1363_v39 = vadd.f32 %v1359_v11, %v1347_v52  ;;  %v1389_v14 = vperm.slane %v3023_v46, 3 }
 0x24e   :  { %v3003_v19 = vpop.permute.xlu1 %1368  ;;  %v1349_v32 = vadd.f32 %v1345_v16, %v1317_v26  ;;  %v1350_v12 = vadd.f32 %v1346_v17, %v1318_v3  ;;  %v1468_v16 = vperm.slane %v3045_v42, 3 }
 0x24f   :  { %v1376_v20 = vmul.f32 %v1372_v28, %v3003_v19  ;;  %v1377_v59 = vmul.f32 %v1373_v13, %v3003_v19  ;;  %v1378_v35 = vmul.f32 %v1374_v24, %v3003_v19 }
 0x250   :  { %v1365_v18 = vadd.f32 %v1361_v21, %v1349_v32  ;;  %v1366_v25 = vadd.f32 %v1362_v47, %v1350_v12 }
 0x251   :  { %v1380_v15 = vadd.f32 %v1376_v20, %v1364_v41  ;;  %v1393_v20 = vmul.f32 %v1389_v14, %v3001_v1 }
 0x252   :  { %v1381_v33 = vadd.f32 %v1377_v59, %v1365_v18  ;;  %v1382_v46 = vadd.f32 %v1378_v35, %v1366_v25  ;;  %v1472_v35 = vmul.f32 %v1468_v16, %v3010_v2 }
 0x253   :  { %v1396_v38 = vadd.f32 %v1392_v48, %v1380_v15  ;;  %v1394_v48 = vmul.f32 %v1390_v62, %v3001_v1 }
 0x255   :  { %v3039_v9 = vpop.permute.xlu2 %1481  ;;  %v1398_v12 = vadd.f32 %v1394_v48, %v1382_v46 }
 0x256   :  { %v1400_v50 = vpop.permute.xlu1 %1399 }
 0x257   :  { %v1409_v61 = vsel %vm641_vm5, %v1400_v50, %v1402_v22  ;;  %v1375_v22 = vmul.f32 %v1371_v23, %v3003_v19  ;;  %v1484_v19 = vpop.permute.xlu0 %1483 }
 0x258   :  { %v1488_v58 = vsel %vm737_vm6, %v3039_v9, %v1484_v19 }
 0x259   :  { %v1379_v7 = vadd.f32 %v1375_v22, %v1363_v39  ;;  %v3112_v11 = vmul.f32 %v1488_v58, %v743_v36  ;;  %v3325_v36 = vperm.slane %v2012_v57, 7  ;;  %v3327_v39 = vperm.slane %v2528_v56, 7 }
 0x25d   :  { %v3083_v63 = vpop.permute.xlu2 %1496 }
 0x25e   :  { %v1406_v34 = vpop.permute.xlu1 %1405 }
 0x25f   :  { %v1407_v4 = vsel %vm641_vm5, %v1404_v29, %v1406_v34  ;;  %v1410_v40 = vsel %vm641_vm5, %v1406_v34, %v1400_v50  ;;  %v3074_v50 = vmul.f32 %v1409_v61, %v3323_v8  ;;  %v1387_v34 = vperm.slane %v3027_v43, 3 }
 0x260   :  { %v3069_v26 = vmul.f32 %v1407_v4, %v3322_v53  ;;  %v3078_v3 = vmul.f32 %v1410_v40, %v3324_v51  ;;  %v1424_v43 = vmul.f32 %v1420_v5, %v3005_v45  ;;  %v1397_v61 = vadd.f32 %v1393_v20, %v1381_v33  ;;  %v1513_v33 = vpop.permute.xlu0 %1512 }
 0x261   :  { %v1419_v28 = vperm.slane %v3074_v50, 0  ;;  %v1391_v27 = vmul.f32 %v1387_v34, %v3001_v1  ;;  %v1435_v32 = vperm.slane %v3074_v50, 1  ;;  %v1451_v13 = vperm.slane %v3074_v50, 2 }
 0x262   :  { %v1421_v49 = vperm.slane %v3069_v26, 0  ;;  %v1422_v44 = vperm.slane %v3078_v3, 0  ;;  %v1428_v17 = vadd.f32 %v1424_v43, %v1396_v38  ;;  %v1437_v37 = vperm.slane %v3069_v26, 1 }
 0x263   :  { %v1395_v4 = vadd.f32 %v1391_v27, %v1379_v7  ;;  %v1423_v42 = vmul.f32 %v1419_v28, %v3005_v45  ;;  %v1438_v52 = vperm.slane %v3078_v3, 1  ;;  %v1439_v47 = vmul.f32 %v1435_v32, %v3054_v0 }
 0x264   :  { %v1425_v54 = vmul.f32 %v1421_v49, %v3005_v45  ;;  %v1426_v23 = vmul.f32 %v1422_v44, %v3005_v45  ;;  %v1444_v15 = vadd.f32 %v1440_v6, %v1428_v17  ;;  %v1441_v8 = vmul.f32 %v1437_v37, %v3054_v0 }
 0x265   :  { %v3115_v21 = vpop.permute.xlu2 %1561  ;;  %v1427_v31 = vadd.f32 %v1423_v42, %v1395_v4  ;;  %v1453_v51 = vperm.slane %v3069_v26, 2  ;;  %v1454_v34 = vperm.slane %v3078_v3, 2  ;;  %v1442_v18 = vmul.f32 %v1438_v52, %v3054_v0 }
 0x266   :  { %v3041_v60 = vpop.permute.xlu1 %1448  ;;  %v1429_v45 = vadd.f32 %v1425_v54, %v1397_v61  ;;  %v1467_v38 = vperm.slane %v3074_v50, 3  ;;  %v1500_v28 = vperm.slane %v3112_v11, 0  ;;  %v1469_v56 = vperm.slane %v3069_v26, 3 }
 0x267   :  { %v1456_v40 = vmul.f32 %v1452_v10, %v3041_v60  ;;  %v1455_v59 = vmul.f32 %v1451_v13, %v3041_v60  ;;  %v1457_v62 = vmul.f32 %v1453_v51, %v3041_v60  ;;  %v1443_v0 = vadd.f32 %v1439_v47, %v1427_v31 }
 0x268   :  { %v1445_v14 = vadd.f32 %v1441_v8, %v1429_v45  ;;  %v1458_v7 = vmul.f32 %v1454_v34, %v3041_v60  ;;  %v1470_v16 = vperm.slane %v3078_v3, 3  ;;  %v1516_v27 = vperm.slane %v3112_v11, 1  ;;  %v1529_v8 = vpop.permute.xlu0 %1528 }
 0x269   :  { %v1460_v5 = vadd.f32 %v1456_v40, %v1444_v15  ;;  %v1459_v10 = vadd.f32 %v1455_v59, %v1443_v0  ;;  %v1504_v46 = vmul.f32 %v1500_v28, %v3083_v63  ;;  %v1471_v17 = vmul.f32 %v1467_v38, %v3010_v2 }
 0x26a   :  { %v1461_v60 = vadd.f32 %v1457_v62, %v1445_v14  ;;  %v1473_v26 = vmul.f32 %v1469_v56, %v3010_v2  ;;  %v1474_v54 = vmul.f32 %v1470_v16, %v3010_v2  ;;  %v1520_v32 = vmul.f32 %v1516_v27, %v1513_v33  ;;  %v1812_v62 = vld [vmem:[%s3223_s1 + $0x30] ss:$0 sm:$0xff] }
 0x26b   :  { %v1476_v44 = vadd.f32 %v1472_v35, %v1460_v5  ;;  %v1548_v13 = vperm.slane %v3112_v11, 3  ;;  %v1810_v35 = vld [vmem:[%s3223_s1 + $0x38] ss:$0 sm:$0xff] }
 0x26c   :  { %v1477_v61 = vadd.f32 %v1473_v26, %v1461_v60 }
 0x26d   :  { %v1508_v48 = vadd.f32 %v1504_v46, %v1476_v44  ;;  %v1566_v58 = vpop.permute.xlu2 %1565 }
 0x26e   :  { %v1480_v29 = vpop.permute.xlu1 %1479 }
 0x26f   :  { %v1489_v1 = vsel %vm737_vm6, %v1480_v29, %v3039_v9  ;;  %v1430_v9 = vadd.f32 %v1426_v23, %v1398_v12  ;;  %v1532_v23 = vperm.slane %v3112_v11, 2  ;;  %v1524_v2 = vadd.f32 %v1520_v32, %v1508_v48 }
 0x270   :  { %v3125_v22 = vmul.f32 %v1489_v1, %v3325_v36 }
 0x271   :  { %v1446_v43 = vadd.f32 %v1442_v18, %v1430_v9 }
 0x272   :  { %v1515_v3 = vperm.slane %v3125_v22, 1  ;;  %v1531_v45 = vperm.slane %v3125_v22, 2  ;;  %v1547_v5 = vperm.slane %v3125_v22, 3 }
 0x273   :  { %v1462_v6 = vadd.f32 %v1458_v7, %v1446_v43  ;;  %v1536_v7 = vmul.f32 %v1532_v23, %v1529_v8 }
 0x274   :  { %v1519_v15 = vmul.f32 %v1515_v3, %v1513_v33 }
 0x275   :  { %v1478_v40 = vadd.f32 %v1474_v54, %v1462_v6  ;;  %v1577_v59 = vpop.permute.xlu2 %1576 }
 0x276   :  { %v1486_v41 = vpop.permute.xlu1 %1485 }
 0x277   :  { %v1487_v24 = vsel %vm737_vm6, %v1484_v19, %v1486_v41  ;;  %v1490_v53 = vsel %vm737_vm6, %v1486_v41, %v1480_v29  ;;  %v3326_v29 = vperm.slane %v2548_v30, 7  ;;  %v1499_v30 = vperm.slane %v3125_v22, 0  ;;  %v1811_v22 = vld [vmem:[%s3223_s1 + $0x28] ss:$0 sm:$0xff] }
 0x278   :  { %v3138_v57 = vmul.f32 %v1490_v53, %v3327_v39  ;;  %v1475_v41 = vadd.f32 %v1471_v17, %v1459_v10 }
 0x279   :  { %v3134_v25 = vmul.f32 %v1487_v24, %v3326_v29  ;;  %v1503_v20 = vmul.f32 %v1499_v30, %v3083_v63  ;;  %v1809_v29 = vld [vmem:[%s3223_s1 + $0x20] ss:$0 sm:$0xff]  ;;  %v1535_v30 = vmul.f32 %v1531_v45, %v1529_v8 }
 0x27a   :  { %v1502_v19 = vperm.slane %v3138_v57, 0  ;;  %v1518_v12 = vperm.slane %v3138_v57, 1  ;;  %v1534_v31 = vperm.slane %v3138_v57, 2 }
 0x27b   :  { %v1501_v50 = vperm.slane %v3134_v25, 0  ;;  %v1517_v1 = vperm.slane %v3134_v25, 1  ;;  %v1507_v52 = vadd.f32 %v1503_v20, %v1475_v41  ;;  %v1533_v47 = vperm.slane %v3134_v25, 2 }
 0x27c   :  { %v1506_v42 = vmul.f32 %v1502_v19, %v3083_v63  ;;  %v1522_v34 = vmul.f32 %v1518_v12, %v1513_v33  ;;  %v1549_v55 = vperm.slane %v3134_v25, 3  ;;  %v1538_v25 = vmul.f32 %v1534_v31, %v1529_v8  ;;  %v1625_v31 = vpop.permute.xlu0 %1624 }
 0x27d   :  { %v1505_v4 = vmul.f32 %v1501_v50, %v3083_v63  ;;  %v1521_v51 = vmul.f32 %v1517_v1, %v1513_v33  ;;  %v1523_v18 = vadd.f32 %v1519_v15, %v1507_v52  ;;  %v1537_v28 = vmul.f32 %v1533_v47, %v1529_v8 }
 0x27e   :  { %v1560_v49 = vpop.permute.xlu1 %1559  ;;  %v1510_v9 = vadd.f32 %v1506_v42, %v1478_v40  ;;  %v1540_v19 = vadd.f32 %v1536_v7, %v1524_v2  ;;  %v1609_v52 = vpop.permute.xlu2 %1608 }
 0x27f   :  { %v1569_v63 = vsel %vm833_vm7, %v1560_v49, %v3115_v21  ;;  %v1570_v24 = vsel %vm833_vm7, %v1566_v58, %v1560_v49  ;;  %v1509_v53 = vadd.f32 %v1505_v4, %v1477_v61  ;;  %v1539_v27 = vadd.f32 %v1535_v30, %v1523_v18 }
 0x280   :  { %v3180_v39 = vmul.f32 %v1809_v29, %v1569_v63  ;;  %v3185_v38 = vmul.f32 %v1810_v35, %v1570_v24  ;;  %v1526_v0 = vadd.f32 %v1522_v34, %v1510_v9 }
 0x281   :  { %v1525_v43 = vadd.f32 %v1521_v51, %v1509_v53 }
 0x282   :  { %v1579_v10 = vperm.slane %v3180_v39, 0  ;;  %v1582_v50 = vperm.slane %v3185_v38, 0  ;;  %v1542_v6 = vadd.f32 %v1538_v25, %v1526_v0  ;;  %v1627_v20 = vperm.slane %v3180_v39, 3 }
 0x283   :  { %v1541_v17 = vadd.f32 %v1537_v28, %v1525_v43  ;;  %v1630_v26 = vperm.slane %v3185_v38, 3  ;;  %v1611_v48 = vperm.slane %v3180_v39, 2  ;;  %v1595_v23 = vperm.slane %v3180_v39, 1 }
 0x284   :  { %v1583_v42 = vmul.f32 %v1579_v10, %v1577_v59  ;;  %v1586_v32 = vmul.f32 %v1582_v50, %v1577_v59  ;;  %v1598_v61 = vperm.slane %v3185_v38, 1 }
 0x285   :  { %v1615_v34 = vmul.f32 %v1611_v48, %v1609_v52 }
 0x286   :  { %v1564_v37 = vpop.permute.xlu1 %1563 }
 0x287   :  { %v1567_v36 = vsel %vm833_vm7, %v1564_v37, %v1566_v58  ;;  %v1568_v11 = vsel %vm833_vm7, %v3115_v21, %v1564_v37  ;;  %v1550_v21 = vperm.slane %v3138_v57, 3  ;;  %v1614_v58 = vperm.slane %v3185_v38, 2 }
 0x288   :  { %v3192_v14 = vmul.f32 %v1811_v22, %v1568_v11  ;;  %v3197_v49 = vmul.f32 %v1812_v62, %v1567_v36 }
 0x28a   :  { %v1580_v46 = vperm.slane %v3192_v14, 0  ;;  %v1581_v60 = vperm.slane %v3197_v49, 0  ;;  %v1612_v37 = vperm.slane %v3192_v14, 2  ;;  %v1613_v40 = vperm.slane %v3197_v49, 2 }
 0x28b   :  { %v1596_v15 = vperm.slane %v3192_v14, 1  ;;  %v1597_v45 = vperm.slane %v3197_v49, 1  ;;  %v1628_v2 = vperm.slane %v3192_v14, 3 }
 0x28c   :  { %v1584_v1 = vmul.f32 %v1580_v46, %v1577_v59  ;;  %v1585_v12 = vmul.f32 %v1581_v60, %v1577_v59  ;;  %v1616_v18 = vmul.f32 %v1612_v37, %v1609_v52  ;;  %v1617_v59 = vmul.f32 %v1613_v40, %v1609_v52 }
 0x28d   :  { %v1632_v22 = vmul.f32 %v1628_v2, %v1625_v31 }
 0x28e   :  { %v1545_v56 = vpop.permute.xlu1 %1544 }
 0x28f   :  { %v1551_v57 = vmul.f32 %v1547_v5, %v1545_v56  ;;  %v1552_v44 = vmul.f32 %v1548_v13, %v1545_v56  ;;  %v1553_v33 = vmul.f32 %v1549_v55, %v1545_v56  ;;  %v1554_v16 = vmul.f32 %v1550_v21, %v1545_v56 }
 0x290   :  { %v1629_v13 = vperm.slane %v3197_v49, 3  ;;  %v1618_v5 = vmul.f32 %v1614_v58, %v1609_v52  ;;  %v1631_v55 = vmul.f32 %v1627_v20, %v1625_v31  ;;  %v1634_v21 = vmul.f32 %v1630_v26, %v1625_v31 }
 0x291   :  { %v1555_v3 = vadd.f32 %v1551_v57, %v1539_v27  ;;  %v1556_v54 = vadd.f32 %v1552_v44, %v1540_v19  ;;  %v1557_v41 = vadd.f32 %v1553_v33, %v1541_v17  ;;  %v1558_v4 = vadd.f32 %v1554_v16, %v1542_v6  ;;  %v1653_v57 = vpop.permute.xlu2 %1652 }
 0x292   :  { %v1633_v14 = vmul.f32 %v1629_v13, %v1625_v31 }
 0x293   :  { %v1588_v63 = vadd.f32 %v1584_v1, %v1556_v54  ;;  %v1589_v24 = vadd.f32 %v1585_v12, %v1557_v41  ;;  %v1590_v53 = vadd.f32 %v1586_v32, %v1558_v4  ;;  %v1587_v47 = vadd.f32 %v1583_v42, %v1555_v3 }
 0x297   :  { %v1593_v9 = vpop.permute.xlu1 %1592 }
 0x298   :  { %v1599_v36 = vmul.f32 %v1595_v23, %v1593_v9  ;;  %v1600_v11 = vmul.f32 %v1596_v15, %v1593_v9  ;;  %v1601_v8 = vmul.f32 %v1597_v45, %v1593_v9  ;;  %v1602_v51 = vmul.f32 %v1598_v61, %v1593_v9 }
 0x29a   :  { %v1603_v29 = vadd.f32 %v1599_v36, %v1587_v47  ;;  %v1604_v39 = vadd.f32 %v1600_v11, %v1588_v63  ;;  %v1605_v35 = vadd.f32 %v1601_v8, %v1589_v24  ;;  %v1606_v38 = vadd.f32 %v1602_v51, %v1590_v53 }
 0x29c   :  { %v1620_v62 = vadd.f32 %v1616_v18, %v1604_v39  ;;  %v1621_v49 = vadd.f32 %v1617_v59, %v1605_v35  ;;  %v1622_v43 = vadd.f32 %v1618_v5, %v1606_v38  ;;  %v1619_v0 = vadd.f32 %v1615_v34, %v1603_v29 }
 0x29e   :  { %v1636_v7 = vadd.f32 %v1632_v22, %v1620_v62  ;;  %v1637_v30 = vadd.f32 %v1633_v14, %v1621_v49  ;;  %v1638_v28 = vadd.f32 %v1634_v21, %v1622_v43  ;;  %v1635_v25 = vadd.f32 %v1631_v55, %v1619_v0 }
 0x2a0   :  { %v1643_v56 = vpop.permute.xlu1 %1642 }
 0x2a1   :  { %v1645_v44 = vmul.f32 %v1643_v56, %v1635_v25  ;;  %v1646_v33 = vmul.f32 %v1643_v56, %v1636_v7  ;;  %v1647_v16 = vmul.f32 %v1643_v56, %v1637_v30  ;;  %v1648_v10 = vmul.f32 %v1643_v56, %v1638_v28 }
 0x2a3   :  { %v1655_v50 = vadd.f32 %v1653_v57, %v1645_v44  ;;  %v1656_v19 = vadd.f32 %v1653_v57, %v1646_v33  ;;  %v1657_v27 = vadd.f32 %v1653_v57, %v1647_v16  ;;  %v1658_v46 = vadd.f32 %v1653_v57, %v1648_v10 }
 0x2a5   :  { %v1660_v60 = vmax.f32 %v1656_v19, 0.0  ;;  %v1662_v17 = vmax.f32 %v1658_v46, 0.0  ;;  %v1659_v6 = vmax.f32 %v1655_v50, 0.0  ;;  %v1661_v20 = vmax.f32 %v1657_v27, 0.0 }
 0x2a7   :  { %v1667_v26 = vrot.slane %v1660_v60, 4  ;;  %v1668_v48 = vrot.slane %v1662_v17, 4 }
 0x2a9   :  { %v1670_v58 = vsel %vm1669_vm8, %v1659_v6, %v1667_v26  ;;  %v1671_v3 = vsel %vm1669_vm8, %v1661_v20, %v1668_v48 }
 0x2aa   :  { %1674 = vst [vmem:[%s3229_s8] sm:$0xff] %v1670_v58 }
 0x2ab   :  { %1675 = vst [vmem:[%s3229_s8 + $0x8] sm:$0xff] %v1671_v3 }

</bundles_post_ra>
